<compile_context>
chip_gen: v7x
topology: tpu7x:2x2x1
jax: 0.10.0
libtpu: 0.0.40
codegen_flags: <defaults>
</compile_context>

<pallas_src>
import functools

import jax
import jax.numpy as jnp
from jax.experimental import pallas as pl
from jax.experimental.pallas import tpu as pltpu

LANES = 128
EPS = 1e-5                      # nn.BatchNorm2d default


def _round_up(x, m):
    return (x + m - 1) // m * m


def _tpu_vmem_capacity():
    try:
        return int(pltpu.get_tpu_info().vmem_capacity_bytes)
    except Exception:
        return 64 * 1024 * 1024                    # conservative (v7x-sized)


_VMEM_CAP = _tpu_vmem_capacity()
# Scoped VMEM limit: half of physical, clamped to [32 MiB, 96 MiB].
VMEM_LIMIT = int(min(max(_VMEM_CAP // 2, 32 * 1024 * 1024), 96 * 1024 * 1024))
_BIG_VMEM = _VMEM_CAP >= 100 * 1024 * 1024         # v5e / v6e (128 MiB)


def _pick_tm(m, k_dim):
    """M-tile: biggest tile that fits; prefer one that divides m (no M pad)."""
    tm_max = 1024 if (_BIG_VMEM and k_dim <= 2048) else 512
    cap = min(tm_max, _round_up(m, 8))
    cap -= cap % 8
    cap = max(cap, 8)
    for tm in range(cap, max(cap // 2, 8) - 1, -8):
        if m % tm == 0:
            return tm                              # divides exactly: no padding
    return cap                                     # fall back to padded M


# ----------------------------------------------------------------------------
# Pallas kernels
# ----------------------------------------------------------------------------
def _matmul_act_kernel(x_ref, w_ref, o_ref, *, act):
    """Fused (patches @ W) + activation for layers without BatchNorm."""
    y = jnp.dot(x_ref[...], w_ref[...], preferred_element_type=jnp.float32)
    if act == "lrelu":
        y = jnp.where(y >= 0.0, y, 0.2 * y)               # LeakyReLU(0.2)
    else:                                                  # sigmoid
        y = pl.reciprocal(1.0 + jnp.exp(-y), approx=True)  # exp + rcp on EUP
        y = jnp.clip(y, 0.0, 1.0)
    o_ref[...] = y.astype(o_ref.dtype)


def _matmul_stats_kernel(x_ref, w_ref, y_ref, psum_ref, pssq_ref):
    """BN pass 1: matmul, store pre-BN y (bf16), per-tile channel partials."""
    y = jnp.dot(x_ref[...], w_ref[...], preferred_element_type=jnp.float32)
    y_ref[...] = y.astype(y_ref.dtype)                     # bf16 HBM roundtrip
    # Stats come from the f32 accumulator; padded rows are exactly zero.
    psum_ref[...] = jnp.sum(y, axis=0, keepdims=True)[None]       # (1, 1, cp)
    pssq_ref[...] = jnp.sum(y * y, axis=0, keepdims=True)[None]   # (1, 1, cp)


def _bn_act_kernel(y_ref, sum_ref, ssq_ref, gamma_ref, beta_ref, o_ref, *,
                   inv_m, eps):
    """BN pass 2: normalize with batch stats + affine + LeakyReLU."""
    mean = sum_ref[...] * inv_m
    var = jnp.maximum(ssq_ref[...] * inv_m - mean * mean, 0.0)
    inv_std = jax.lax.rsqrt(var + eps)
    scale = gamma_ref[...] * inv_std
    shift = beta_ref[...] - mean * scale
    out = y_ref[...].astype(jnp.float32) * scale + shift
    out = jnp.where(out >= 0.0, out, 0.2 * out)            # LeakyReLU(0.2)
    o_ref[...] = out.astype(o_ref.dtype)


# ----------------------------------------------------------------------------
# Glue: bf16-first NHWC im2col (strided slices + concat), padded to out_rows
# ----------------------------------------------------------------------------
def _im2col_nhwc(x_nhwc, k, stride, pad, out_rows, dtype=jnp.bfloat16):
    n, h, w, c = x_nhwc.shape
    x = x_nhwc.astype(dtype)            # cast BEFORE the KxK tap amplification
    if pad:
        x = jnp.pad(x, ((0, 0), (pad, pad), (pad, pad), (0, 0)))
    ho = (h + 2 * pad - k) // stride + 1
    wo = (w + 2 * pad - k) // stride + 1
    taps = [x[:, kh:kh + stride * ho:stride, kw:kw + stride * wo:stride, :]
            for kh in range(k) for kw in range(k)]          # tap-major, then C
    cols = jnp.concatenate(taps, axis=-1).reshape(n * ho * wo, k * k * c)
    m = n * ho * wo
    if out_rows > m:                    # rare: only when no divisor tile found
        cols = jnp.pad(cols, ((0, out_rows - m), (0, 0)))
    return cols


# ----------------------------------------------------------------------------
# One conv (+ optional BN) (+ activation) layer
# ----------------------------------------------------------------------------
def _conv_layer(x_nhwc, weight, gamma, beta, *, stride, pad, use_bn, act):
    c_out, c_in, kh, kw = weight.shape
    n, h, w, _ = x_nhwc.shape
    ho = (h + 2 * pad - kh) // stride + 1
    wo = (w + 2 * pad - kw) // stride + 1
    m = n * ho * wo
    k_dim = kh * kw * c_in

    tm = _pick_tm(m, k_dim)
    m_pad = _round_up(m, tm)
    cp = _round_up(c_out, LANES)
    num_tiles = m_pad // tm
    grid = (num_tiles,)

    # bf16 streamed operands; padded rows/lanes are zero.
    cols = _im2col_nhwc(x_nhwc, kh, stride, pad, m_pad)
    w_mat = jnp.transpose(weight, (2, 3, 1, 0)).reshape(k_dim, c_out)
    w_mat = jnp.pad(w_mat.astype(jnp.bfloat16), ((0, 0), (0, cp - c_out)))

    patch_spec = pl.BlockSpec((tm, k_dim), lambda i: (i, 0))
    w_spec = pl.BlockSpec((k_dim, cp), lambda i: (0, 0))
    ytile_spec = pl.BlockSpec((tm, cp), lambda i: (i, 0))
    chan_spec = pl.BlockSpec((1, cp), lambda i: (0, 0))

    if use_bn:
        # Pass 1 ("parallel" => megacore-shardable): matmul + per-tile partials.
        part_spec = pl.BlockSpec((1, 1, cp), lambda i: (i, 0, 0))
        y, psum, pssq = pl.pallas_call(
            _matmul_stats_kernel,
            out_shape=(jax.ShapeDtypeStruct((m_pad, cp), jnp.bfloat16),
                       jax.ShapeDtypeStruct((num_tiles, 1, cp), jnp.float32),
                       jax.ShapeDtypeStruct((num_tiles, 1, cp), jnp.float32)),
            grid=grid,
            in_specs=[patch_spec, w_spec],
            out_specs=(ytile_spec, part_spec, part_spec),
            compiler_params=pltpu.CompilerParams(
                dimension_semantics=("parallel",),
                vmem_limit_bytes=VMEM_LIMIT),
        )(cols, w_mat)

        csum = jnp.sum(psum, axis=0)     # (1, cp) tiny cross-tile reduce (XLA)
        cssq = jnp.sum(pssq, axis=0)

        gamma_p = jnp.pad(gamma.reshape(1, c_out).astype(jnp.float32),
                          ((0, 0), (0, cp - c_out)), constant_values=1.0)
        beta_p = jnp.pad(beta.reshape(1, c_out).astype(jnp.float32),
                         ((0, 0), (0, cp - c_out)))

        # Pass 2: normalize + LeakyReLU, independent per M tile.
        out = pl.pallas_call(
            functools.partial(_bn_act_kernel, inv_m=1.0 / m, eps=EPS),
            out_shape=jax.ShapeDtypeStruct((m_pad, cp), jnp.bfloat16),
            grid=grid,
            in_specs=[ytile_spec, chan_spec, chan_spec, chan_spec, chan_spec],
            out_specs=ytile_spec,
            compiler_params=pltpu.CompilerParams(
                dimension_semantics=("parallel",),
                vmem_limit_bytes=VMEM_LIMIT),
        )(y, csum, cssq, gamma_p, beta_p)
    else:
        out_dtype = jnp.float32 if act == "sigmoid" else jnp.bfloat16
        out = pl.pallas_call(
            functools.partial(_matmul_act_kernel, act=act),
            out_shape=jax.ShapeDtypeStruct((m_pad, cp), out_dtype),
            grid=grid,
            in_specs=[patch_spec, w_spec],
            out_specs=ytile_spec,
            compiler_params=pltpu.CompilerParams(
                dimension_semantics=("parallel",),
                vmem_limit_bytes=VMEM_LIMIT),
        )(cols, w_mat)

    # Drop M / lane padding and return NHWC.
    return out[:m, :c_out].reshape(n, ho, wo, c_out)


# ----------------------------------------------------------------------------
# Discriminator
# ----------------------------------------------------------------------------
def init_discriminator_params(key, nc, ndf):
    chans = [nc, ndf, ndf * 2, ndf * 4, ndf * 8, 1]
    params = []
    for li in range(5):
        key, wk, gk = jax.random.split(key, 3)
        c_in, c_out = chans[li], chans[li + 1]
        w = 0.02 * jax.random.normal(wk, (c_out, c_in, 4, 4), jnp.float32)
        if li in (1, 2, 3):   # layers followed by BatchNorm2d
            gamma = 1.0 + 0.02 * jax.random.normal(gk, (c_out,), jnp.float32)
            beta = jnp.zeros((c_out,), jnp.float32)
        else:
            gamma = jnp.ones((c_out,), jnp.float32)   # unused placeholders
            beta = jnp.zeros((c_out,), jnp.float32)
        params.append((w, gamma, beta))
    return params


@jax.jit
def discriminator_forward(params, x):
    # external NCHW (PyTorch) -> internal NHWC
    x = jnp.transpose(x, (0, 2, 3, 1))
    # layer 0: conv(nc -> ndf, 4, 2, 1) + LeakyReLU
    w, g, b = params[0]
    x = _conv_layer(x, w, g, b, stride=2, pad=1, use_bn=False, act="lrelu")
    # layers 1..3: conv + BN (batch stats) + LeakyReLU
    for li in (1, 2, 3):
        w, g, b = params[li]
        x = _conv_layer(x, w, g, b, stride=2, pad=1, use_bn=True, act="lrelu")
    # layer 4: conv(ndf*8 -> 1, 4, 1, 0) + Sigmoid
    w, g, b = params[4]
    x = _conv_layer(x, w, g, b, stride=1, pad=0, use_bn=False, act="sigmoid")
    # back to NCHW
    return jnp.transpose(x, (0, 3, 1, 2)).astype(jnp.float32)   # (N,1,1,1)


if __name__ == "__main__":
    nc, ndf = 3, 8
    batch, spatial = 2, 64   # DCGAN discriminator expects 64x64 inputs

    key = jax.random.PRNGKey(0)
    pkey, xkey = jax.random.split(key)
    params = init_discriminator_params(pkey, nc, ndf)
    x = jax.random.normal(xkey, (batch, nc, spatial, spatial), jnp.float32)

    out = discriminator_forward(params, x)
    out = jax.block_until_ready(out)

    assert out.shape == (batch, 1, 1, 1), out.shape
    assert bool(jnp.all(jnp.isfinite(out)))
    assert bool(jnp.all((out >= 0.0) & (out <= 1.0)))   # sigmoid range
    print("KERNEL_OK")
</pallas_src>

<mosaic_0001>
module attributes {stable_mosaic.version = 11 : i64} {
  func.func @_matmul_act_kernel(%arg0: i32, %arg1: memref<512x48xbf16, #tpu.memory_space<vmem>>, %arg2: memref<48x128xbf16, #tpu.memory_space<vmem>>, %arg3: memref<512x128xbf16, #tpu.memory_space<vmem>>) attributes {dimension_semantics = [#tpu.dimension_semantics<parallel>], iteration_bounds = array<i64: 4>, scalar_prefetch = 0 : i64, scratch_operands = 0 : i64, tpu.core_type = #tpu.core_type<tc>, window_params = [{transform_indices = @transform_0, window_bounds = array<i64: 512, 48>}, {pipeline_mode = #tpu.pipeline_mode<synchronous>, transform_indices = @transform_1, window_bounds = array<i64: 48, 128>}, {transform_indices = @transform_2, window_bounds = array<i64: 512, 128>}]} {
    %c0 = arith.constant 0 : index
    %c0_0 = arith.constant 0 : index
    %0 = vector.load %arg1[%c0, %c0_0] : memref<512x48xbf16, #tpu.memory_space<vmem>>, vector<512x48xbf16>
    %c0_1 = arith.constant 0 : index
    %c0_2 = arith.constant 0 : index
    %1 = vector.load %arg2[%c0_1, %c0_2] : memref<48x128xbf16, #tpu.memory_space<vmem>>, vector<48x128xbf16>
    %cst = arith.constant dense<0.000000e+00> : vector<512x128xf32>
    %2 = tpu.matmul %0, %1, %cst {dimension_numbers = #tpu.dot_dimension_numbers<[1], [0], [0], [1], [0, 0, 1, 1], [], []>} : vector<512x48xbf16>, vector<48x128xbf16>, vector<512x128xf32> -> vector<512x128xf32>
    %cst_3 = arith.constant 0.000000e+00 : f32
    %3 = vector.broadcast %cst_3 : f32 to vector<512x128xf32>
    %4 = arith.cmpf oge, %2, %3 : vector<512x128xf32>
    %cst_4 = arith.constant 2.000000e-01 : f32
    %5 = vector.broadcast %cst_4 : f32 to vector<512x128xf32>
    %6 = arith.mulf %5, %2 : vector<512x128xf32>
    %7 = arith.select %4, %2, %6 : vector<512x128xi1>, vector<512x128xf32>
    %8 = arith.truncf %7 : vector<512x128xf32> to vector<512x128xbf16>
    %c0_5 = arith.constant 0 : index
    %c0_6 = arith.constant 0 : index
    %9 = vector.load %arg3[%c0_5, %c0_6] : memref<512x128xbf16, #tpu.memory_space<vmem>>, vector<512x128xbf16>
    tpu.vector_store %arg3[%c0_5, %c0_6], %8 {strides = array<i32>} : memref<512x128xbf16, #tpu.memory_space<vmem>>, vector<512x128xbf16>,
    return
  }
  func.func @transform_0(%arg0: i32) -> (i32, i32) {
    %c0_i32 = arith.constant 0 : i32
    %c0_i32_0 = arith.constant 0 : i32
    return %arg0, %c0_i32 : i32, i32
  }
  func.func @transform_1(%arg0: i32) -> (i32, i32) {
    %c0_i32 = arith.constant 0 : i32
    %c0_i32_0 = arith.constant 0 : i32
    %c0_i32_1 = arith.constant 0 : i32
    return %c0_i32, %c0_i32_0 : i32, i32
  }
  func.func @transform_2(%arg0: i32) -> (i32, i32) {
    %c0_i32 = arith.constant 0 : i32
    %c0_i32_0 = arith.constant 0 : i32
    return %arg0, %c0_i32 : i32, i32
  }
}

module attributes {stable_mosaic.version = 11 : i64} {
  func.func @_bn_act_kernel(%arg0: i32, %arg1: memref<512x128xbf16, #tpu.memory_space<vmem>>, %arg2: memref<1x128xf32, #tpu.memory_space<vmem>>, %arg3: memref<1x128xf32, #tpu.memory_space<vmem>>, %arg4: memref<1x128xf32, #tpu.memory_space<vmem>>, %arg5: memref<1x128xf32, #tpu.memory_space<vmem>>, %arg6: memref<512x128xbf16, #tpu.memory_space<vmem>>) attributes {dimension_semantics = [#tpu.dimension_semantics<parallel>], iteration_bounds = array<i64: 1>, scalar_prefetch = 0 : i64, scratch_operands = 0 : i64, tpu.core_type = #tpu.core_type<tc>, window_params = [{transform_indices = @transform_0, window_bounds = array<i64: 512, 128>}, {pipeline_mode = #tpu.pipeline_mode<synchronous>, transform_indices = @transform_1, window_bounds = array<i64: 1, 128>}, {pipeline_mode = #tpu.pipeline_mode<synchronous>, transform_indices = @transform_2, window_bounds = array<i64: 1, 128>}, {pipeline_mode = #tpu.pipeline_mode<synchronous>, transform_indices = @transform_3, window_bounds = array<i64: 1, 128>}, {pipeline_mode = #tpu.pipeline_mode<synchronous>, transform_indices = @transform_4, window_bounds = array<i64: 1, 128>}, {transform_indices = @transform_5, window_bounds = array<i64: 512, 128>}]} {
    %c0 = arith.constant 0 : index
    %c0_0 = arith.constant 0 : index
    %0 = vector.load %arg2[%c0, %c0_0] : memref<1x128xf32, #tpu.memory_space<vmem>>, vector<1x128xf32>
    %cst = arith.constant 0.001953125 : f32
    %1 = vector.broadcast %cst : f32 to vector<1x128xf32>
    %2 = arith.mulf %0, %1 : vector<1x128xf32>
    %c0_1 = arith.constant 0 : index
    %c0_2 = arith.constant 0 : index
    %3 = vector.load %arg3[%c0_1, %c0_2] : memref<1x128xf32, #tpu.memory_space<vmem>>, vector<1x128xf32>
    %cst_3 = arith.constant 0.001953125 : f32
    %4 = vector.broadcast %cst_3 : f32 to vector<1x128xf32>
    %5 = arith.mulf %3, %4 : vector<1x128xf32>
    %6 = arith.mulf %2, %2 : vector<1x128xf32>
    %7 = arith.subf %5, %6 : vector<1x128xf32>
    %cst_4 = arith.constant 0.000000e+00 : f32
    %8 = vector.broadcast %cst_4 : f32 to vector<1x128xf32>
    %9 = arith.maximumf %7, %8 : vector<1x128xf32>
    %cst_5 = arith.constant 9.99999974E-6 : f32
    %10 = vector.broadcast %cst_5 : f32 to vector<1x128xf32>
    %11 = arith.addf %9, %10 : vector<1x128xf32>
    %12 = math.rsqrt %11 : vector<1x128xf32>
    %c0_6 = arith.constant 0 : index
    %c0_7 = arith.constant 0 : index
    %13 = vector.load %arg4[%c0_6, %c0_7] : memref<1x128xf32, #tpu.memory_space<vmem>>, vector<1x128xf32>
    %14 = arith.mulf %13, %12 : vector<1x128xf32>
    %c0_8 = arith.constant 0 : index
    %c0_9 = arith.constant 0 : index
    %15 = vector.load %arg5[%c0_8, %c0_9] : memref<1x128xf32, #tpu.memory_space<vmem>>, vector<1x128xf32>
    %16 = arith.mulf %2, %14 : vector<1x128xf32>
    %17 = arith.subf %15, %16 : vector<1x128xf32>
    %c0_10 = arith.constant 0 : index
    %c0_11 = arith.constant 0 : index
    %18 = vector.load %arg1[%c0_10, %c0_11] : memref<512x128xbf16, #tpu.memory_space<vmem>>, vector<512x128xbf16>
    %19 = arith.extf %18 : vector<512x128xbf16> to vector<512x128xf32>
    %20 = vector.broadcast %14 : vector<1x128xf32> to vector<512x128xf32>
    %21 = arith.mulf %19, %20 : vector<512x128xf32>
    %22 = vector.broadcast %17 : vector<1x128xf32> to vector<512x128xf32>
    %23 = arith.addf %21, %22 : vector<512x128xf32>
    %cst_12 = arith.constant 0.000000e+00 : f32
    %24 = vector.broadcast %cst_12 : f32 to vector<512x128xf32>
    %25 = arith.cmpf oge, %23, %24 : vector<512x128xf32>
    %cst_13 = arith.constant 2.000000e-01 : f32
    %26 = vector.broadcast %cst_13 : f32 to vector<512x128xf32>
    %27 = arith.mulf %26, %23 : vector<512x128xf32>
    %28 = arith.select %25, %23, %27 : vector<512x128xi1>, vector<512x128xf32>
    %29 = arith.truncf %28 : vector<512x128xf32> to vector<512x128xbf16>
    %c0_14 = arith.constant 0 : index
    %c0_15 = arith.constant 0 : index
    %30 = vector.load %arg6[%c0_14, %c0_15] : memref<512x128xbf16, #tpu.memory_space<vmem>>, vector<512x128xbf16>
    tpu.vector_store %arg6[%c0_14, %c0_15], %29 {strides = array<i32>} : memref<512x128xbf16, #tpu.memory_space<vmem>>, vector<512x128xbf16>,
    return
  }
  func.func @transform_0(%arg0: i32) -> (i32, i32) {
    %c0_i32 = arith.constant 0 : i32
    %c0_i32_0 = arith.constant 0 : i32
    return %arg0, %c0_i32 : i32, i32
  }
  func.func @transform_1(%arg0: i32) -> (i32, i32) {
    %c0_i32 = arith.constant 0 : i32
    %c0_i32_0 = arith.constant 0 : i32
    %c0_i32_1 = arith.constant 0 : i32
    return %c0_i32, %c0_i32_0 : i32, i32
  }
  func.func @transform_2(%arg0: i32) -> (i32, i32) {
    %c0_i32 = arith.constant 0 : i32
    %c0_i32_0 = arith.constant 0 : i32
    %c0_i32_1 = arith.constant 0 : i32
    return %c0_i32, %c0_i32_0 : i32, i32
  }
  func.func @transform_3(%arg0: i32) -> (i32, i32) {
    %c0_i32 = arith.constant 0 : i32
    %c0_i32_0 = arith.constant 0 : i32
    %c0_i32_1 = arith.constant 0 : i32
    return %c0_i32, %c0_i32_0 : i32, i32
  }
  func.func @transform_4(%arg0: i32) -> (i32, i32) {
    %c0_i32 = arith.constant 0 : i32
    %c0_i32_0 = arith.constant 0 : i32
    %c0_i32_1 = arith.constant 0 : i32
    return %c0_i32, %c0_i32_0 : i32, i32
  }
  func.func @transform_5(%arg0: i32) -> (i32, i32) {
    %c0_i32 = arith.constant 0 : i32
    %c0_i32_0 = arith.constant 0 : i32
    return %arg0, %c0_i32 : i32, i32
  }
}

module attributes {stable_mosaic.version = 11 : i64} {
  func.func @_matmul_stats_kernel(%arg0: i32, %arg1: memref<512x128xbf16, #tpu.memory_space<vmem>>, %arg2: memref<128x128xbf16, #tpu.memory_space<vmem>>, %arg3: memref<512x128xbf16, #tpu.memory_space<vmem>>, %arg4: memref<1x1x128xf32, #tpu.memory_space<vmem>>, %arg5: memref<1x1x128xf32, #tpu.memory_space<vmem>>) attributes {dimension_semantics = [#tpu.dimension_semantics<parallel>], iteration_bounds = array<i64: 1>, scalar_prefetch = 0 : i64, scratch_operands = 0 : i64, tpu.core_type = #tpu.core_type<tc>, window_params = [{transform_indices = @transform_0, window_bounds = array<i64: 512, 128>}, {pipeline_mode = #tpu.pipeline_mode<synchronous>, transform_indices = @transform_1, window_bounds = array<i64: 128, 128>}, {transform_indices = @transform_2, window_bounds = array<i64: 512, 128>}, {transform_indices = @transform_3, window_bounds = array<i64: 1, 1, 128>}, {transform_indices = @transform_4, window_bounds = array<i64: 1, 1, 128>}]} {
    %c0 = arith.constant 0 : index
    %c0_0 = arith.constant 0 : index
    %0 = vector.load %arg1[%c0, %c0_0] : memref<512x128xbf16, #tpu.memory_space<vmem>>, vector<512x128xbf16>
    %c0_1 = arith.constant 0 : index
    %c0_2 = arith.constant 0 : index
    %1 = vector.load %arg2[%c0_1, %c0_2] : memref<128x128xbf16, #tpu.memory_space<vmem>>, vector<128x128xbf16>
    %cst = arith.constant dense<0.000000e+00> : vector<512x128xf32>
    %2 = tpu.matmul %0, %1, %cst {dimension_numbers = #tpu.dot_dimension_numbers<[1], [0], [0], [1], [0, 0, 1, 1], [], []>} : vector<512x128xbf16>, vector<128x128xbf16>, vector<512x128xf32> -> vector<512x128xf32>
    %3 = arith.truncf %2 : vector<512x128xf32> to vector<512x128xbf16>
    %c0_3 = arith.constant 0 : index
    %c0_4 = arith.constant 0 : index
    %4 = vector.load %arg3[%c0_3, %c0_4] : memref<512x128xbf16, #tpu.memory_space<vmem>>, vector<512x128xbf16>
    tpu.vector_store %arg3[%c0_3, %c0_4], %3 {strides = array<i32>} : memref<512x128xbf16, #tpu.memory_space<vmem>>, vector<512x128xbf16>,
    %cst_5 = arith.constant dense<0.000000e+00> : vector<128xf32>
    %5 = vector.multi_reduction <add>, %2, %cst_5 [0] : vector<512x128xf32> to vector<128xf32>
    %6 = vector.shape_cast %5 : vector<128xf32> to vector<1x128xf32>
    %7 = vector.shape_cast %6 : vector<1x128xf32> to vector<1x1x128xf32>
    %c0_6 = arith.constant 0 : index
    %c0_7 = arith.constant 0 : index
    %c0_8 = arith.constant 0 : index
    %8 = vector.load %arg4[%c0_6, %c0_7, %c0_8] : memref<1x1x128xf32, #tpu.memory_space<vmem>>, vector<1x1x128xf32>
    tpu.vector_store %arg4[%c0_6, %c0_7, %c0_8], %7 {strides = array<i32>} : memref<1x1x128xf32, #tpu.memory_space<vmem>>, vector<1x1x128xf32>,
    %9 = arith.mulf %2, %2 : vector<512x128xf32>
    %cst_9 = arith.constant dense<0.000000e+00> : vector<128xf32>
    %10 = vector.multi_reduction <add>, %9, %cst_9 [0] : vector<512x128xf32> to vector<128xf32>
    %11 = vector.shape_cast %10 : vector<128xf32> to vector<1x128xf32>
    %12 = vector.shape_cast %11 : vector<1x128xf32> to vector<1x1x128xf32>
    %c0_10 = arith.constant 0 : index
    %c0_11 = arith.constant 0 : index
    %c0_12 = arith.constant 0 : index
    %13 = vector.load %arg5[%c0_10, %c0_11, %c0_12] : memref<1x1x128xf32, #tpu.memory_space<vmem>>, vector<1x1x128xf32>
    tpu.vector_store %arg5[%c0_10, %c0_11, %c0_12], %12 {strides = array<i32>} : memref<1x1x128xf32, #tpu.memory_space<vmem>>, vector<1x1x128xf32>,
    return
  }
  func.func @transform_0(%arg0: i32) -> (i32, i32) {
    %c0_i32 = arith.constant 0 : i32
    %c0_i32_0 = arith.constant 0 : i32
    return %arg0, %c0_i32 : i32, i32
  }
  func.func @transform_1(%arg0: i32) -> (i32, i32) {
    %c0_i32 = arith.constant 0 : i32
    %c0_i32_0 = arith.constant 0 : i32
    %c0_i32_1 = arith.constant 0 : i32
    return %c0_i32, %c0_i32_0 : i32, i32
  }
  func.func @transform_2(%arg0: i32) -> (i32, i32) {
    %c0_i32 = arith.constant 0 : i32
    %c0_i32_0 = arith.constant 0 : i32
    return %arg0, %c0_i32 : i32, i32
  }
  func.func @transform_3(%arg0: i32) -> (i32, i32, i32) {
    %c0_i32 = arith.constant 0 : i32
    %c0_i32_0 = arith.constant 0 : i32
    %c0_i32_1 = arith.constant 0 : i32
    return %arg0, %c0_i32, %c0_i32_0 : i32, i32, i32
  }
  func.func @transform_4(%arg0: i32) -> (i32, i32, i32) {
    %c0_i32 = arith.constant 0 : i32
    %c0_i32_0 = arith.constant 0 : i32
    %c0_i32_1 = arith.constant 0 : i32
    return %arg0, %c0_i32, %c0_i32_0 : i32, i32, i32
  }
}

module attributes {stable_mosaic.version = 11 : i64} {
  func.func @_matmul_stats_kernel(%arg0: i32, %arg1: memref<128x256xbf16, #tpu.memory_space<vmem>>, %arg2: memref<256x128xbf16, #tpu.memory_space<vmem>>, %arg3: memref<128x128xbf16, #tpu.memory_space<vmem>>, %arg4: memref<1x1x128xf32, #tpu.memory_space<vmem>>, %arg5: memref<1x1x128xf32, #tpu.memory_space<vmem>>) attributes {dimension_semantics = [#tpu.dimension_semantics<parallel>], iteration_bounds = array<i64: 1>, scalar_prefetch = 0 : i64, scratch_operands = 0 : i64, tpu.core_type = #tpu.core_type<tc>, window_params = [{transform_indices = @transform_0, window_bounds = array<i64: 128, 256>}, {pipeline_mode = #tpu.pipeline_mode<synchronous>, transform_indices = @transform_1, window_bounds = array<i64: 256, 128>}, {transform_indices = @transform_2, window_bounds = array<i64: 128, 128>}, {transform_indices = @transform_3, window_bounds = array<i64: 1, 1, 128>}, {transform_indices = @transform_4, window_bounds = array<i64: 1, 1, 128>}]} {
    %c0 = arith.constant 0 : index
    %c0_0 = arith.constant 0 : index
    %0 = vector.load %arg1[%c0, %c0_0] : memref<128x256xbf16, #tpu.memory_space<vmem>>, vector<128x256xbf16>
    %c0_1 = arith.constant 0 : index
    %c0_2 = arith.constant 0 : index
    %1 = vector.load %arg2[%c0_1, %c0_2] : memref<256x128xbf16, #tpu.memory_space<vmem>>, vector<256x128xbf16>
    %cst = arith.constant dense<0.000000e+00> : vector<128x128xf32>
    %2 = tpu.matmul %0, %1, %cst {dimension_numbers = #tpu.dot_dimension_numbers<[1], [0], [0], [1], [0, 0, 1, 1], [], []>} : vector<128x256xbf16>, vector<256x128xbf16>, vector<128x128xf32> -> vector<128x128xf32>
    %3 = arith.truncf %2 : vector<128x128xf32> to vector<128x128xbf16>
    %c0_3 = arith.constant 0 : index
    %c0_4 = arith.constant 0 : index
    %4 = vector.load %arg3[%c0_3, %c0_4] : memref<128x128xbf16, #tpu.memory_space<vmem>>, vector<128x128xbf16>
    tpu.vector_store %arg3[%c0_3, %c0_4], %3 {strides = array<i32>} : memref<128x128xbf16, #tpu.memory_space<vmem>>, vector<128x128xbf16>,
    %cst_5 = arith.constant dense<0.000000e+00> : vector<128xf32>
    %5 = vector.multi_reduction <add>, %2, %cst_5 [0] : vector<128x128xf32> to vector<128xf32>
    %6 = vector.shape_cast %5 : vector<128xf32> to vector<1x128xf32>
    %7 = vector.shape_cast %6 : vector<1x128xf32> to vector<1x1x128xf32>
    %c0_6 = arith.constant 0 : index
    %c0_7 = arith.constant 0 : index
    %c0_8 = arith.constant 0 : index
    %8 = vector.load %arg4[%c0_6, %c0_7, %c0_8] : memref<1x1x128xf32, #tpu.memory_space<vmem>>, vector<1x1x128xf32>
    tpu.vector_store %arg4[%c0_6, %c0_7, %c0_8], %7 {strides = array<i32>} : memref<1x1x128xf32, #tpu.memory_space<vmem>>, vector<1x1x128xf32>,
    %9 = arith.mulf %2, %2 : vector<128x128xf32>
    %cst_9 = arith.constant dense<0.000000e+00> : vector<128xf32>
    %10 = vector.multi_reduction <add>, %9, %cst_9 [0] : vector<128x128xf32> to vector<128xf32>
    %11 = vector.shape_cast %10 : vector<128xf32> to vector<1x128xf32>
    %12 = vector.shape_cast %11 : vector<1x128xf32> to vector<1x1x128xf32>
    %c0_10 = arith.constant 0 : index
    %c0_11 = arith.constant 0 : index
    %c0_12 = arith.constant 0 : index
    %13 = vector.load %arg5[%c0_10, %c0_11, %c0_12] : memref<1x1x128xf32, #tpu.memory_space<vmem>>, vector<1x1x128xf32>
    tpu.vector_store %arg5[%c0_10, %c0_11, %c0_12], %12 {strides = array<i32>} : memref<1x1x128xf32, #tpu.memory_space<vmem>>, vector<1x1x128xf32>,
    return
  }
  func.func @transform_0(%arg0: i32) -> (i32, i32) {
    %c0_i32 = arith.constant 0 : i32
    %c0_i32_0 = arith.constant 0 : i32
    return %arg0, %c0_i32 : i32, i32
  }
  func.func @transform_1(%arg0: i32) -> (i32, i32) {
    %c0_i32 = arith.constant 0 : i32
    %c0_i32_0 = arith.constant 0 : i32
    %c0_i32_1 = arith.constant 0 : i32
    return %c0_i32, %c0_i32_0 : i32, i32
  }
  func.func @transform_2(%arg0: i32) -> (i32, i32) {
    %c0_i32 = arith.constant 0 : i32
    %c0_i32_0 = arith.constant 0 : i32
    return %arg0, %c0_i32 : i32, i32
  }
  func.func @transform_3(%arg0: i32) -> (i32, i32, i32) {
    %c0_i32 = arith.constant 0 : i32
    %c0_i32_0 = arith.constant 0 : i32
    %c0_i32_1 = arith.constant 0 : i32
    return %arg0, %c0_i32, %c0_i32_0 : i32, i32, i32
  }
  func.func @transform_4(%arg0: i32) -> (i32, i32, i32) {
    %c0_i32 = arith.constant 0 : i32
    %c0_i32_0 = arith.constant 0 : i32
    %c0_i32_1 = arith.constant 0 : i32
    return %arg0, %c0_i32, %c0_i32_0 : i32, i32, i32
  }
}

module attributes {stable_mosaic.version = 11 : i64} {
  func.func @_bn_act_kernel(%arg0: i32, %arg1: memref<128x128xbf16, #tpu.memory_space<vmem>>, %arg2: memref<1x128xf32, #tpu.memory_space<vmem>>, %arg3: memref<1x128xf32, #tpu.memory_space<vmem>>, %arg4: memref<1x128xf32, #tpu.memory_space<vmem>>, %arg5: memref<1x128xf32, #tpu.memory_space<vmem>>, %arg6: memref<128x128xbf16, #tpu.memory_space<vmem>>) attributes {dimension_semantics = [#tpu.dimension_semantics<parallel>], iteration_bounds = array<i64: 1>, scalar_prefetch = 0 : i64, scratch_operands = 0 : i64, tpu.core_type = #tpu.core_type<tc>, window_params = [{transform_indices = @transform_0, window_bounds = array<i64: 128, 128>}, {pipeline_mode = #tpu.pipeline_mode<synchronous>, transform_indices = @transform_1, window_bounds = array<i64: 1, 128>}, {pipeline_mode = #tpu.pipeline_mode<synchronous>, transform_indices = @transform_2, window_bounds = array<i64: 1, 128>}, {pipeline_mode = #tpu.pipeline_mode<synchronous>, transform_indices = @transform_3, window_bounds = array<i64: 1, 128>}, {pipeline_mode = #tpu.pipeline_mode<synchronous>, transform_indices = @transform_4, window_bounds = array<i64: 1, 128>}, {transform_indices = @transform_5, window_bounds = array<i64: 128, 128>}]} {
    %c0 = arith.constant 0 : index
    %c0_0 = arith.constant 0 : index
    %0 = vector.load %arg2[%c0, %c0_0] : memref<1x128xf32, #tpu.memory_space<vmem>>, vector<1x128xf32>
    %cst = arith.constant 7.812500e-03 : f32
    %1 = vector.broadcast %cst : f32 to vector<1x128xf32>
    %2 = arith.mulf %0, %1 : vector<1x128xf32>
    %c0_1 = arith.constant 0 : index
    %c0_2 = arith.constant 0 : index
    %3 = vector.load %arg3[%c0_1, %c0_2] : memref<1x128xf32, #tpu.memory_space<vmem>>, vector<1x128xf32>
    %cst_3 = arith.constant 7.812500e-03 : f32
    %4 = vector.broadcast %cst_3 : f32 to vector<1x128xf32>
    %5 = arith.mulf %3, %4 : vector<1x128xf32>
    %6 = arith.mulf %2, %2 : vector<1x128xf32>
    %7 = arith.subf %5, %6 : vector<1x128xf32>
    %cst_4 = arith.constant 0.000000e+00 : f32
    %8 = vector.broadcast %cst_4 : f32 to vector<1x128xf32>
    %9 = arith.maximumf %7, %8 : vector<1x128xf32>
    %cst_5 = arith.constant 9.99999974E-6 : f32
    %10 = vector.broadcast %cst_5 : f32 to vector<1x128xf32>
    %11 = arith.addf %9, %10 : vector<1x128xf32>
    %12 = math.rsqrt %11 : vector<1x128xf32>
    %c0_6 = arith.constant 0 : index
    %c0_7 = arith.constant 0 : index
    %13 = vector.load %arg4[%c0_6, %c0_7] : memref<1x128xf32, #tpu.memory_space<vmem>>, vector<1x128xf32>
    %14 = arith.mulf %13, %12 : vector<1x128xf32>
    %c0_8 = arith.constant 0 : index
    %c0_9 = arith.constant 0 : index
    %15 = vector.load %arg5[%c0_8, %c0_9] : memref<1x128xf32, #tpu.memory_space<vmem>>, vector<1x128xf32>
    %16 = arith.mulf %2, %14 : vector<1x128xf32>
    %17 = arith.subf %15, %16 : vector<1x128xf32>
    %c0_10 = arith.constant 0 : index
    %c0_11 = arith.constant 0 : index
    %18 = vector.load %arg1[%c0_10, %c0_11] : memref<128x128xbf16, #tpu.memory_space<vmem>>, vector<128x128xbf16>
    %19 = arith.extf %18 : vector<128x128xbf16> to vector<128x128xf32>
    %20 = vector.broadcast %14 : vector<1x128xf32> to vector<128x128xf32>
    %21 = arith.mulf %19, %20 : vector<128x128xf32>
    %22 = vector.broadcast %17 : vector<1x128xf32> to vector<128x128xf32>
    %23 = arith.addf %21, %22 : vector<128x128xf32>
    %cst_12 = arith.constant 0.000000e+00 : f32
    %24 = vector.broadcast %cst_12 : f32 to vector<128x128xf32>
    %25 = arith.cmpf oge, %23, %24 : vector<128x128xf32>
    %cst_13 = arith.constant 2.000000e-01 : f32
    %26 = vector.broadcast %cst_13 : f32 to vector<128x128xf32>
    %27 = arith.mulf %26, %23 : vector<128x128xf32>
    %28 = arith.select %25, %23, %27 : vector<128x128xi1>, vector<128x128xf32>
    %29 = arith.truncf %28 : vector<128x128xf32> to vector<128x128xbf16>
    %c0_14 = arith.constant 0 : index
    %c0_15 = arith.constant 0 : index
    %30 = vector.load %arg6[%c0_14, %c0_15] : memref<128x128xbf16, #tpu.memory_space<vmem>>, vector<128x128xbf16>
    tpu.vector_store %arg6[%c0_14, %c0_15], %29 {strides = array<i32>} : memref<128x128xbf16, #tpu.memory_space<vmem>>, vector<128x128xbf16>,
    return
  }
  func.func @transform_0(%arg0: i32) -> (i32, i32) {
    %c0_i32 = arith.constant 0 : i32
    %c0_i32_0 = arith.constant 0 : i32
    return %arg0, %c0_i32 : i32, i32
  }
  func.func @transform_1(%arg0: i32) -> (i32, i32) {
    %c0_i32 = arith.constant 0 : i32
    %c0_i32_0 = arith.constant 0 : i32
    %c0_i32_1 = arith.constant 0 : i32
    return %c0_i32, %c0_i32_0 : i32, i32
  }
  func.func @transform_2(%arg0: i32) -> (i32, i32) {
    %c0_i32 = arith.constant 0 : i32
    %c0_i32_0 = arith.constant 0 : i32
    %c0_i32_1 = arith.constant 0 : i32
    return %c0_i32, %c0_i32_0 : i32, i32
  }
  func.func @transform_3(%arg0: i32) -> (i32, i32) {
    %c0_i32 = arith.constant 0 : i32
    %c0_i32_0 = arith.constant 0 : i32
    %c0_i32_1 = arith.constant 0 : i32
    return %c0_i32, %c0_i32_0 : i32, i32
  }
  func.func @transform_4(%arg0: i32) -> (i32, i32) {
    %c0_i32 = arith.constant 0 : i32
    %c0_i32_0 = arith.constant 0 : i32
    %c0_i32_1 = arith.constant 0 : i32
    return %c0_i32, %c0_i32_0 : i32, i32
  }
  func.func @transform_5(%arg0: i32) -> (i32, i32) {
    %c0_i32 = arith.constant 0 : i32
    %c0_i32_0 = arith.constant 0 : i32
    return %arg0, %c0_i32 : i32, i32
  }
}

module attributes {stable_mosaic.version = 11 : i64} {
  func.func @_matmul_stats_kernel(%arg0: i32, %arg1: memref<32x512xbf16, #tpu.memory_space<vmem>>, %arg2: memref<512x128xbf16, #tpu.memory_space<vmem>>, %arg3: memref<32x128xbf16, #tpu.memory_space<vmem>>, %arg4: memref<1x1x128xf32, #tpu.memory_space<vmem>>, %arg5: memref<1x1x128xf32, #tpu.memory_space<vmem>>) attributes {dimension_semantics = [#tpu.dimension_semantics<parallel>], iteration_bounds = array<i64: 1>, scalar_prefetch = 0 : i64, scratch_operands = 0 : i64, tpu.core_type = #tpu.core_type<tc>, window_params = [{transform_indices = @transform_0, window_bounds = array<i64: 32, 512>}, {pipeline_mode = #tpu.pipeline_mode<synchronous>, transform_indices = @transform_1, window_bounds = array<i64: 512, 128>}, {transform_indices = @transform_2, window_bounds = array<i64: 32, 128>}, {transform_indices = @transform_3, window_bounds = array<i64: 1, 1, 128>}, {transform_indices = @transform_4, window_bounds = array<i64: 1, 1, 128>}]} {
    %c0 = arith.constant 0 : index
    %c0_0 = arith.constant 0 : index
    %0 = vector.load %arg1[%c0, %c0_0] : memref<32x512xbf16, #tpu.memory_space<vmem>>, vector<32x512xbf16>
    %c0_1 = arith.constant 0 : index
    %c0_2 = arith.constant 0 : index
    %1 = vector.load %arg2[%c0_1, %c0_2] : memref<512x128xbf16, #tpu.memory_space<vmem>>, vector<512x128xbf16>
    %cst = arith.constant dense<0.000000e+00> : vector<32x128xf32>
    %2 = tpu.matmul %0, %1, %cst {dimension_numbers = #tpu.dot_dimension_numbers<[1], [0], [0], [1], [0, 0, 1, 1], [], []>} : vector<32x512xbf16>, vector<512x128xbf16>, vector<32x128xf32> -> vector<32x128xf32>
    %3 = arith.truncf %2 : vector<32x128xf32> to vector<32x128xbf16>
    %c0_3 = arith.constant 0 : index
    %c0_4 = arith.constant 0 : index
    %4 = vector.load %arg3[%c0_3, %c0_4] : memref<32x128xbf16, #tpu.memory_space<vmem>>, vector<32x128xbf16>
    tpu.vector_store %arg3[%c0_3, %c0_4], %3 {strides = array<i32>} : memref<32x128xbf16, #tpu.memory_space<vmem>>, vector<32x128xbf16>,
    %cst_5 = arith.constant dense<0.000000e+00> : vector<128xf32>
    %5 = vector.multi_reduction <add>, %2, %cst_5 [0] : vector<32x128xf32> to vector<128xf32>
    %6 = vector.shape_cast %5 : vector<128xf32> to vector<1x128xf32>
    %7 = vector.shape_cast %6 : vector<1x128xf32> to vector<1x1x128xf32>
    %c0_6 = arith.constant 0 : index
    %c0_7 = arith.constant 0 : index
    %c0_8 = arith.constant 0 : index
    %8 = vector.load %arg4[%c0_6, %c0_7, %c0_8] : memref<1x1x128xf32, #tpu.memory_space<vmem>>, vector<1x1x128xf32>
    tpu.vector_store %arg4[%c0_6, %c0_7, %c0_8], %7 {strides = array<i32>} : memref<1x1x128xf32, #tpu.memory_space<vmem>>, vector<1x1x128xf32>,
    %9 = arith.mulf %2, %2 : vector<32x128xf32>
    %cst_9 = arith.constant dense<0.000000e+00> : vector<128xf32>
    %10 = vector.multi_reduction <add>, %9, %cst_9 [0] : vector<32x128xf32> to vector<128xf32>
    %11 = vector.shape_cast %10 : vector<128xf32> to vector<1x128xf32>
    %12 = vector.shape_cast %11 : vector<1x128xf32> to vector<1x1x128xf32>
    %c0_10 = arith.constant 0 : index
    %c0_11 = arith.constant 0 : index
    %c0_12 = arith.constant 0 : index
    %13 = vector.load %arg5[%c0_10, %c0_11, %c0_12] : memref<1x1x128xf32, #tpu.memory_space<vmem>>, vector<1x1x128xf32>
    tpu.vector_store %arg5[%c0_10, %c0_11, %c0_12], %12 {strides = array<i32>} : memref<1x1x128xf32, #tpu.memory_space<vmem>>, vector<1x1x128xf32>,
    return
  }
  func.func @transform_0(%arg0: i32) -> (i32, i32) {
    %c0_i32 = arith.constant 0 : i32
    %c0_i32_0 = arith.constant 0 : i32
    return %arg0, %c0_i32 : i32, i32
  }
  func.func @transform_1(%arg0: i32) -> (i32, i32) {
    %c0_i32 = arith.constant 0 : i32
    %c0_i32_0 = arith.constant 0 : i32
    %c0_i32_1 = arith.constant 0 : i32
    return %c0_i32, %c0_i32_0 : i32, i32
  }
  func.func @transform_2(%arg0: i32) -> (i32, i32) {
    %c0_i32 = arith.constant 0 : i32
    %c0_i32_0 = arith.constant 0 : i32
    return %arg0, %c0_i32 : i32, i32
  }
  func.func @transform_3(%arg0: i32) -> (i32, i32, i32) {
    %c0_i32 = arith.constant 0 : i32
    %c0_i32_0 = arith.constant 0 : i32
    %c0_i32_1 = arith.constant 0 : i32
    return %arg0, %c0_i32, %c0_i32_0 : i32, i32, i32
  }
  func.func @transform_4(%arg0: i32) -> (i32, i32, i32) {
    %c0_i32 = arith.constant 0 : i32
    %c0_i32_0 = arith.constant 0 : i32
    %c0_i32_1 = arith.constant 0 : i32
    return %arg0, %c0_i32, %c0_i32_0 : i32, i32, i32
  }
}

module attributes {stable_mosaic.version = 11 : i64} {
  func.func @_bn_act_kernel(%arg0: i32, %arg1: memref<32x128xbf16, #tpu.memory_space<vmem>>, %arg2: memref<1x128xf32, #tpu.memory_space<vmem>>, %arg3: memref<1x128xf32, #tpu.memory_space<vmem>>, %arg4: memref<1x128xf32, #tpu.memory_space<vmem>>, %arg5: memref<1x128xf32, #tpu.memory_space<vmem>>, %arg6: memref<32x128xbf16, #tpu.memory_space<vmem>>) attributes {dimension_semantics = [#tpu.dimension_semantics<parallel>], iteration_bounds = array<i64: 1>, scalar_prefetch = 0 : i64, scratch_operands = 0 : i64, tpu.core_type = #tpu.core_type<tc>, window_params = [{transform_indices = @transform_0, window_bounds = array<i64: 32, 128>}, {pipeline_mode = #tpu.pipeline_mode<synchronous>, transform_indices = @transform_1, window_bounds = array<i64: 1, 128>}, {pipeline_mode = #tpu.pipeline_mode<synchronous>, transform_indices = @transform_2, window_bounds = array<i64: 1, 128>}, {pipeline_mode = #tpu.pipeline_mode<synchronous>, transform_indices = @transform_3, window_bounds = array<i64: 1, 128>}, {pipeline_mode = #tpu.pipeline_mode<synchronous>, transform_indices = @transform_4, window_bounds = array<i64: 1, 128>}, {transform_indices = @transform_5, window_bounds = array<i64: 32, 128>}]} {
    %c0 = arith.constant 0 : index
    %c0_0 = arith.constant 0 : index
    %0 = vector.load %arg2[%c0, %c0_0] : memref<1x128xf32, #tpu.memory_space<vmem>>, vector<1x128xf32>
    %cst = arith.constant 3.125000e-02 : f32
    %1 = vector.broadcast %cst : f32 to vector<1x128xf32>
    %2 = arith.mulf %0, %1 : vector<1x128xf32>
    %c0_1 = arith.constant 0 : index
    %c0_2 = arith.constant 0 : index
    %3 = vector.load %arg3[%c0_1, %c0_2] : memref<1x128xf32, #tpu.memory_space<vmem>>, vector<1x128xf32>
    %cst_3 = arith.constant 3.125000e-02 : f32
    %4 = vector.broadcast %cst_3 : f32 to vector<1x128xf32>
    %5 = arith.mulf %3, %4 : vector<1x128xf32>
    %6 = arith.mulf %2, %2 : vector<1x128xf32>
    %7 = arith.subf %5, %6 : vector<1x128xf32>
    %cst_4 = arith.constant 0.000000e+00 : f32
    %8 = vector.broadcast %cst_4 : f32 to vector<1x128xf32>
    %9 = arith.maximumf %7, %8 : vector<1x128xf32>
    %cst_5 = arith.constant 9.99999974E-6 : f32
    %10 = vector.broadcast %cst_5 : f32 to vector<1x128xf32>
    %11 = arith.addf %9, %10 : vector<1x128xf32>
    %12 = math.rsqrt %11 : vector<1x128xf32>
    %c0_6 = arith.constant 0 : index
    %c0_7 = arith.constant 0 : index
    %13 = vector.load %arg4[%c0_6, %c0_7] : memref<1x128xf32, #tpu.memory_space<vmem>>, vector<1x128xf32>
    %14 = arith.mulf %13, %12 : vector<1x128xf32>
    %c0_8 = arith.constant 0 : index
    %c0_9 = arith.constant 0 : index
    %15 = vector.load %arg5[%c0_8, %c0_9] : memref<1x128xf32, #tpu.memory_space<vmem>>, vector<1x128xf32>
    %16 = arith.mulf %2, %14 : vector<1x128xf32>
    %17 = arith.subf %15, %16 : vector<1x128xf32>
    %c0_10 = arith.constant 0 : index
    %c0_11 = arith.constant 0 : index
    %18 = vector.load %arg1[%c0_10, %c0_11] : memref<32x128xbf16, #tpu.memory_space<vmem>>, vector<32x128xbf16>
    %19 = arith.extf %18 : vector<32x128xbf16> to vector<32x128xf32>
    %20 = vector.broadcast %14 : vector<1x128xf32> to vector<32x128xf32>
    %21 = arith.mulf %19, %20 : vector<32x128xf32>
    %22 = vector.broadcast %17 : vector<1x128xf32> to vector<32x128xf32>
    %23 = arith.addf %21, %22 : vector<32x128xf32>
    %cst_12 = arith.constant 0.000000e+00 : f32
    %24 = vector.broadcast %cst_12 : f32 to vector<32x128xf32>
    %25 = arith.cmpf oge, %23, %24 : vector<32x128xf32>
    %cst_13 = arith.constant 2.000000e-01 : f32
    %26 = vector.broadcast %cst_13 : f32 to vector<32x128xf32>
    %27 = arith.mulf %26, %23 : vector<32x128xf32>
    %28 = arith.select %25, %23, %27 : vector<32x128xi1>, vector<32x128xf32>
    %29 = arith.truncf %28 : vector<32x128xf32> to vector<32x128xbf16>
    %c0_14 = arith.constant 0 : index
    %c0_15 = arith.constant 0 : index
    %30 = vector.load %arg6[%c0_14, %c0_15] : memref<32x128xbf16, #tpu.memory_space<vmem>>, vector<32x128xbf16>
    tpu.vector_store %arg6[%c0_14, %c0_15], %29 {strides = array<i32>} : memref<32x128xbf16, #tpu.memory_space<vmem>>, vector<32x128xbf16>,
    return
  }
  func.func @transform_0(%arg0: i32) -> (i32, i32) {
    %c0_i32 = arith.constant 0 : i32
    %c0_i32_0 = arith.constant 0 : i32
    return %arg0, %c0_i32 : i32, i32
  }
  func.func @transform_1(%arg0: i32) -> (i32, i32) {
    %c0_i32 = arith.constant 0 : i32
    %c0_i32_0 = arith.constant 0 : i32
    %c0_i32_1 = arith.constant 0 : i32
    return %c0_i32, %c0_i32_0 : i32, i32
  }
  func.func @transform_2(%arg0: i32) -> (i32, i32) {
    %c0_i32 = arith.constant 0 : i32
    %c0_i32_0 = arith.constant 0 : i32
    %c0_i32_1 = arith.constant 0 : i32
    return %c0_i32, %c0_i32_0 : i32, i32
  }
  func.func @transform_3(%arg0: i32) -> (i32, i32) {
    %c0_i32 = arith.constant 0 : i32
    %c0_i32_0 = arith.constant 0 : i32
    %c0_i32_1 = arith.constant 0 : i32
    return %c0_i32, %c0_i32_0 : i32, i32
  }
  func.func @transform_4(%arg0: i32) -> (i32, i32) {
    %c0_i32 = arith.constant 0 : i32
    %c0_i32_0 = arith.constant 0 : i32
    %c0_i32_1 = arith.constant 0 : i32
    return %c0_i32, %c0_i32_0 : i32, i32
  }
  func.func @transform_5(%arg0: i32) -> (i32, i32) {
    %c0_i32 = arith.constant 0 : i32
    %c0_i32_0 = arith.constant 0 : i32
    return %arg0, %c0_i32 : i32, i32
  }
}

module attributes {stable_mosaic.version = 11 : i64} {
  func.func @_matmul_act_kernel(%arg0: i32, %arg1: memref<8x1024xbf16, #tpu.memory_space<vmem>>, %arg2: memref<1024x128xbf16, #tpu.memory_space<vmem>>, %arg3: memref<8x128xf32, #tpu.memory_space<vmem>>) attributes {dimension_semantics = [#tpu.dimension_semantics<parallel>], iteration_bounds = array<i64: 1>, scalar_prefetch = 0 : i64, scratch_operands = 0 : i64, tpu.core_type = #tpu.core_type<tc>, window_params = [{transform_indices = @transform_0, window_bounds = array<i64: 8, 1024>}, {pipeline_mode = #tpu.pipeline_mode<synchronous>, transform_indices = @transform_1, window_bounds = array<i64: 1024, 128>}, {transform_indices = @transform_2, window_bounds = array<i64: 8, 128>}]} {
    %c0 = arith.constant 0 : index
    %c0_0 = arith.constant 0 : index
    %0 = vector.load %arg1[%c0, %c0_0] : memref<8x1024xbf16, #tpu.memory_space<vmem>>, vector<8x1024xbf16>
    %c0_1 = arith.constant 0 : index
    %c0_2 = arith.constant 0 : index
    %1 = vector.load %arg2[%c0_1, %c0_2] : memref<1024x128xbf16, #tpu.memory_space<vmem>>, vector<1024x128xbf16>
    %cst = arith.constant dense<0.000000e+00> : vector<8x128xf32>
    %2 = tpu.matmul %0, %1, %cst {dimension_numbers = #tpu.dot_dimension_numbers<[1], [0], [0], [1], [0, 0, 1, 1], [], []>} : vector<8x1024xbf16>, vector<1024x128xbf16>, vector<8x128xf32> -> vector<8x128xf32>
    %cst_3 = arith.constant 0.000000e+00 : f32
    %3 = vector.broadcast %cst_3 : f32 to vector<8x128xf32>
    %4 = arith.subf %3, %2 : vector<8x128xf32>
    %5 = math.exp %4 : vector<8x128xf32>
    %cst_4 = arith.constant 1.000000e+00 : f32
    %6 = vector.broadcast %cst_4 : f32 to vector<8x128xf32>
    %7 = arith.addf %6, %5 : vector<8x128xf32>
    %8 = tpu.reciprocal %7 {approx = true} : vector<8x128xf32> -> vector<8x128xf32>
    %cst_5 = arith.constant 0.000000e+00 : f32
    %cst_6 = arith.constant 1.000000e+00 : f32
    %9 = vector.broadcast %cst_5 : f32 to vector<8x128xf32>
    %10 = arith.maximumf %9, %8 : vector<8x128xf32>
    %11 = vector.broadcast %cst_6 : f32 to vector<8x128xf32>
    %12 = arith.minimumf %11, %10 : vector<8x128xf32>
    %c0_7 = arith.constant 0 : index
    %c0_8 = arith.constant 0 : index
    %13 = vector.load %arg3[%c0_7, %c0_8] : memref<8x128xf32, #tpu.memory_space<vmem>>, vector<8x128xf32>
    tpu.vector_store %arg3[%c0_7, %c0_8], %12 {strides = array<i32>} : memref<8x128xf32, #tpu.memory_space<vmem>>, vector<8x128xf32>,
    return
  }
  func.func @transform_0(%arg0: i32) -> (i32, i32) {
    %c0_i32 = arith.constant 0 : i32
    %c0_i32_0 = arith.constant 0 : i32
    return %arg0, %c0_i32 : i32, i32
  }
  func.func @transform_1(%arg0: i32) -> (i32, i32) {
    %c0_i32 = arith.constant 0 : i32
    %c0_i32_0 = arith.constant 0 : i32
    %c0_i32_1 = arith.constant 0 : i32
    return %c0_i32, %c0_i32_0 : i32, i32
  }
  func.func @transform_2(%arg0: i32) -> (i32, i32) {
    %c0_i32 = arith.constant 0 : i32
    %c0_i32_0 = arith.constant 0 : i32
    return %arg0, %c0_i32 : i32, i32
  }
}

</mosaic_0001>

<bundles_post_ra>
// kernel: discriminator_forward.8
= control target key start
LH: loop header
LB: loop body
LE: loop exit
PB: predicated region body
PF: predicated region fallthrough
CT: control target
= control target key end

     0   :  { %s1924_s9 = smov 0   ;;  %s2064_s0 = inlined_call_operand.vmem [shape: bf16[2048,48], index: 0, kind: input, shape index: {}]   ;;  %s2065_s1 = inlined_call_operand.vmem [shape: bf16[48,128], index: 1, kind: input, shape index: {}]   ;;  %s2066_s2 = inlined_call_operand.vmem [shape: bf16[2048,128], index: 2, kind: output, shape index: {}]  }
   0x1 LB: > { %s1350_s10 = sadd.s32 4294967295, %s1907_s9   ;;  %p1354_p0 = scmp.ge.s32.totalorder %s1907_s9, 1  ;;  %s1907_s9 = sphi %s1924_s9, %s12_s9  }
   0x2   : > { %p113_p1 = scmp.lt.s32.totalorder %s1907_s9, 5 }
   0x4   : > { %p114_p2 = pnand %p1354_p0, %p113_p1 }
   0x5   : > { %v1866_v0 = vld [vmem:[%s2065_s1] sm:$0xff] (!%p114_p2)   ;;  %s1355_s13 = sshll.u32 (!%p114_p2), %s1350_s10, 6  ;;  %v1867_v1 = vld [vmem:[%s2065_s1 + $0x8] sm:$0xff] (!%p114_p2)   ;;  %v1868_v2 = vld [vmem:[%s2065_s1 + $0x10] sm:$0xff] (!%p114_p2)   ;;  %vm396_vm0 = vcmask (!%p114_p2), 392192  }
   0x6   : > { %117 = sbr.rel (%p114_p2) target bundleno = 297 (0x129), region = 28  ;;  %p136_p3 = scmp.lt.s32.totalorder (!%p114_p2), %s1355_s13, 255  ;;  %1782 = vmatprep.subr.bf16.mxu0 (!%p114_p2), %v1866_v0  ;;  %1852 = vmatprep.subr.bf16.mxu1 (!%p114_p2), %v1866_v0 }
   0x7   : > { %1783 = vmatpush3.bf16.msra.mxu0 (!%p114_p2), %v1866_v0  ;;  %1855 = vmatpush3.bf16.msra.mxu1 (!%p114_p2), %v1866_v0 }
   0x8   : > { %1784 = vmatprep.subr.bf16.mxu0 (!%p114_p2), %v1867_v1  ;;  %1853 = vmatprep.subr.bf16.mxu1 (!%p114_p2), %v1867_v1 }
   0xb   : > { %1785 = vmatpush3.bf16.msra.mxu0 (!%p114_p2), %v1867_v1  ;;  %1856 = vmatpush3.bf16.msra.mxu1 (!%p114_p2), %v1867_v1 }
   0xc   : > { %1786 = vmatprep.subr.bf16.mxu0 (!%p114_p2), %v1868_v2  ;;  %1854 = vmatprep.subr.bf16.mxu1 (!%p114_p2), %v1868_v2 }
   0xd   : > { %s2068_s13 = smov (!%p136_p3, %s1355_s13), 255 }
   0xe   : > { %s1356_s18 = sshll.u32 %s2068_s13, 2 }
   0xf   : > { %s1949_s21 = scalar_lea.vmem %s2064_s0, %s1356_s18  ;;  %1787 = vmatpush3.bf16.msra.mxu0 %v1868_v2  ;;  %1857 = vmatpush3.bf16.msra.mxu1 %v1868_v2  ;;  %s2020_s24 = scalar_lea.vmem %s2066_s2, %s1356_s18 }
  0x10   : > { %v1869_v3 = vld [vmem:[%s1949_s21] sm:$0xff]   ;;  %v1871_v5 = vld [vmem:[%s1949_s21 + $0x8] sm:$0xff]   ;;  %v1873_v7 = vld [vmem:[%s1949_s21 + $0x10] sm:$0xff]  }
  0x11   : > { %v1870_v4 = vld [vmem:[%s1949_s21 + $0x80] sm:$0xff]   ;;  %1788 = vmatprep.mubr.msk.bf16.mxu0 %vm396_vm0, %v1869_v3  ;;  %v1872_v6 = vld [vmem:[%s1949_s21 + $0x88] sm:$0xff]   ;;  %v1874_v8 = vld [vmem:[%s1949_s21 + $0x90] sm:$0xff]  }
  0x12   : > { %1820 = vmatprep.mubr.msk.bf16.mxu1 %vm396_vm0, %v1870_v4  ;;  %1789 = vmatmul.mubr.msk.bf16.vlgmr.msra.gmra.mrb[0].mxu0 %vm396_vm0, %v1871_v5  ;;  %v1875_v9 = vld [vmem:[%s1949_s21 + $0x18] sm:$0xff]   ;;  %v1877_v11 = vld [vmem:[%s1949_s21 + $0x20] sm:$0xff]   ;;  %v1879_v13 = vld [vmem:[%s1949_s21 + $0x28] sm:$0xff]  }
  0x13   : > { %1821 = vmatmul.mubr.msk.bf16.vlgmr.msra.gmra.mrb[0].mxu1 %vm396_vm0, %v1872_v6  ;;  %1792 = vmatprep.mubr.msk.bf16.mxu0 %vm396_vm0, %v1873_v7  ;;  %v1876_v10 = vld [vmem:[%s1949_s21 + $0x98] sm:$0xff]   ;;  %v1878_v12 = vld [vmem:[%s1949_s21 + $0xa0] sm:$0xff]   ;;  %v1880_v14 = vld [vmem:[%s1949_s21 + $0xa8] sm:$0xff]  }
  0x14   : > { %1824 = vmatprep.mubr.msk.bf16.mxu1 %vm396_vm0, %v1874_v8  ;;  %v1881_v15 = vld [vmem:[%s1949_s21 + $0x30] sm:$0xff]   ;;  %v1883_v17 = vld [vmem:[%s1949_s21 + $0x38] sm:$0xff]   ;;  %v1885_v19 = vld [vmem:[%s1949_s21 + $0x40] sm:$0xff]  }
  0x15   : > { %v1882_v16 = vld [vmem:[%s1949_s21 + $0xb0] sm:$0xff]   ;;  %v1884_v18 = vld [vmem:[%s1949_s21 + $0xb8] sm:$0xff]   ;;  %v1886_v20 = vld [vmem:[%s1949_s21 + $0xc0] sm:$0xff]  }
  0x16   : > { %v1887_v21 = vld [vmem:[%s1949_s21 + $0x48] sm:$0xff]   ;;  %v1889_v23 = vld [vmem:[%s1949_s21 + $0x50] sm:$0xff]   ;;  %v1891_v25 = vld [vmem:[%s1949_s21 + $0x58] sm:$0xff]  }
  0x17   : > { %v1888_v22 = vld [vmem:[%s1949_s21 + $0xc8] sm:$0xff]   ;;  %v1890_v24 = vld [vmem:[%s1949_s21 + $0xd0] sm:$0xff]   ;;  %v1892_v26 = vld [vmem:[%s1949_s21 + $0xd8] sm:$0xff]  }
  0x18   : > { %v1893_v27 = vld [vmem:[%s1949_s21 + $0x60] sm:$0xff]   ;;  %v1895_v29 = vld [vmem:[%s1949_s21 + $0x68] sm:$0xff]   ;;  %v1897_v31 = vld [vmem:[%s1949_s21 + $0x70] sm:$0xff]  }
  0x19   : > { %v1894_v28 = vld [vmem:[%s1949_s21 + $0xe0] sm:$0xff]   ;;  %v1896_v30 = vld [vmem:[%s1949_s21 + $0xe8] sm:$0xff]   ;;  %v1898_v32 = vld [vmem:[%s1949_s21 + $0xf0] sm:$0xff]  }
  0x1a   : > { %1793 = vmatmul.mubr.msk.bf16.gmra.mrb[4].mxu0 %vm396_vm0, %v1875_v9  ;;  %v1899_v33 = vld [vmem:[%s1949_s21 + $0x78] sm:$0xff]  }
  0x1b   : > { %1825 = vmatmul.mubr.msk.bf16.gmra.mrb[4].mxu1 %vm396_vm0, %v1876_v10  ;;  %1796 = vmatprep.mubr.msk.bf16.mxu0 %vm396_vm0, %v1877_v11  ;;  %v1900_v34 = vld [vmem:[%s1949_s21 + $0xf8] sm:$0xff]  }
  0x1c   : > { %1828 = vmatprep.mubr.msk.bf16.mxu1 %vm396_vm0, %v1878_v12 }
  0x22   : > { %1797 = vmatmul.mubr.msk.bf16.gmra.mrb[8].mxu0 %vm396_vm0, %v1879_v13 }
  0x23   : > { %1829 = vmatmul.mubr.msk.bf16.gmra.mrb[8].mxu1 %vm396_vm0, %v1880_v14  ;;  %1800 = vmatprep.mubr.msk.bf16.mxu0 %vm396_vm0, %v1881_v15 }
  0x24   : > { %1832 = vmatprep.mubr.msk.bf16.mxu1 %vm396_vm0, %v1882_v16 }
  0x2a   : > { %1801 = vmatmul.mubr.msk.bf16.gmra.mrb[12].mxu0 %vm396_vm0, %v1883_v17 }
  0x2b   : > { %1833 = vmatmul.mubr.msk.bf16.gmra.mrb[12].mxu1 %vm396_vm0, %v1884_v18  ;;  %1804 = vmatprep.mubr.msk.bf16.mxu0 %vm396_vm0, %v1885_v19 }
  0x2c   : > { %1836 = vmatprep.mubr.msk.bf16.mxu1 %vm396_vm0, %v1886_v20 }
  0x32   : > { %1805 = vmatmul.mubr.msk.bf16.gmra.mrb[16].mxu0 %vm396_vm0, %v1887_v21 }
  0x33   : > { %1837 = vmatmul.mubr.msk.bf16.gmra.mrb[16].mxu1 %vm396_vm0, %v1888_v22  ;;  %1808 = vmatprep.mubr.msk.bf16.mxu0 %vm396_vm0, %v1889_v23 }
  0x34   : > { %1840 = vmatprep.mubr.msk.bf16.mxu1 %vm396_vm0, %v1890_v24 }
  0x3a   : > { %1809 = vmatmul.mubr.msk.bf16.gmra.mrb[20].mxu0 %vm396_vm0, %v1891_v25 }
  0x3b   : > { %1841 = vmatmul.mubr.msk.bf16.gmra.mrb[20].mxu1 %vm396_vm0, %v1892_v26  ;;  %1812 = vmatprep.mubr.msk.bf16.mxu0 %vm396_vm0, %v1893_v27 }
  0x3c   : > { %1844 = vmatprep.mubr.msk.bf16.mxu1 %vm396_vm0, %v1894_v28 }
  0x42   : > { %1813 = vmatmul.mubr.msk.bf16.gmra.mrb[24].mxu0 %vm396_vm0, %v1895_v29 }
  0x43   : > { %1845 = vmatmul.mubr.msk.bf16.gmra.mrb[24].mxu1 %vm396_vm0, %v1896_v30  ;;  %1816 = vmatprep.mubr.msk.bf16.mxu0 %vm396_vm0, %v1897_v31 }
  0x44   : > { %1848 = vmatprep.mubr.msk.bf16.mxu1 %vm396_vm0, %v1898_v32 }
  0x4a   : > { %1817 = vmatmul.mubr.msk.bf16.gmra.mrb[28].mxu0 %vm396_vm0, %v1899_v33 }
  0x4b   : > { %1849 = vmatmul.mubr.msk.bf16.gmra.mrb[28].mxu1 %vm396_vm0, %v1900_v34 }
  0xe5   : > { %v1790_v35 = vpop.f32.mrb[0].mxu0 }
  0xe6   : > { %v1822_v36 = vpop.f32.mrb[0].mxu1  ;;  %vm784_vm1 = vcmp.ge.f32.partialorder %v1790_v35, 0.0  ;;  %v848_v37 = vmul.f32 0.2, %v1790_v35  ;;  %v527_v39 = vpop.f32.mrb[1].mxu0 }
  0xe7   : > { %v880_v38 = vmul.f32 0.2, %v1822_v36  ;;  %vm816_vm2 = vcmp.ge.f32.partialorder %v1822_v36, 0.0  ;;  %v655_v40 = vpop.f32.mrb[1].mxu1  ;;  %v846_v41 = vmul.f32 0.2, %v527_v39 }
  0xe8   : > { %v1791_v42 = vpop.f32.mrb[2].mxu0  ;;  %v1823_v43 = vpop.f32.mrb[2].mxu1  ;;  %v912_v44 = vsel %vm784_vm1, %v1790_v35, %v848_v37  ;;  %v878_v45 = vmul.f32 0.2, %v655_v40  ;;  %vm782_vm4 = vcmp.ge.f32.partialorder %v527_v39, 0.0  ;;  %vm814_vm6 = vcmp.ge.f32.partialorder %v655_v40, 0.0 }
  0xe9   : > { %vm785_vm3 = vcmp.ge.f32.partialorder %v1791_v42, 0.0  ;;  %v849_v46 = vmul.f32 0.2, %v1791_v42  ;;  %v944_v47 = vsel %vm816_vm2, %v1822_v36, %v880_v38  ;;  %vm817_vm5 = vcmp.ge.f32.partialorder %v1823_v43, 0.0  ;;  %v530_v49 = vpop.f32.mrb[3].mxu0  ;;  %v658_v50 = vpop.f32.mrb[3].mxu1 }
  0xea   : > { %v881_v48 = vmul.f32 0.2, %v1823_v43  ;;  %vm783_vm7 = vcmp.ge.f32.partialorder %v530_v49, 0.0  ;;  %v847_v52 = vmul.f32 0.2, %v530_v49  ;;  %vm815_vm8 = vcmp.ge.f32.partialorder %v658_v50, 0.0 }
  0xeb   : > { %v913_v51 = vsel %vm785_vm3, %v1791_v42, %v849_v46  ;;  %v879_v55 = vmul.f32 0.2, %v658_v50  ;;  %v910_v56 = vsel %vm782_vm4, %v527_v39, %v846_v41  ;;  %v942_v61 = vsel %vm814_vm6, %v655_v40, %v878_v45 }
  0xec   : > { %v1564_v53 = vpack.c.bf16 %v913_v51, %v912_v44  ;;  %v945_v54 = vsel %vm817_vm5, %v1823_v43, %v881_v48  ;;  %v911_v58 = vsel %vm783_vm7, %v530_v49, %v847_v52 }
  0xed   : > { %v1644_v57 = vpack.c.bf16 %v945_v54, %v944_v47  ;;  %v1794_v59 = vpop.f32.mrb[4].mxu0  ;;  %v1559_v62 = vpack.c.bf16 %v911_v58, %v910_v56  ;;  %v943_v63 = vsel %vm815_vm8, %v658_v50, %v879_v55 }
  0xee   : > { %v1826_v60 = vpop.f32.mrb[4].mxu1  ;;  %1716 = vst [vmem:[%s2020_s24 + $0x8] sm:$0xff] %v1564_v53   ;;  %v852_v0 = vmul.f32 0.2, %v1794_v59  ;;  %v543_v1 = vpop.f32.mrb[5].mxu0  ;;  %v1639_v3 = vpack.c.bf16 %v943_v63, %v942_v61  ;;  %vm788_vm9 = vcmp.ge.f32.partialorder %v1794_v59, 0.0 }
  0xef   : > { %v671_v2 = vpop.f32.mrb[5].mxu1  ;;  %1732 = vst [vmem:[%s2020_s24 + $0x88] sm:$0xff] %v1644_v57   ;;  %v884_v4 = vmul.f32 0.2, %v1826_v60  ;;  %v1795_v5 = vpop.f32.mrb[6].mxu0  ;;  %1560 = vst [vmem:[%s2020_s24] sm:$0xff] %v1559_v62   ;;  %vm820_vm10 = vcmp.ge.f32.partialorder %v1826_v60, 0.0 }
  0xf0   : > { %v1827_v6 = vpop.f32.mrb[6].mxu1  ;;  %v850_v7 = vmul.f32 0.2, %v543_v1  ;;  %v882_v8 = vmul.f32 0.2, %v671_v2  ;;  %v546_v9 = vpop.f32.mrb[7].mxu0  ;;  %v916_v12 = vsel %vm788_vm9, %v1794_v59, %v852_v0 }
  0xf1   : > { %1731 = vst [vmem:[%s2020_s24 + $0x80] sm:$0xff] %v1639_v3   ;;  %vm786_vm11 = vcmp.ge.f32.partialorder %v543_v1, 0.0  ;;  %vm789_vm12 = vcmp.ge.f32.partialorder %v1795_v5, 0.0  ;;  %v853_v10 = vmul.f32 0.2, %v1795_v5  ;;  %vm821_vm13 = vcmp.ge.f32.partialorder %v1827_v6, 0.0 }
  0xf2   : > { %v674_v11 = vpop.f32.mrb[7].mxu1  ;;  %vm818_vm14 = vcmp.ge.f32.partialorder %v671_v2, 0.0  ;;  %v885_v13 = vmul.f32 0.2, %v1827_v6  ;;  %vm787_vm15 = vcmp.ge.f32.partialorder %v546_v9, 0.0  ;;  %v948_v17 = vsel %vm820_vm10, %v1826_v60, %v884_v4 }
  0xf3   : > { %v917_v14 = vsel %vm789_vm12, %v1795_v5, %v853_v10  ;;  %v851_v15 = vmul.f32 0.2, %v546_v9  ;;  %vm819_vm0 = vcmp.ge.f32.partialorder %v674_v11, 0.0  ;;  %v883_v16 = vmul.f32 0.2, %v674_v11 }
  0xf4   : > { %v914_v18 = vsel %vm786_vm11, %v543_v1, %v850_v7  ;;  %v1574_v19 = vpack.c.bf16 %v917_v14, %v916_v12  ;;  %v949_v20 = vsel %vm821_vm13, %v1827_v6, %v885_v13  ;;  %v946_v21 = vsel %vm818_vm14, %v671_v2, %v882_v8 }
  0xf5   : > { %v1654_v22 = vpack.c.bf16 %v949_v20, %v948_v17  ;;  %v915_v23 = vsel %vm787_vm15, %v546_v9, %v851_v15  ;;  %v947_v24 = vsel %vm819_vm0, %v674_v11, %v883_v16  ;;  %v1798_v25 = vpop.f32.mrb[8].mxu0 }
  0xf6   : > { %v1830_v26 = vpop.f32.mrb[8].mxu1  ;;  %1718 = vst [vmem:[%s2020_s24 + $0x18] sm:$0xff] %v1574_v19   ;;  %v1569_v27 = vpack.c.bf16 %v915_v23, %v914_v18  ;;  %v1649_v28 = vpack.c.bf16 %v947_v24, %v946_v21  ;;  %vm792_vm1 = vcmp.ge.f32.partialorder %v1798_v25, 0.0  ;;  %v856_v29 = vmul.f32 0.2, %v1798_v25  ;;  %v559_v30 = vpop.f32.mrb[9].mxu0 }
  0xf7   : > { %v687_v31 = vpop.f32.mrb[9].mxu1  ;;  %1734 = vst [vmem:[%s2020_s24 + $0x98] sm:$0xff] %v1654_v22   ;;  %vm824_vm2 = vcmp.ge.f32.partialorder %v1830_v26, 0.0  ;;  %v888_v32 = vmul.f32 0.2, %v1830_v26  ;;  %v1799_v35 = vpop.f32.mrb[10].mxu0 }
  0xf8   : > { %1717 = vst [vmem:[%s2020_s24 + $0x10] sm:$0xff] %v1569_v27   ;;  %1733 = vst [vmem:[%s2020_s24 + $0x90] sm:$0xff] %v1649_v28   ;;  %v854_v33 = vmul.f32 0.2, %v559_v30  ;;  %v886_v34 = vmul.f32 0.2, %v687_v31  ;;  %v920_v37 = vsel %vm792_vm1, %v1798_v25, %v856_v29 }
  0xf9   : > { %v1831_v36 = vpop.f32.mrb[10].mxu1  ;;  %vm790_vm3 = vcmp.ge.f32.partialorder %v559_v30, 0.0  ;;  %vm793_vm4 = vcmp.ge.f32.partialorder %v1799_v35, 0.0  ;;  %v857_v38 = vmul.f32 0.2, %v1799_v35  ;;  %v562_v39 = vpop.f32.mrb[11].mxu0  ;;  %v952_v45 = vsel %vm824_vm2, %v1830_v26, %v888_v32 }
  0xfa   : > { %v690_v40 = vpop.f32.mrb[11].mxu1  ;;  %vm822_vm5 = vcmp.ge.f32.partialorder %v687_v31, 0.0  ;;  %vm825_vm6 = vcmp.ge.f32.partialorder %v1831_v36, 0.0  ;;  %v889_v41 = vmul.f32 0.2, %v1831_v36  ;;  %vm791_vm7 = vcmp.ge.f32.partialorder %v562_v39, 0.0 }
  0xfb   : > { %v921_v42 = vsel %vm793_vm4, %v1799_v35, %v857_v38  ;;  %v855_v43 = vmul.f32 0.2, %v562_v39  ;;  %vm823_vm8 = vcmp.ge.f32.partialorder %v690_v40, 0.0  ;;  %v887_v44 = vmul.f32 0.2, %v690_v40 }
  0xfc   : > { %v918_v46 = vsel %vm790_vm3, %v559_v30, %v854_v33  ;;  %v1584_v47 = vpack.c.bf16 %v921_v42, %v920_v37  ;;  %v953_v48 = vsel %vm825_vm6, %v1831_v36, %v889_v41  ;;  %v950_v49 = vsel %vm822_vm5, %v687_v31, %v886_v34 }
  0xfd   : > { %v1664_v50 = vpack.c.bf16 %v953_v48, %v952_v45  ;;  %v919_v51 = vsel %vm791_vm7, %v562_v39, %v855_v43  ;;  %v951_v52 = vsel %vm823_vm8, %v690_v40, %v887_v44  ;;  %v1802_v53 = vpop.f32.mrb[12].mxu0 }
  0xfe   : > { %v1834_v54 = vpop.f32.mrb[12].mxu1  ;;  %1720 = vst [vmem:[%s2020_s24 + $0x28] sm:$0xff] %v1584_v47   ;;  %v1579_v55 = vpack.c.bf16 %v919_v51, %v918_v46  ;;  %v1659_v56 = vpack.c.bf16 %v951_v52, %v950_v49  ;;  %vm796_vm9 = vcmp.ge.f32.partialorder %v1802_v53, 0.0  ;;  %v860_v57 = vmul.f32 0.2, %v1802_v53  ;;  %v575_v58 = vpop.f32.mrb[13].mxu0 }
  0xff   : > { %v703_v59 = vpop.f32.mrb[13].mxu1  ;;  %1736 = vst [vmem:[%s2020_s24 + $0xa8] sm:$0xff] %v1664_v50   ;;  %vm828_vm10 = vcmp.ge.f32.partialorder %v1834_v54, 0.0  ;;  %v892_v60 = vmul.f32 0.2, %v1834_v54  ;;  %v1803_v63 = vpop.f32.mrb[14].mxu0 }
 0x100   : > { %1719 = vst [vmem:[%s2020_s24 + $0x20] sm:$0xff] %v1579_v55   ;;  %1735 = vst [vmem:[%s2020_s24 + $0xa0] sm:$0xff] %v1659_v56   ;;  %v858_v61 = vmul.f32 0.2, %v575_v58  ;;  %v890_v62 = vmul.f32 0.2, %v703_v59  ;;  %v924_v1 = vsel %vm796_vm9, %v1802_v53, %v860_v57 }
 0x101   : > { %v1835_v0 = vpop.f32.mrb[14].mxu1  ;;  %vm794_vm11 = vcmp.ge.f32.partialorder %v575_v58, 0.0  ;;  %vm797_vm12 = vcmp.ge.f32.partialorder %v1803_v63, 0.0  ;;  %v861_v2 = vmul.f32 0.2, %v1803_v63  ;;  %v578_v3 = vpop.f32.mrb[15].mxu0  ;;  %v956_v9 = vsel %vm828_vm10, %v1834_v54, %v892_v60 }
 0x102   : > { %v706_v4 = vpop.f32.mrb[15].mxu1  ;;  %vm826_vm13 = vcmp.ge.f32.partialorder %v703_v59, 0.0  ;;  %vm829_vm14 = vcmp.ge.f32.partialorder %v1835_v0, 0.0  ;;  %v893_v5 = vmul.f32 0.2, %v1835_v0  ;;  %vm795_vm15 = vcmp.ge.f32.partialorder %v578_v3, 0.0 }
 0x103   : > { %v925_v6 = vsel %vm797_vm12, %v1803_v63, %v861_v2  ;;  %v859_v7 = vmul.f32 0.2, %v578_v3  ;;  %vm827_vm0 = vcmp.ge.f32.partialorder %v706_v4, 0.0  ;;  %v891_v8 = vmul.f32 0.2, %v706_v4 }
 0x104   : > { %v922_v10 = vsel %vm794_vm11, %v575_v58, %v858_v61  ;;  %v1594_v11 = vpack.c.bf16 %v925_v6, %v924_v1  ;;  %v957_v12 = vsel %vm829_vm14, %v1835_v0, %v893_v5  ;;  %v954_v13 = vsel %vm826_vm13, %v703_v59, %v890_v62 }
 0x105   : > { %v1674_v14 = vpack.c.bf16 %v957_v12, %v956_v9  ;;  %v923_v15 = vsel %vm795_vm15, %v578_v3, %v859_v7  ;;  %v955_v16 = vsel %vm827_vm0, %v706_v4, %v891_v8  ;;  %v1806_v17 = vpop.f32.mrb[16].mxu0 }
 0x106   : > { %v1838_v18 = vpop.f32.mrb[16].mxu1  ;;  %1722 = vst [vmem:[%s2020_s24 + $0x38] sm:$0xff] %v1594_v11   ;;  %v1589_v19 = vpack.c.bf16 %v923_v15, %v922_v10  ;;  %v1669_v20 = vpack.c.bf16 %v955_v16, %v954_v13  ;;  %vm800_vm1 = vcmp.ge.f32.partialorder %v1806_v17, 0.0  ;;  %v864_v21 = vmul.f32 0.2, %v1806_v17  ;;  %v591_v22 = vpop.f32.mrb[17].mxu0 }
 0x107   : > { %v719_v23 = vpop.f32.mrb[17].mxu1  ;;  %1738 = vst [vmem:[%s2020_s24 + $0xb8] sm:$0xff] %v1674_v14   ;;  %vm832_vm2 = vcmp.ge.f32.partialorder %v1838_v18, 0.0  ;;  %v896_v24 = vmul.f32 0.2, %v1838_v18  ;;  %v1807_v27 = vpop.f32.mrb[18].mxu0 }
 0x108   : > { %1721 = vst [vmem:[%s2020_s24 + $0x30] sm:$0xff] %v1589_v19   ;;  %1737 = vst [vmem:[%s2020_s24 + $0xb0] sm:$0xff] %v1669_v20   ;;  %v862_v25 = vmul.f32 0.2, %v591_v22  ;;  %v894_v26 = vmul.f32 0.2, %v719_v23  ;;  %v928_v29 = vsel %vm800_vm1, %v1806_v17, %v864_v21 }
 0x109   : > { %v1839_v28 = vpop.f32.mrb[18].mxu1  ;;  %vm798_vm3 = vcmp.ge.f32.partialorder %v591_v22, 0.0  ;;  %vm801_vm4 = vcmp.ge.f32.partialorder %v1807_v27, 0.0  ;;  %v865_v30 = vmul.f32 0.2, %v1807_v27  ;;  %v594_v31 = vpop.f32.mrb[19].mxu0  ;;  %v960_v37 = vsel %vm832_vm2, %v1838_v18, %v896_v24 }
 0x10a   : > { %v722_v32 = vpop.f32.mrb[19].mxu1  ;;  %vm830_vm5 = vcmp.ge.f32.partialorder %v719_v23, 0.0  ;;  %vm833_vm6 = vcmp.ge.f32.partialorder %v1839_v28, 0.0  ;;  %v897_v33 = vmul.f32 0.2, %v1839_v28  ;;  %vm799_vm7 = vcmp.ge.f32.partialorder %v594_v31, 0.0 }
 0x10b   : > { %v929_v34 = vsel %vm801_vm4, %v1807_v27, %v865_v30  ;;  %v863_v35 = vmul.f32 0.2, %v594_v31  ;;  %vm831_vm8 = vcmp.ge.f32.partialorder %v722_v32, 0.0  ;;  %v895_v36 = vmul.f32 0.2, %v722_v32 }
 0x10c   : > { %v926_v38 = vsel %vm798_vm3, %v591_v22, %v862_v25  ;;  %v1604_v39 = vpack.c.bf16 %v929_v34, %v928_v29  ;;  %v961_v40 = vsel %vm833_vm6, %v1839_v28, %v897_v33  ;;  %v958_v41 = vsel %vm830_vm5, %v719_v23, %v894_v26 }
 0x10d   : > { %v1684_v42 = vpack.c.bf16 %v961_v40, %v960_v37  ;;  %v927_v43 = vsel %vm799_vm7, %v594_v31, %v863_v35  ;;  %v959_v44 = vsel %vm831_vm8, %v722_v32, %v895_v36  ;;  %v1810_v45 = vpop.f32.mrb[20].mxu0 }
 0x10e   : > { %v1842_v46 = vpop.f32.mrb[20].mxu1  ;;  %1724 = vst [vmem:[%s2020_s24 + $0x48] sm:$0xff] %v1604_v39   ;;  %v1599_v47 = vpack.c.bf16 %v927_v43, %v926_v38  ;;  %v1679_v48 = vpack.c.bf16 %v959_v44, %v958_v41  ;;  %vm804_vm9 = vcmp.ge.f32.partialorder %v1810_v45, 0.0  ;;  %v868_v49 = vmul.f32 0.2, %v1810_v45  ;;  %v607_v50 = vpop.f32.mrb[21].mxu0 }
 0x10f   : > { %v735_v51 = vpop.f32.mrb[21].mxu1  ;;  %1740 = vst [vmem:[%s2020_s24 + $0xc8] sm:$0xff] %v1684_v42   ;;  %vm836_vm10 = vcmp.ge.f32.partialorder %v1842_v46, 0.0  ;;  %v900_v52 = vmul.f32 0.2, %v1842_v46  ;;  %v1811_v55 = vpop.f32.mrb[22].mxu0 }
 0x110   : > { %1723 = vst [vmem:[%s2020_s24 + $0x40] sm:$0xff] %v1599_v47   ;;  %1739 = vst [vmem:[%s2020_s24 + $0xc0] sm:$0xff] %v1679_v48   ;;  %v866_v53 = vmul.f32 0.2, %v607_v50  ;;  %v898_v54 = vmul.f32 0.2, %v735_v51  ;;  %v932_v57 = vsel %vm804_vm9, %v1810_v45, %v868_v49 }
 0x111   : > { %v1843_v56 = vpop.f32.mrb[22].mxu1  ;;  %vm802_vm11 = vcmp.ge.f32.partialorder %v607_v50, 0.0  ;;  %vm805_vm12 = vcmp.ge.f32.partialorder %v1811_v55, 0.0  ;;  %v869_v58 = vmul.f32 0.2, %v1811_v55  ;;  %v610_v59 = vpop.f32.mrb[23].mxu0  ;;  %v964_v1 = vsel %vm836_vm10, %v1842_v46, %v900_v52 }
 0x112   : > { %v738_v60 = vpop.f32.mrb[23].mxu1  ;;  %vm834_vm13 = vcmp.ge.f32.partialorder %v735_v51, 0.0  ;;  %vm837_vm14 = vcmp.ge.f32.partialorder %v1843_v56, 0.0  ;;  %v901_v61 = vmul.f32 0.2, %v1843_v56  ;;  %vm803_vm15 = vcmp.ge.f32.partialorder %v610_v59, 0.0 }
 0x113   : > { %v933_v62 = vsel %vm805_vm12, %v1811_v55, %v869_v58  ;;  %v867_v63 = vmul.f32 0.2, %v610_v59  ;;  %vm835_vm0 = vcmp.ge.f32.partialorder %v738_v60, 0.0  ;;  %v899_v0 = vmul.f32 0.2, %v738_v60 }
 0x114   : > { %v930_v2 = vsel %vm802_vm11, %v607_v50, %v866_v53  ;;  %v1614_v3 = vpack.c.bf16 %v933_v62, %v932_v57  ;;  %v965_v4 = vsel %vm837_vm14, %v1843_v56, %v901_v61  ;;  %v962_v5 = vsel %vm834_vm13, %v735_v51, %v898_v54 }
 0x115   : > { %v1694_v6 = vpack.c.bf16 %v965_v4, %v964_v1  ;;  %v931_v7 = vsel %vm803_vm15, %v610_v59, %v867_v63  ;;  %v963_v8 = vsel %vm835_vm0, %v738_v60, %v899_v0  ;;  %v1814_v9 = vpop.f32.mrb[24].mxu0 }
 0x116   : > { %v1846_v10 = vpop.f32.mrb[24].mxu1  ;;  %1726 = vst [vmem:[%s2020_s24 + $0x58] sm:$0xff] %v1614_v3   ;;  %v1609_v11 = vpack.c.bf16 %v931_v7, %v930_v2  ;;  %v1689_v12 = vpack.c.bf16 %v963_v8, %v962_v5  ;;  %vm808_vm1 = vcmp.ge.f32.partialorder %v1814_v9, 0.0  ;;  %v872_v13 = vmul.f32 0.2, %v1814_v9  ;;  %v623_v14 = vpop.f32.mrb[25].mxu0 }
 0x117   : > { %v751_v15 = vpop.f32.mrb[25].mxu1  ;;  %1742 = vst [vmem:[%s2020_s24 + $0xd8] sm:$0xff] %v1694_v6   ;;  %vm840_vm2 = vcmp.ge.f32.partialorder %v1846_v10, 0.0  ;;  %v904_v16 = vmul.f32 0.2, %v1846_v10  ;;  %v1815_v19 = vpop.f32.mrb[26].mxu0 }
 0x118   : > { %1725 = vst [vmem:[%s2020_s24 + $0x50] sm:$0xff] %v1609_v11   ;;  %1741 = vst [vmem:[%s2020_s24 + $0xd0] sm:$0xff] %v1689_v12   ;;  %v870_v17 = vmul.f32 0.2, %v623_v14  ;;  %v902_v18 = vmul.f32 0.2, %v751_v15  ;;  %v936_v21 = vsel %vm808_vm1, %v1814_v9, %v872_v13 }
 0x119   : > { %v1847_v20 = vpop.f32.mrb[26].mxu1  ;;  %vm806_vm3 = vcmp.ge.f32.partialorder %v623_v14, 0.0  ;;  %vm809_vm4 = vcmp.ge.f32.partialorder %v1815_v19, 0.0  ;;  %v873_v22 = vmul.f32 0.2, %v1815_v19  ;;  %v626_v23 = vpop.f32.mrb[27].mxu0  ;;  %v968_v29 = vsel %vm840_vm2, %v1846_v10, %v904_v16 }
 0x11a   : > { %v754_v24 = vpop.f32.mrb[27].mxu1  ;;  %vm838_vm5 = vcmp.ge.f32.partialorder %v751_v15, 0.0  ;;  %vm841_vm6 = vcmp.ge.f32.partialorder %v1847_v20, 0.0  ;;  %v905_v25 = vmul.f32 0.2, %v1847_v20  ;;  %vm807_vm7 = vcmp.ge.f32.partialorder %v626_v23, 0.0 }
 0x11b   : > { %v937_v26 = vsel %vm809_vm4, %v1815_v19, %v873_v22  ;;  %v871_v27 = vmul.f32 0.2, %v626_v23  ;;  %vm839_vm8 = vcmp.ge.f32.partialorder %v754_v24, 0.0  ;;  %v903_v28 = vmul.f32 0.2, %v754_v24 }
 0x11c   : > { %v934_v30 = vsel %vm806_vm3, %v623_v14, %v870_v17  ;;  %v1624_v31 = vpack.c.bf16 %v937_v26, %v936_v21  ;;  %v969_v32 = vsel %vm841_vm6, %v1847_v20, %v905_v25  ;;  %v966_v33 = vsel %vm838_vm5, %v751_v15, %v902_v18 }
 0x11d   : > { %v1704_v34 = vpack.c.bf16 %v969_v32, %v968_v29  ;;  %v935_v35 = vsel %vm807_vm7, %v626_v23, %v871_v27  ;;  %v967_v36 = vsel %vm839_vm8, %v754_v24, %v903_v28  ;;  %v1818_v37 = vpop.f32.mrb[28].mxu0 }
 0x11e   : > { %v1850_v38 = vpop.f32.mrb[28].mxu1  ;;  %1728 = vst [vmem:[%s2020_s24 + $0x68] sm:$0xff] %v1624_v31   ;;  %v1619_v39 = vpack.c.bf16 %v935_v35, %v934_v30  ;;  %v1699_v40 = vpack.c.bf16 %v967_v36, %v966_v33  ;;  %vm812_vm9 = vcmp.ge.f32.partialorder %v1818_v37, 0.0  ;;  %v876_v41 = vmul.f32 0.2, %v1818_v37  ;;  %v639_v42 = vpop.f32.mrb[29].mxu0 }
 0x11f   : > { %v767_v43 = vpop.f32.mrb[29].mxu1  ;;  %1744 = vst [vmem:[%s2020_s24 + $0xe8] sm:$0xff] %v1704_v34   ;;  %vm844_vm10 = vcmp.ge.f32.partialorder %v1850_v38, 0.0  ;;  %v908_v44 = vmul.f32 0.2, %v1850_v38  ;;  %v1819_v47 = vpop.f32.mrb[30].mxu0 }
 0x120   : > { %1727 = vst [vmem:[%s2020_s24 + $0x60] sm:$0xff] %v1619_v39   ;;  %1743 = vst [vmem:[%s2020_s24 + $0xe0] sm:$0xff] %v1699_v40   ;;  %v874_v45 = vmul.f32 0.2, %v639_v42  ;;  %v906_v46 = vmul.f32 0.2, %v767_v43  ;;  %v940_v49 = vsel %vm812_vm9, %v1818_v37, %v876_v41 }
 0x121   : > { %v1851_v48 = vpop.f32.mrb[30].mxu1  ;;  %vm810_vm11 = vcmp.ge.f32.partialorder %v639_v42, 0.0  ;;  %vm813_vm12 = vcmp.ge.f32.partialorder %v1819_v47, 0.0  ;;  %v877_v50 = vmul.f32 0.2, %v1819_v47  ;;  %v642_v51 = vpop.f32.mrb[31].mxu0  ;;  %v972_v57 = vsel %vm844_vm10, %v1850_v38, %v908_v44 }
 0x122   : > { %v770_v52 = vpop.f32.mrb[31].mxu1  ;;  %vm842_vm13 = vcmp.ge.f32.partialorder %v767_v43, 0.0  ;;  %vm845_vm14 = vcmp.ge.f32.partialorder %v1851_v48, 0.0  ;;  %v909_v53 = vmul.f32 0.2, %v1851_v48  ;;  %vm811_vm15 = vcmp.ge.f32.partialorder %v642_v51, 0.0 }
 0x123   : > { %v941_v54 = vsel %vm813_vm12, %v1819_v47, %v877_v50  ;;  %v875_v55 = vmul.f32 0.2, %v642_v51  ;;  %vm843_vm0 = vcmp.ge.f32.partialorder %v770_v52, 0.0  ;;  %v907_v56 = vmul.f32 0.2, %v770_v52 }
 0x124   : > { %v938_v58 = vsel %vm810_vm11, %v639_v42, %v874_v45  ;;  %v1634_v59 = vpack.c.bf16 %v941_v54, %v940_v49  ;;  %v973_v60 = vsel %vm845_vm14, %v1851_v48, %v909_v53  ;;  %v970_v61 = vsel %vm842_vm13, %v767_v43, %v906_v46 }
 0x125   : > { %v1714_v62 = vpack.c.bf16 %v973_v60, %v972_v57  ;;  %v939_v63 = vsel %vm811_vm15, %v642_v51, %v875_v55  ;;  %v971_v0 = vsel %vm843_vm0, %v770_v52, %v907_v56 }
 0x126   : > { %1730 = vst [vmem:[%s2020_s24 + $0x78] sm:$0xff] %v1634_v59   ;;  %v1629_v1 = vpack.c.bf16 %v939_v63, %v938_v58  ;;  %v1709_v2 = vpack.c.bf16 %v971_v0, %v970_v61 }
 0x127   : > { %1746 = vst [vmem:[%s2020_s24 + $0xf8] sm:$0xff] %v1714_v62  }
 0x128   : > { %1729 = vst [vmem:[%s2020_s24 + $0x70] sm:$0xff] %v1629_v1   ;;  %1745 = vst [vmem:[%s2020_s24 + $0xf0] sm:$0xff] %v1709_v2  }
 0x129 PF: > { %s12_s9 = sadd.s32 1, %s1907_s9  }
 0x12a   : > { %p9_p4 = scmp.ge.s32.totalorder %s12_s9, 6  }
 0x12c   :  { %11 = sbr.rel (!%p9_p4) target bundleno = 1 (0x1), region = 58 }

// kernel: discriminator_forward.10
= control target key start
LH: loop header
LB: loop body
LE: loop exit
PB: predicated region body
PF: predicated region fallthrough
CT: control target
= control target key end

     0   :  { %v163_v4 = vlaneseq  ;;  %s1932_s1 = inlined_call_operand.vmem [shape: f32[1,128], index: 1, kind: input, shape index: {}]   ;;  %s1933_s2 = inlined_call_operand.vmem [shape: f32[1,128], index: 2, kind: input, shape index: {}]   ;;  %s1934_s0 = inlined_call_operand.vmem [shape: bf16[512,128], index: 0, kind: input, shape index: {}]   ;;  %s1935_s3 = inlined_call_operand.vmem [shape: f32[1,128], index: 3, kind: input, shape index: {}]   ;;  %s1936_s4 = inlined_call_operand.vmem [shape: f32[1,128], index: 4, kind: input, shape index: {}]   ;;  %s1937_s5 = inlined_call_operand.vmem [shape: bf16[512,128], index: 5, kind: output, shape index: {}]  }
   0x1   :  { %v20_v0 = vld [vmem:[%s1932_s1] sm:$0x1]  ;;  %v1348_v9 = vld [vmem:[%s1934_s0 + $0x8] sm:$0xff]   ;;  %v1353_v11 = vld [vmem:[%s1934_s0 + $0x10] sm:$0xff]  }
   0x2   :  { %v22_v1 = vld [vmem:[%s1933_s2] sm:$0x1]  ;;  %v1334_v2 = vmul.f32 0.001953125, %v20_v0  ;;  %v1343_v8 = vshrl.u32 %v163_v4, 7  ;;  %v1358_v12 = vld [vmem:[%s1934_s0 + $0x18] sm:$0xff]   ;;  %v1370_v16 = vld [vmem:[%s1934_s0 + $0x28] sm:$0xff]   ;;  %v952_v19 = vunpack.c.l.bf16 %v1348_v9  ;;  %v953_v20 = vunpack.c.h.bf16 %v1348_v9 }
   0x3   :  { %v23_v3 = vmul.f32 0.001953125, %v22_v1  ;;  %v1341_v7 = vld [vmem:[%s1934_s0] sm:$0xff]   ;;  %v1378_v21 = vld [vmem:[%s1934_s0 + $0x30] sm:$0xff]   ;;  %v1383_v22 = vld [vmem:[%s1934_s0 + $0x38] sm:$0xff]   ;;  %v956_v23 = vunpack.c.l.bf16 %v1353_v11  ;;  %v957_v24 = vunpack.c.h.bf16 %v1353_v11  ;;  %v960_v25 = vunpack.c.l.bf16 %v1358_v12 }
   0x4   :  { %v24_v5 = vmul.f32 %v1334_v2, %v1334_v2  ;;  %v948_v13 = vunpack.c.l.bf16 %v1341_v7  ;;  %v949_v14 = vunpack.c.h.bf16 %v1341_v7  ;;  %v1365_v15 = vld [vmem:[%s1934_s0 + $0x20] sm:$0xff]   ;;  %v165_v18 = vsub.s32 0, %v1343_v8  ;;  %v1397_v28 = vld [vmem:[%s1934_s0 + $0x48] sm:$0xff]   ;;  %v1405_v32 = vld [vmem:[%s1934_s0 + $0x50] sm:$0xff]  }
   0x5   :  { %v961_v26 = vunpack.c.h.bf16 %v1358_v12  ;;  %v1392_v27 = vld [vmem:[%s1934_s0 + $0x40] sm:$0xff]   ;;  %v964_v29 = vunpack.c.l.bf16 %v1365_v15  ;;  %v965_v30 = vunpack.c.h.bf16 %v1365_v15  ;;  %v968_v31 = vunpack.c.l.bf16 %v1370_v16  ;;  %v1410_v33 = vld [vmem:[%s1934_s0 + $0x58] sm:$0xff]   ;;  %v1424_v39 = vld [vmem:[%s1934_s0 + $0x68] sm:$0xff]  }
   0x6   :  { %v25_v6 = vsub.f32 %v23_v3, %v24_v5  ;;  %v969_v34 = vunpack.c.h.bf16 %v1370_v16  ;;  %v972_v35 = vunpack.c.l.bf16 %v1378_v21  ;;  %v973_v36 = vunpack.c.h.bf16 %v1378_v21  ;;  %v1419_v38 = vld [vmem:[%s1934_s0 + $0x60] sm:$0xff]   ;;  %v1433_v44 = vld [vmem:[%s1934_s0 + $0x70] sm:$0xff]   ;;  %v1438_v45 = vld [vmem:[%s1934_s0 + $0x78] sm:$0xff]  }
   0x7   :  { %v976_v37 = vunpack.c.l.bf16 %v1383_v22  ;;  %v977_v40 = vunpack.c.h.bf16 %v1383_v22  ;;  %v980_v41 = vunpack.c.l.bf16 %v1392_v27  ;;  %v1447_v50 = vld [vmem:[%s1934_s0 + $0x80] sm:$0xff]   ;;  %v1452_v51 = vld [vmem:[%s1934_s0 + $0x88] sm:$0xff]   ;;  %v1461_v56 = vld [vmem:[%s1934_s0 + $0x90] sm:$0xff]  }
   0x8   :  { %v26_v10 = vmax.f32 %v25_v6, 0.0  ;;  %v1466_v57 = vld [vmem:[%s1934_s0 + $0x98] sm:$0xff]   ;;  %v1475_v62 = vld [vmem:[%s1934_s0 + $0xa0] sm:$0xff]   ;;  %v1480_v63 = vld [vmem:[%s1934_s0 + $0xa8] sm:$0xff]  }
   0x9   :  { %v1489_v5 = vld [vmem:[%s1934_s0 + $0xb0] sm:$0xff]   ;;  %v1494_v6 = vld [vmem:[%s1934_s0 + $0xb8] sm:$0xff]   ;;  %v1503_v4 = vld [vmem:[%s1934_s0 + $0xc0] sm:$0xff]  }
   0xa   :  { %v27_v17 = vadd.f32 1e-05, %v26_v10  ;;  %v1508_v0 = vld [vmem:[%s1934_s0 + $0xc8] sm:$0xff]   ;;  %v29_v10 = vld [vmem:[%s1935_s3] sm:$0x1]  ;;  %v1520_v60 = vld [vmem:[%s1934_s0 + $0xd0] sm:$0xff]  }
   0xb   :  { %v1529_v1 = vld [vmem:[%s1934_s0 + $0xd8] sm:$0xff]   ;;  %v1534_v61 = vld [vmem:[%s1934_s0 + $0xe0] sm:$0xff]   ;;  %v1543_v54 = vld [vmem:[%s1934_s0 + $0xe8] sm:$0xff]  }
   0xc   :  { %1296 = vrsqrt.f32 %v27_v17  ;;  %v1551_v59 = vld [vmem:[%s1934_s0 + $0xf0] sm:$0xff]   ;;  %v1556_v55 = vld [vmem:[%s1934_s0 + $0xf8] sm:$0xff]   ;;  %v1061_v52 = vunpack.c.h.bf16 %v1534_v61  ;;  %v1064_v47 = vunpack.c.l.bf16 %v1543_v54 }
   0xd   :  { %v1068_v43 = vunpack.c.l.bf16 %v1551_v59  ;;  %v1072_v49 = vunpack.c.l.bf16 %v1556_v55  ;;  %v1073_v48 = vunpack.c.h.bf16 %v1556_v55 }
  0x16   :  { %v1297_v3 = vpop.eup %1296 }
  0x17   :  { %v30_v53 = vmul.f32 %v1297_v3, %v29_v10  ;;  %v31_v3 = vld [vmem:[%s1936_s4] sm:$0x1] }
  0x19   :  { %v32_v58 = vmul.f32 %v30_v53, %v1334_v2  ;;  %v1568_v17 = vrot.slane %v30_v53, %v165_v18 }
  0x1b   :  { %v33_v42 = vsub.f32 %v31_v3, %v32_v58  ;;  %v168_v2 = vmul.f32 %v948_v13, %v1568_v17  ;;  %v169_v53 = vmul.f32 %v949_v14, %v1568_v17  ;;  %v170_v46 = vmul.f32 %v952_v19, %v1568_v17 }
  0x1c   :  { %v171_v10 = vmul.f32 %v953_v20, %v1568_v17  ;;  %v172_v58 = vmul.f32 %v956_v23, %v1568_v17  ;;  %v173_v13 = vmul.f32 %v957_v24, %v1568_v17  ;;  %v174_v7 = vmul.f32 %v960_v25, %v1568_v17 }
  0x1d   :  { %v1599_v14 = vrot.slane %v33_v42, %v165_v18  ;;  %v175_v9 = vmul.f32 %v961_v26, %v1568_v17  ;;  %v176_v19 = vmul.f32 %v964_v29, %v1568_v17  ;;  %v177_v11 = vmul.f32 %v965_v30, %v1568_v17 }
  0x1e   :  { %v178_v20 = vmul.f32 %v968_v31, %v1568_v17  ;;  %v179_v8 = vmul.f32 %v969_v34, %v1568_v17  ;;  %v180_v12 = vmul.f32 %v972_v35, %v1568_v17  ;;  %v181_v18 = vmul.f32 %v973_v36, %v1568_v17 }
  0x1f   :  { %v238_v23 = vadd.f32 %v1599_v14, %v168_v2  ;;  %v239_v15 = vadd.f32 %v1599_v14, %v169_v53  ;;  %v240_v24 = vadd.f32 %v1599_v14, %v170_v46  ;;  %v241_v25 = vadd.f32 %v1599_v14, %v171_v10 }
  0x20   :  { %v242_v26 = vadd.f32 %v1599_v14, %v172_v58  ;;  %v243_v16 = vadd.f32 %v1599_v14, %v173_v13  ;;  %v244_v29 = vadd.f32 %v1599_v14, %v174_v7  ;;  %v245_v30 = vadd.f32 %v1599_v14, %v175_v9 }
  0x21   :  { %vm302_vm0 = vcmp.ge.f32.partialorder %v238_v23, 0.0  ;;  %vm303_vm1 = vcmp.ge.f32.partialorder %v239_v15, 0.0  ;;  %v366_v21 = vmul.f32 0.2, %v238_v23  ;;  %v367_v31 = vmul.f32 0.2, %v239_v15 }
  0x22   :  { %vm304_vm2 = vcmp.ge.f32.partialorder %v240_v24, 0.0  ;;  %vm305_vm3 = vcmp.ge.f32.partialorder %v241_v25, 0.0  ;;  %v368_v34 = vmul.f32 0.2, %v240_v24  ;;  %v369_v35 = vmul.f32 0.2, %v241_v25 }
  0x23   :  { %v430_v36 = vsel %vm302_vm0, %v238_v23, %v366_v21  ;;  %v431_v42 = vsel %vm303_vm1, %v239_v15, %v367_v31  ;;  %vm306_vm4 = vcmp.ge.f32.partialorder %v242_v26, 0.0  ;;  %vm307_vm5 = vcmp.ge.f32.partialorder %v243_v16, 0.0 }
  0x24   :  { %v1077_v46 = vpack.c.bf16 %v431_v42, %v430_v36  ;;  %v432_v3 = vsel %vm304_vm2, %v240_v24, %v368_v34  ;;  %v433_v10 = vsel %vm305_vm3, %v241_v25, %v369_v35  ;;  %v370_v2 = vmul.f32 0.2, %v242_v26 }
  0x25   :  { %v1082_v53 = vpack.c.bf16 %v433_v10, %v432_v3  ;;  %v371_v58 = vmul.f32 0.2, %v243_v16  ;;  %vm308_vm6 = vcmp.ge.f32.partialorder %v244_v29, 0.0  ;;  %vm309_vm7 = vcmp.ge.f32.partialorder %v245_v30, 0.0 }
  0x26   :  { %1078 = vst [vmem:[%s1937_s5] sm:$0xff] %v1077_v46   ;;  %v434_v13 = vsel %vm306_vm4, %v242_v26, %v370_v2  ;;  %v372_v7 = vmul.f32 0.2, %v244_v29  ;;  %v373_v9 = vmul.f32 0.2, %v245_v30  ;;  %v246_v23 = vadd.f32 %v1599_v14, %v176_v19 }
  0x27   :  { %1265 = vst [vmem:[%s1937_s5 + $0x8] sm:$0xff] %v1082_v53   ;;  %v435_v15 = vsel %vm307_vm5, %v243_v16, %v371_v58  ;;  %v247_v24 = vadd.f32 %v1599_v14, %v177_v11  ;;  %v248_v25 = vadd.f32 %v1599_v14, %v178_v20  ;;  %v249_v21 = vadd.f32 %v1599_v14, %v179_v8 }
  0x28   :  { %v1087_v31 = vpack.c.bf16 %v435_v15, %v434_v13  ;;  %v436_v34 = vsel %vm308_vm6, %v244_v29, %v372_v7  ;;  %v437_v35 = vsel %vm309_vm7, %v245_v30, %v373_v9  ;;  %vm310_vm8 = vcmp.ge.f32.partialorder %v246_v23, 0.0 }
  0x29   :  { %v1092_v26 = vpack.c.bf16 %v437_v35, %v436_v34  ;;  %vm311_vm9 = vcmp.ge.f32.partialorder %v247_v24, 0.0  ;;  %v374_v36 = vmul.f32 0.2, %v246_v23  ;;  %v375_v42 = vmul.f32 0.2, %v247_v24 }
  0x2a   :  { %1266 = vst [vmem:[%s1937_s5 + $0x10] sm:$0xff] %v1087_v31   ;;  %vm312_vm10 = vcmp.ge.f32.partialorder %v248_v25, 0.0  ;;  %vm313_vm11 = vcmp.ge.f32.partialorder %v249_v21, 0.0  ;;  %v376_v19 = vmul.f32 0.2, %v248_v25  ;;  %v250_v16 = vadd.f32 %v1599_v14, %v180_v12 }
  0x2b   :  { %v377_v11 = vmul.f32 0.2, %v249_v21  ;;  %1267 = vst [vmem:[%s1937_s5 + $0x18] sm:$0xff] %v1092_v26   ;;  %v438_v20 = vsel %vm310_vm8, %v246_v23, %v374_v36  ;;  %v439_v8 = vsel %vm311_vm9, %v247_v24, %v375_v42  ;;  %v251_v29 = vadd.f32 %v1599_v14, %v181_v18 }
  0x2c   :  { %v1097_v30 = vpack.c.bf16 %v439_v8, %v438_v20  ;;  %v440_v46 = vsel %vm312_vm10, %v248_v25, %v376_v19  ;;  %v182_v10 = vmul.f32 %v976_v37, %v1568_v17  ;;  %vm314_vm12 = vcmp.ge.f32.partialorder %v250_v16, 0.0 }
  0x2d   :  { %v441_v3 = vsel %vm313_vm11, %v249_v21, %v377_v11  ;;  %vm315_vm13 = vcmp.ge.f32.partialorder %v251_v29, 0.0  ;;  %v378_v53 = vmul.f32 0.2, %v250_v16  ;;  %v379_v58 = vmul.f32 0.2, %v251_v29 }
  0x2e   :  { %v1102_v2 = vpack.c.bf16 %v441_v3, %v440_v46  ;;  %1268 = vst [vmem:[%s1937_s5 + $0x20] sm:$0xff] %v1097_v30   ;;  %v183_v12 = vmul.f32 %v977_v40, %v1568_v17  ;;  %v252_v18 = vadd.f32 %v1599_v14, %v182_v10  ;;  %v184_v13 = vmul.f32 %v980_v41, %v1568_v17 }
  0x2f   :  { %v442_v37 = vsel %vm314_vm12, %v250_v16, %v378_v53  ;;  %v1938_v7 = vunpack.c.h.bf16 %v1392_v27  ;;  %v1939_v23 = vunpack.c.l.bf16 %v1397_v28  ;;  %v1940_v40 = vunpack.c.h.bf16 %v1397_v28 }
  0x30   :  { %1269 = vst [vmem:[%s1937_s5 + $0x28] sm:$0xff] %v1102_v2   ;;  %v443_v24 = vsel %vm315_vm13, %v251_v29, %v379_v58  ;;  %v253_v41 = vadd.f32 %v1599_v14, %v183_v12  ;;  %vm316_vm14 = vcmp.ge.f32.partialorder %v252_v18, 0.0  ;;  %v380_v25 = vmul.f32 0.2, %v252_v18 }
  0x31   :  { %v185_v9 = vmul.f32 %v1938_v7, %v1568_v17  ;;  %v186_v22 = vmul.f32 %v1939_v23, %v1568_v17  ;;  %v187_v15 = vmul.f32 %v1940_v40, %v1568_v17  ;;  %v1107_v21 = vpack.c.bf16 %v443_v24, %v442_v37 }
  0x32   :  { %v254_v31 = vadd.f32 %v1599_v14, %v184_v13  ;;  %vm317_vm15 = vcmp.ge.f32.partialorder %v253_v41, 0.0  ;;  %v381_v35 = vmul.f32 0.2, %v253_v41  ;;  %v444_v26 = vsel %vm316_vm14, %v252_v18, %v380_v25 }
  0x33   :  { %v255_v34 = vadd.f32 %v1599_v14, %v185_v9  ;;  %v256_v27 = vadd.f32 %v1599_v14, %v186_v22  ;;  %v257_v36 = vadd.f32 %v1599_v14, %v187_v15  ;;  %1270 = vst [vmem:[%s1937_s5 + $0x30] sm:$0xff] %v1107_v21   ;;  %v1941_v3 = vunpack.c.l.bf16 %v1405_v32 }
  0x34   :  { %vm318_vm0 = vcmp.ge.f32.partialorder %v254_v31, 0.0  ;;  %v382_v28 = vmul.f32 0.2, %v254_v31  ;;  %v445_v19 = vsel %vm317_vm15, %v253_v41, %v381_v35  ;;  %v1942_v2 = vunpack.c.h.bf16 %v1405_v32 }
  0x35   :  { %vm319_vm1 = vcmp.ge.f32.partialorder %v255_v34, 0.0  ;;  %v383_v42 = vmul.f32 0.2, %v255_v34  ;;  %vm320_vm2 = vcmp.ge.f32.partialorder %v256_v27, 0.0  ;;  %vm321_vm3 = vcmp.ge.f32.partialorder %v257_v36, 0.0 }
  0x36   :  { %v384_v11 = vmul.f32 0.2, %v256_v27  ;;  %v1112_v20 = vpack.c.bf16 %v445_v19, %v444_v26  ;;  %v446_v8 = vsel %vm318_vm0, %v254_v31, %v382_v28  ;;  %v385_v29 = vmul.f32 0.2, %v257_v36 }
  0x37   :  { %v447_v16 = vsel %vm319_vm1, %v255_v34, %v383_v42  ;;  %v188_v10 = vmul.f32 %v1941_v3, %v1568_v17  ;;  %v189_v53 = vmul.f32 %v1942_v2, %v1568_v17  ;;  %v1943_v12 = vunpack.c.l.bf16 %v1410_v33 }
  0x38   :  { %v1117_v30 = vpack.c.bf16 %v447_v16, %v446_v8  ;;  %v448_v46 = vsel %vm320_vm2, %v256_v27, %v384_v11  ;;  %1271 = vst [vmem:[%s1937_s5 + $0x38] sm:$0xff] %v1112_v20   ;;  %v449_v58 = vsel %vm321_vm3, %v257_v36, %v385_v29  ;;  %v1944_v13 = vunpack.c.h.bf16 %v1410_v33 }
  0x39   :  { %v190_v18 = vmul.f32 %v1943_v12, %v1568_v17  ;;  %v1945_v7 = vunpack.c.l.bf16 %v1419_v38  ;;  %v1122_v32 = vpack.c.bf16 %v449_v58, %v448_v46  ;;  %v258_v23 = vadd.f32 %v1599_v14, %v188_v10 }
  0x3a   :  { %v191_v37 = vmul.f32 %v1944_v13, %v1568_v17  ;;  %1272 = vst [vmem:[%s1937_s5 + $0x40] sm:$0xff] %v1117_v30   ;;  %v259_v22 = vadd.f32 %v1599_v14, %v189_v53  ;;  %v1946_v40 = vunpack.c.h.bf16 %v1419_v38  ;;  %v1947_v25 = vunpack.c.l.bf16 %v1424_v39 }
  0x3b   :  { %v192_v9 = vmul.f32 %v1945_v7, %v1568_v17  ;;  %v260_v33 = vadd.f32 %v1599_v14, %v190_v18  ;;  %1273 = vst [vmem:[%s1937_s5 + $0x48] sm:$0xff] %v1122_v32   ;;  %vm322_vm4 = vcmp.ge.f32.partialorder %v258_v23, 0.0  ;;  %v386_v31 = vmul.f32 0.2, %v258_v23 }
  0x3c   :  { %v193_v15 = vmul.f32 %v1946_v40, %v1568_v17  ;;  %v261_v24 = vadd.f32 %v1599_v14, %v191_v37  ;;  %v194_v21 = vmul.f32 %v1947_v25, %v1568_v17  ;;  %vm323_vm5 = vcmp.ge.f32.partialorder %v259_v22, 0.0 }
  0x3d   :  { %v262_v41 = vadd.f32 %v1599_v14, %v192_v9  ;;  %v387_v34 = vmul.f32 0.2, %v259_v22  ;;  %vm324_vm6 = vcmp.ge.f32.partialorder %v260_v33, 0.0  ;;  %v388_v38 = vmul.f32 0.2, %v260_v33 }
  0x3e   :  { %vm325_vm7 = vcmp.ge.f32.partialorder %v261_v24, 0.0  ;;  %v389_v27 = vmul.f32 0.2, %v261_v24  ;;  %v450_v35 = vsel %vm322_vm4, %v258_v23, %v386_v31  ;;  %v263_v36 = vadd.f32 %v1599_v14, %v193_v15 }
  0x3f   :  { %v451_v26 = vsel %vm323_vm5, %v259_v22, %v387_v34  ;;  %vm326_vm8 = vcmp.ge.f32.partialorder %v262_v41, 0.0  ;;  %v452_v42 = vsel %vm324_vm6, %v260_v33, %v388_v38  ;;  %v390_v11 = vmul.f32 0.2, %v262_v41 }
  0x40   :  { %v1127_v28 = vpack.c.bf16 %v451_v26, %v450_v35  ;;  %v453_v19 = vsel %vm325_vm7, %v261_v24, %v389_v27  ;;  %vm327_vm9 = vcmp.ge.f32.partialorder %v263_v36, 0.0  ;;  %v391_v8 = vmul.f32 0.2, %v263_v36 }
  0x41   :  { %v1132_v20 = vpack.c.bf16 %v453_v19, %v452_v42  ;;  %v1948_v16 = vunpack.c.h.bf16 %v1424_v39  ;;  %v454_v30 = vsel %vm326_vm8, %v262_v41, %v390_v11  ;;  %v264_v46 = vadd.f32 %v1599_v14, %v194_v21 }
  0x42   :  { %1274 = vst [vmem:[%s1937_s5 + $0x50] sm:$0xff] %v1127_v28   ;;  %v1949_v3 = vunpack.c.l.bf16 %v1433_v44  ;;  %v1950_v2 = vunpack.c.h.bf16 %v1433_v44  ;;  %v455_v39 = vsel %vm327_vm9, %v263_v36, %v391_v8  ;;  %v1951_v12 = vunpack.c.l.bf16 %v1438_v45 }
  0x43   :  { %v195_v29 = vmul.f32 %v1948_v16, %v1568_v17  ;;  %1275 = vst [vmem:[%s1937_s5 + $0x58] sm:$0xff] %v1132_v20   ;;  %v1952_v13 = vunpack.c.h.bf16 %v1438_v45  ;;  %v1137_v7 = vpack.c.bf16 %v455_v39, %v454_v30  ;;  %vm328_vm10 = vcmp.ge.f32.partialorder %v264_v46, 0.0 }
  0x44   :  { %v196_v10 = vmul.f32 %v1949_v3, %v1568_v17  ;;  %v197_v53 = vmul.f32 %v1950_v2, %v1568_v17  ;;  %v198_v18 = vmul.f32 %v1951_v12, %v1568_v17  ;;  %v392_v9 = vmul.f32 0.2, %v264_v46 }
  0x45   :  { %v265_v58 = vadd.f32 %v1599_v14, %v195_v29  ;;  %v199_v37 = vmul.f32 %v1952_v13, %v1568_v17  ;;  %1276 = vst [vmem:[%s1937_s5 + $0x60] sm:$0xff] %v1137_v7   ;;  %v1953_v38 = vunpack.c.l.bf16 %v1447_v50  ;;  %v1954_v35 = vunpack.c.h.bf16 %v1447_v50 }
  0x46   :  { %v266_v44 = vadd.f32 %v1599_v14, %v196_v10  ;;  %v267_v23 = vadd.f32 %v1599_v14, %v197_v53  ;;  %v268_v22 = vadd.f32 %v1599_v14, %v198_v18  ;;  %v456_v40 = vsel %vm328_vm10, %v264_v46, %v392_v9 }
  0x47   :  { %vm329_vm11 = vcmp.ge.f32.partialorder %v265_v58, 0.0  ;;  %v393_v32 = vmul.f32 0.2, %v265_v58  ;;  %v269_v45 = vadd.f32 %v1599_v14, %v199_v37  ;;  %v200_v27 = vmul.f32 %v1953_v38, %v1568_v17 }
  0x48   :  { %vm330_vm12 = vcmp.ge.f32.partialorder %v266_v44, 0.0  ;;  %v394_v15 = vmul.f32 0.2, %v266_v44  ;;  %vm331_vm13 = vcmp.ge.f32.partialorder %v267_v23, 0.0  ;;  %v395_v24 = vmul.f32 0.2, %v267_v23 }
  0x49   :  { %v457_v33 = vsel %vm329_vm11, %v265_v58, %v393_v32  ;;  %vm332_vm14 = vcmp.ge.f32.partialorder %v268_v22, 0.0  ;;  %vm333_vm15 = vcmp.ge.f32.partialorder %v269_v45, 0.0  ;;  %v396_v21 = vmul.f32 0.2, %v268_v22 }
  0x4a   :  { %v1142_v41 = vpack.c.bf16 %v457_v33, %v456_v40  ;;  %v458_v25 = vsel %vm330_vm12, %v266_v44, %v394_v15  ;;  %v459_v31 = vsel %vm331_vm13, %v267_v23, %v395_v24  ;;  %v397_v34 = vmul.f32 0.2, %v269_v45 }
  0x4b   :  { %v201_v26 = vmul.f32 %v1954_v35, %v1568_v17  ;;  %v1147_v36 = vpack.c.bf16 %v459_v31, %v458_v25  ;;  %v460_v28 = vsel %vm332_vm14, %v268_v22, %v396_v21  ;;  %v1955_v42 = vunpack.c.l.bf16 %v1452_v51 }
  0x4c   :  { %1277 = vst [vmem:[%s1937_s5 + $0x68] sm:$0xff] %v1142_v41   ;;  %v1956_v11 = vunpack.c.h.bf16 %v1452_v51  ;;  %v461_v8 = vsel %vm333_vm15, %v269_v45, %v397_v34  ;;  %v270_v16 = vadd.f32 %v1599_v14, %v200_v27  ;;  %v1957_v29 = vunpack.c.l.bf16 %v1461_v56 }
  0x4d   :  { %v202_v19 = vmul.f32 %v1955_v42, %v1568_v17  ;;  %v271_v50 = vadd.f32 %v1599_v14, %v201_v26  ;;  %1278 = vst [vmem:[%s1937_s5 + $0x70] sm:$0xff] %v1147_v36   ;;  %v1152_v46 = vpack.c.bf16 %v461_v8, %v460_v28  ;;  %v1958_v51 = vunpack.c.h.bf16 %v1461_v56 }
  0x4e   :  { %v203_v20 = vmul.f32 %v1956_v11, %v1568_v17  ;;  %v204_v30 = vmul.f32 %v1957_v29, %v1568_v17  ;;  %vm334_vm0 = vcmp.ge.f32.partialorder %v270_v16, 0.0  ;;  %v398_v53 = vmul.f32 0.2, %v270_v16 }
  0x4f   :  { %v272_v3 = vadd.f32 %v1599_v14, %v202_v19  ;;  %v205_v2 = vmul.f32 %v1958_v51, %v1568_v17  ;;  %vm335_vm1 = vcmp.ge.f32.partialorder %v271_v50, 0.0  ;;  %v399_v39 = vmul.f32 0.2, %v271_v50  ;;  %1279 = vst [vmem:[%s1937_s5 + $0x78] sm:$0xff] %v1152_v46  }
  0x50   :  { %v273_v10 = vadd.f32 %v1599_v14, %v203_v20  ;;  %v462_v18 = vsel %vm334_vm0, %v270_v16, %v398_v53  ;;  %v274_v37 = vadd.f32 %v1599_v14, %v204_v30  ;;  %v1959_v32 = vunpack.c.l.bf16 %v1466_v57 }
  0x51   :  { %vm336_vm2 = vcmp.ge.f32.partialorder %v272_v3, 0.0  ;;  %v400_v58 = vmul.f32 0.2, %v272_v3  ;;  %v463_v13 = vsel %vm335_vm1, %v271_v50, %v399_v39  ;;  %v275_v7 = vadd.f32 %v1599_v14, %v205_v2 }
  0x52   :  { %vm337_vm3 = vcmp.ge.f32.partialorder %v273_v10, 0.0  ;;  %v401_v12 = vmul.f32 0.2, %v273_v10  ;;  %v1157_v56 = vpack.c.bf16 %v463_v13, %v462_v18  ;;  %v206_v23 = vmul.f32 %v1959_v32, %v1568_v17 }
  0x53   :  { %v464_v9 = vsel %vm336_vm2, %v272_v3, %v400_v58  ;;  %vm338_vm4 = vcmp.ge.f32.partialorder %v274_v37, 0.0  ;;  %vm339_vm5 = vcmp.ge.f32.partialorder %v275_v7, 0.0  ;;  %v402_v40 = vmul.f32 0.2, %v274_v37 }
  0x54   :  { %v465_v44 = vsel %vm337_vm3, %v273_v10, %v401_v12  ;;  %1280 = vst [vmem:[%s1937_s5 + $0x80] sm:$0xff] %v1157_v56   ;;  %v403_v15 = vmul.f32 0.2, %v275_v7  ;;  %v1960_v45 = vunpack.c.h.bf16 %v1466_v57  ;;  %v276_v24 = vadd.f32 %v1599_v14, %v206_v23 }
  0x55   :  { %v1162_v22 = vpack.c.bf16 %v465_v44, %v464_v9  ;;  %v1961_v41 = vunpack.c.l.bf16 %v1475_v62  ;;  %v466_v21 = vsel %vm338_vm4, %v274_v37, %v402_v40  ;;  %v1962_v31 = vunpack.c.h.bf16 %v1475_v62 }
  0x56   :  { %v207_v33 = vmul.f32 %v1960_v45, %v1568_v17  ;;  %v1963_v38 = vunpack.c.l.bf16 %v1480_v63  ;;  %v1964_v27 = vunpack.c.h.bf16 %v1480_v63  ;;  %v467_v26 = vsel %vm339_vm5, %v275_v7, %v403_v15 }
  0x57   :  { %v208_v25 = vmul.f32 %v1961_v41, %v1568_v17  ;;  %1281 = vst [vmem:[%s1937_s5 + $0x88] sm:$0xff] %v1162_v22   ;;  %v209_v34 = vmul.f32 %v1962_v31, %v1568_v17  ;;  %vm340_vm6 = vcmp.ge.f32.partialorder %v276_v24, 0.0  ;;  %v404_v28 = vmul.f32 0.2, %v276_v24 }
  0x58   :  { %v210_v57 = vmul.f32 %v1963_v38, %v1568_v17  ;;  %v211_v35 = vmul.f32 %v1964_v27, %v1568_v17  ;;  %v277_v36 = vadd.f32 %v1599_v14, %v207_v33  ;;  %v1167_v42 = vpack.c.bf16 %v467_v26, %v466_v21 }
  0x59   :  { %v278_v19 = vadd.f32 %v1599_v14, %v208_v25  ;;  %v279_v11 = vadd.f32 %v1599_v14, %v209_v34  ;;  %v468_v8 = vsel %vm340_vm6, %v276_v24, %v404_v28  ;;  %v1965_v39 = vunpack.c.l.bf16 %v1489_v5 }
  0x5a   :  { %v280_v62 = vadd.f32 %v1599_v14, %v210_v57  ;;  %vm341_vm7 = vcmp.ge.f32.partialorder %v277_v36, 0.0  ;;  %v405_v20 = vmul.f32 0.2, %v277_v36  ;;  %v281_v16 = vadd.f32 %v1599_v14, %v211_v35  ;;  %1282 = vst [vmem:[%s1937_s5 + $0x90] sm:$0xff] %v1167_v42  }
  0x5b   :  { %vm342_vm8 = vcmp.ge.f32.partialorder %v278_v19, 0.0  ;;  %vm343_vm9 = vcmp.ge.f32.partialorder %v279_v11, 0.0  ;;  %v406_v63 = vmul.f32 0.2, %v278_v19  ;;  %v407_v50 = vmul.f32 0.2, %v279_v11 }
  0x5c   :  { %v469_v29 = vsel %vm341_vm7, %v277_v36, %v405_v20  ;;  %vm344_vm10 = vcmp.ge.f32.partialorder %v280_v62, 0.0  ;;  %vm345_vm11 = vcmp.ge.f32.partialorder %v281_v16, 0.0  ;;  %v408_v30 = vmul.f32 0.2, %v280_v62 }
  0x5d   :  { %v1172_v46 = vpack.c.bf16 %v469_v29, %v468_v8  ;;  %v470_v3 = vsel %vm342_vm8, %v278_v19, %v406_v63  ;;  %v471_v10 = vsel %vm343_vm9, %v279_v11, %v407_v50  ;;  %v409_v51 = vmul.f32 0.2, %v281_v16 }
  0x5e   :  { %v1177_v2 = vpack.c.bf16 %v471_v10, %v470_v3  ;;  %v472_v53 = vsel %vm344_vm10, %v280_v62, %v408_v30  ;;  %v212_v58 = vmul.f32 %v1965_v39, %v1568_v17  ;;  %v1966_v12 = vunpack.c.h.bf16 %v1489_v5 }
  0x5f   :  { %1283 = vst [vmem:[%s1937_s5 + $0x98] sm:$0xff] %v1172_v46   ;;  %v473_v13 = vsel %vm345_vm11, %v281_v16, %v409_v51  ;;  %v1967_v37 = vunpack.c.l.bf16 %v1494_v6  ;;  %v1968_v56 = vunpack.c.h.bf16 %v1494_v6  ;;  %v1969_v44 = vunpack.c.l.bf16 %v1503_v4 }
  0x60   :  { %v213_v18 = vmul.f32 %v1966_v12, %v1568_v17  ;;  %1284 = vst [vmem:[%s1937_s5 + $0xa0] sm:$0xff] %v1177_v2   ;;  %v1182_v5 = vpack.c.bf16 %v473_v13, %v472_v53  ;;  %v282_v23 = vadd.f32 %v1599_v14, %v212_v58  ;;  %v1970_v40 = vunpack.c.h.bf16 %v1503_v4 }
  0x61   :  { %v214_v7 = vmul.f32 %v1967_v37, %v1568_v17  ;;  %v215_v9 = vmul.f32 %v1968_v56, %v1568_v17  ;;  %v216_v32 = vmul.f32 %v1969_v44, %v1568_v17  ;;  %v1971_v24 = vunpack.c.l.bf16 %v1508_v0 }
  0x62   :  { %v283_v22 = vadd.f32 %v1599_v14, %v213_v18  ;;  %v217_v15 = vmul.f32 %v1970_v40, %v1568_v17  ;;  %1285 = vst [vmem:[%s1937_s5 + $0xa8] sm:$0xff] %v1182_v5   ;;  %vm346_vm12 = vcmp.ge.f32.partialorder %v282_v23, 0.0  ;;  %v410_v25 = vmul.f32 0.2, %v282_v23 }
  0x63   :  { %v284_v6 = vadd.f32 %v1599_v14, %v214_v7  ;;  %v285_v45 = vadd.f32 %v1599_v14, %v215_v9  ;;  %v286_v33 = vadd.f32 %v1599_v14, %v216_v32  ;;  %v218_v41 = vmul.f32 %v1971_v24, %v1568_v17 }
  0x64   :  { %vm347_vm13 = vcmp.ge.f32.partialorder %v283_v22, 0.0  ;;  %v411_v21 = vmul.f32 0.2, %v283_v22  ;;  %v474_v34 = vsel %vm346_vm12, %v282_v23, %v410_v25  ;;  %v287_v57 = vadd.f32 %v1599_v14, %v217_v15 }
  0x65   :  { %vm348_vm14 = vcmp.ge.f32.partialorder %v284_v6, 0.0  ;;  %vm349_vm15 = vcmp.ge.f32.partialorder %v285_v45, 0.0  ;;  %v412_v4 = vmul.f32 0.2, %v284_v6  ;;  %v413_v31 = vmul.f32 0.2, %v285_v45 }
  0x66   :  { %v475_v38 = vsel %vm347_vm13, %v283_v22, %v411_v21  ;;  %vm350_vm0 = vcmp.ge.f32.partialorder %v286_v33, 0.0  ;;  %v414_v36 = vmul.f32 0.2, %v286_v33  ;;  %vm351_vm1 = vcmp.ge.f32.partialorder %v287_v57, 0.0 }
  0x67   :  { %v1187_v27 = vpack.c.bf16 %v475_v38, %v474_v34  ;;  %v476_v35 = vsel %vm348_vm14, %v284_v6, %v412_v4  ;;  %v477_v26 = vsel %vm349_vm15, %v285_v45, %v413_v31  ;;  %v415_v42 = vmul.f32 0.2, %v287_v57 }
  0x68   :  { %v1192_v28 = vpack.c.bf16 %v477_v26, %v476_v35  ;;  %v1972_v19 = vunpack.c.h.bf16 %v1508_v0  ;;  %v478_v62 = vsel %vm350_vm0, %v286_v33, %v414_v36  ;;  %v288_v20 = vadd.f32 %v1599_v14, %v218_v41 }
  0x69   :  { %1286 = vst [vmem:[%s1937_s5 + $0xb0] sm:$0xff] %v1187_v27   ;;  %v1973_v8 = vunpack.c.l.bf16 %v1520_v60  ;;  %v1974_v63 = vunpack.c.h.bf16 %v1520_v60  ;;  %v479_v0 = vsel %vm351_vm1, %v287_v57, %v415_v42  ;;  %v1975_v30 = vunpack.c.l.bf16 %v1529_v1 }
  0x6a   :  { %v219_v11 = vmul.f32 %v1972_v19, %v1568_v17  ;;  %1287 = vst [vmem:[%s1937_s5 + $0xb8] sm:$0xff] %v1192_v28   ;;  %v1976_v3 = vunpack.c.h.bf16 %v1529_v1  ;;  %v1197_v51 = vpack.c.bf16 %v479_v0, %v478_v62  ;;  %vm352_vm2 = vcmp.ge.f32.partialorder %v288_v20, 0.0 }
  0x6b   :  { %v220_v16 = vmul.f32 %v1973_v8, %v1568_v17  ;;  %v221_v50 = vmul.f32 %v1974_v63, %v1568_v17  ;;  %v222_v46 = vmul.f32 %v1975_v30, %v1568_v17  ;;  %v416_v2 = vmul.f32 0.2, %v288_v20 }
  0x6c   :  { %v289_v29 = vadd.f32 %v1599_v14, %v219_v11  ;;  %v223_v10 = vmul.f32 %v1976_v3, %v1568_v17  ;;  %1288 = vst [vmem:[%s1937_s5 + $0xc0] sm:$0xff] %v1197_v51   ;;  %v1977_v5 = vunpack.c.l.bf16 %v1534_v61  ;;  %v225_v22 = vmul.f32 %v1061_v52, %v1568_v17 }
  0x6d   :  { %v290_v60 = vadd.f32 %v1599_v14, %v220_v16  ;;  %v291_v39 = vadd.f32 %v1599_v14, %v221_v50  ;;  %v292_v58 = vadd.f32 %v1599_v14, %v222_v46  ;;  %v480_v12 = vsel %vm352_vm2, %v288_v20, %v416_v2 }
  0x6e   :  { %vm353_vm3 = vcmp.ge.f32.partialorder %v289_v29, 0.0  ;;  %v417_v53 = vmul.f32 0.2, %v289_v29  ;;  %v293_v1 = vadd.f32 %v1599_v14, %v223_v10  ;;  %v224_v23 = vmul.f32 %v1977_v5, %v1568_v17 }
  0x6f   :  { %vm354_vm4 = vcmp.ge.f32.partialorder %v290_v60, 0.0  ;;  %v418_v18 = vmul.f32 0.2, %v290_v60  ;;  %vm355_vm5 = vcmp.ge.f32.partialorder %v291_v39, 0.0  ;;  %v419_v37 = vmul.f32 0.2, %v291_v39 }
  0x70   :  { %v481_v13 = vsel %vm353_vm3, %v289_v29, %v417_v53  ;;  %vm356_vm6 = vcmp.ge.f32.partialorder %v292_v58, 0.0  ;;  %vm357_vm7 = vcmp.ge.f32.partialorder %v293_v1, 0.0  ;;  %v420_v9 = vmul.f32 0.2, %v292_v58 }
  0x71   :  { %v1202_v7 = vpack.c.bf16 %v481_v13, %v480_v12  ;;  %v482_v56 = vsel %vm354_vm4, %v290_v60, %v418_v18  ;;  %v483_v44 = vsel %vm355_vm5, %v291_v39, %v419_v37  ;;  %v421_v32 = vmul.f32 0.2, %v293_v1 }
  0x72   :  { %v1207_v40 = vpack.c.bf16 %v483_v44, %v482_v56  ;;  %v484_v15 = vsel %vm356_vm6, %v292_v58, %v420_v9  ;;  %v226_v6 = vmul.f32 %v1064_v47, %v1568_v17  ;;  %v1978_v45 = vunpack.c.h.bf16 %v1543_v54 }
  0x73   :  { %1289 = vst [vmem:[%s1937_s5 + $0xc8] sm:$0xff] %v1202_v7   ;;  %v485_v24 = vsel %vm357_vm7, %v293_v1, %v421_v32  ;;  %v294_v41 = vadd.f32 %v1599_v14, %v224_v23  ;;  %v295_v61 = vadd.f32 %v1599_v14, %v225_v22  ;;  %v228_v52 = vmul.f32 %v1068_v43, %v1568_v17 }
  0x74   :  { %v227_v33 = vmul.f32 %v1978_v45, %v1568_v17  ;;  %1290 = vst [vmem:[%s1937_s5 + $0xd0] sm:$0xff] %v1207_v40   ;;  %v1212_v25 = vpack.c.bf16 %v485_v24, %v484_v15  ;;  %v296_v47 = vadd.f32 %v1599_v14, %v226_v6  ;;  %v1979_v54 = vunpack.c.h.bf16 %v1551_v59 }
  0x75   :  { %vm358_vm8 = vcmp.ge.f32.partialorder %v294_v41, 0.0  ;;  %vm359_vm9 = vcmp.ge.f32.partialorder %v295_v61, 0.0  ;;  %v422_v31 = vmul.f32 0.2, %v294_v41  ;;  %v423_v34 = vmul.f32 0.2, %v295_v61 }
  0x76   :  { %v297_v21 = vadd.f32 %v1599_v14, %v227_v33  ;;  %v229_v4 = vmul.f32 %v1979_v54, %v1568_v17  ;;  %1291 = vst [vmem:[%s1937_s5 + $0xd8] sm:$0xff] %v1212_v25   ;;  %vm360_vm10 = vcmp.ge.f32.partialorder %v296_v47, 0.0  ;;  %v424_v43 = vmul.f32 0.2, %v296_v47 }
  0x77   :  { %v486_v57 = vsel %vm358_vm8, %v294_v41, %v422_v31  ;;  %v487_v27 = vsel %vm359_vm9, %v295_v61, %v423_v34  ;;  %v298_v35 = vadd.f32 %v1599_v14, %v228_v52  ;;  %v230_v42 = vmul.f32 %v1072_v49, %v1568_v17 }
  0x78   :  { %vm361_vm11 = vcmp.ge.f32.partialorder %v297_v21, 0.0  ;;  %v425_v38 = vmul.f32 0.2, %v297_v21  ;;  %v299_v26 = vadd.f32 %v1599_v14, %v229_v4  ;;  %v1217_v59 = vpack.c.bf16 %v487_v27, %v486_v57 }
  0x79   :  { %v488_v36 = vsel %vm360_vm10, %v296_v47, %v424_v43  ;;  %vm362_vm12 = vcmp.ge.f32.partialorder %v298_v35, 0.0  ;;  %v426_v11 = vmul.f32 0.2, %v298_v35  ;;  %v231_v20 = vmul.f32 %v1073_v48, %v1568_v17 }
  0x7a   :  { %v489_v28 = vsel %vm361_vm11, %v297_v21, %v425_v38  ;;  %vm363_vm13 = vcmp.ge.f32.partialorder %v299_v26, 0.0  ;;  %1292 = vst [vmem:[%s1937_s5 + $0xe0] sm:$0xff] %v1217_v59   ;;  %v427_v62 = vmul.f32 0.2, %v299_v26  ;;  %v300_v8 = vadd.f32 %v1599_v14, %v230_v42 }
  0x7b   :  { %v1222_v19 = vpack.c.bf16 %v489_v28, %v488_v36  ;;  %v490_v49 = vsel %vm362_vm12, %v298_v35, %v426_v11  ;;  %v301_v63 = vadd.f32 %v1599_v14, %v231_v20 }
  0x7c   :  { %v491_v16 = vsel %vm363_vm13, %v299_v26, %v427_v62  ;;  %vm364_vm14 = vcmp.ge.f32.partialorder %v300_v8, 0.0  ;;  %v428_v50 = vmul.f32 0.2, %v300_v8 }
  0x7d   :  { %1293 = vst [vmem:[%s1937_s5 + $0xe8] sm:$0xff] %v1222_v19   ;;  %v1227_v0 = vpack.c.bf16 %v491_v16, %v490_v49  ;;  %vm365_vm15 = vcmp.ge.f32.partialorder %v301_v63, 0.0  ;;  %v429_v29 = vmul.f32 0.2, %v301_v63 }
  0x7e   :  { %v492_v30 = vsel %vm364_vm14, %v300_v8, %v428_v50 }
  0x7f   :  { %1294 = vst [vmem:[%s1937_s5 + $0xf0] sm:$0xff] %v1227_v0   ;;  %v493_v48 = vsel %vm365_vm15, %v301_v63, %v429_v29 }
  0x80   :  { %v1232_v55 = vpack.c.bf16 %v493_v48, %v492_v30 }
  0x82   :  { %1295 = vst [vmem:[%s1937_s5 + $0xf8] sm:$0xff] %v1232_v55  }

// kernel: discriminator_forward.9
= control target key start
LH: loop header
LB: loop body
LE: loop exit
PB: predicated region body
PF: predicated region fallthrough
CT: control target
= control target key end

     0   :  { %s2134_s1 = inlined_call_operand.vmem [shape: bf16[128,128], index: 1, kind: input, shape index: {}]   ;;  %s2135_s0 = inlined_call_operand.vmem [shape: bf16[512,128], index: 0, kind: input, shape index: {}]   ;;  %s2136_s2 = inlined_call_operand.vmem [shape: bf16[512,128], index: 2, kind: output, shape index: {0}]   ;;  %s2137_s3 = inlined_call_operand.vmem [shape: f32[1,1,128], index: 3, kind: output, shape index: {1}]   ;;  %s2138_s4 = inlined_call_operand.vmem [shape: f32[1,1,128], index: 4, kind: output, shape index: {2}]  }
   0x1   :  { %v1655_v0 = vld [vmem:[%s2134_s1] sm:$0xff]   ;;  %v1656_v1 = vld [vmem:[%s2134_s1 + $0x8] sm:$0xff]   ;;  %v1657_v2 = vld [vmem:[%s2134_s1 + $0x10] sm:$0xff]  }
   0x2   :  { %1559 = vmatprep.subr.bf16.mxu0 %v1655_v0  ;;  %1639 = vmatprep.subr.bf16.mxu1 %v1655_v0  ;;  %v1658_v3 = vld [vmem:[%s2134_s1 + $0x18] sm:$0xff]   ;;  %v1663_v4 = vld [vmem:[%s2135_s0] sm:$0xff]   ;;  %v1660_v6 = vld [vmem:[%s2134_s1 + $0x28] sm:$0xff]  }
   0x3   :  { %1560 = vmatpush3.bf16.msra.mxu0 %v1655_v0  ;;  %1647 = vmatpush3.bf16.msra.mxu1 %v1655_v0  ;;  %v1659_v5 = vld [vmem:[%s2134_s1 + $0x20] sm:$0xff]   ;;  %v1661_v7 = vld [vmem:[%s2134_s1 + $0x30] sm:$0xff]   ;;  %v1662_v8 = vld [vmem:[%s2134_s1 + $0x38] sm:$0xff]  }
   0x4   :  { %1561 = vmatprep.subr.bf16.mxu0 %v1656_v1  ;;  %1640 = vmatprep.subr.bf16.mxu1 %v1656_v1  ;;  %v1679_v9 = vld [vmem:[%s2135_s0 + $0x80] sm:$0xff]   ;;  %v1664_v10 = vld [vmem:[%s2135_s0 + $0x8] sm:$0xff]   ;;  %v1665_v11 = vld [vmem:[%s2135_s0 + $0x10] sm:$0xff]  }
   0x5   :  { %1575 = vmatprep.mubr.bf16.mxu0 %v1663_v4  ;;  %1607 = vmatprep.mubr.bf16.mxu1 %v1679_v9  ;;  %v1680_v12 = vld [vmem:[%s2135_s0 + $0x88] sm:$0xff]   ;;  %v1681_v13 = vld [vmem:[%s2135_s0 + $0x90] sm:$0xff]   ;;  %v1666_v14 = vld [vmem:[%s2135_s0 + $0x18] sm:$0xff]  }
   0x6   :  { %v1667_v15 = vld [vmem:[%s2135_s0 + $0x20] sm:$0xff]   ;;  %v1682_v16 = vld [vmem:[%s2135_s0 + $0x98] sm:$0xff]   ;;  %v1668_v18 = vld [vmem:[%s2135_s0 + $0x28] sm:$0xff]  }
   0x7   :  { %1562 = vmatpush3.bf16.msra.mxu0 %v1656_v1  ;;  %1648 = vmatpush3.bf16.msra.mxu1 %v1656_v1  ;;  %v1683_v17 = vld [vmem:[%s2135_s0 + $0xa0] sm:$0xff]   ;;  %v1684_v19 = vld [vmem:[%s2135_s0 + $0xa8] sm:$0xff]   ;;  %v1669_v20 = vld [vmem:[%s2135_s0 + $0x30] sm:$0xff]  }
   0x8   :  { %1563 = vmatprep.subr.bf16.mxu0 %v1657_v2  ;;  %1641 = vmatprep.subr.bf16.mxu1 %v1657_v2  ;;  %v1685_v21 = vld [vmem:[%s2135_s0 + $0xb0] sm:$0xff]   ;;  %v1670_v22 = vld [vmem:[%s2135_s0 + $0x38] sm:$0xff]   ;;  %v1671_v24 = vld [vmem:[%s2135_s0 + $0x40] sm:$0xff]  }
   0x9   :  { %v1686_v23 = vld [vmem:[%s2135_s0 + $0xb8] sm:$0xff]   ;;  %v1687_v25 = vld [vmem:[%s2135_s0 + $0xc0] sm:$0xff]   ;;  %v1672_v26 = vld [vmem:[%s2135_s0 + $0x48] sm:$0xff]  }
   0xa   :  { %v1688_v27 = vld [vmem:[%s2135_s0 + $0xc8] sm:$0xff]   ;;  %v1673_v28 = vld [vmem:[%s2135_s0 + $0x50] sm:$0xff]   ;;  %v1674_v30 = vld [vmem:[%s2135_s0 + $0x58] sm:$0xff]  }
   0xb   :  { %1564 = vmatpush3.bf16.msra.mxu0 %v1657_v2  ;;  %1649 = vmatpush3.bf16.msra.mxu1 %v1657_v2  ;;  %v1689_v29 = vld [vmem:[%s2135_s0 + $0xd0] sm:$0xff]   ;;  %v1690_v31 = vld [vmem:[%s2135_s0 + $0xd8] sm:$0xff]   ;;  %v1675_v32 = vld [vmem:[%s2135_s0 + $0x60] sm:$0xff]  }
   0xc   :  { %1565 = vmatprep.subr.bf16.mxu0 %v1658_v3  ;;  %1642 = vmatprep.subr.bf16.mxu1 %v1658_v3  ;;  %v1691_v33 = vld [vmem:[%s2135_s0 + $0xe0] sm:$0xff]   ;;  %v1676_v34 = vld [vmem:[%s2135_s0 + $0x68] sm:$0xff]   ;;  %v1677_v36 = vld [vmem:[%s2135_s0 + $0x70] sm:$0xff]  }
   0xd   :  { %v1692_v35 = vld [vmem:[%s2135_s0 + $0xe8] sm:$0xff]   ;;  %v1693_v37 = vld [vmem:[%s2135_s0 + $0xf0] sm:$0xff]   ;;  %v1678_v38 = vld [vmem:[%s2135_s0 + $0x78] sm:$0xff]  }
   0xe   :  { %v1694_v39 = vld [vmem:[%s2135_s0 + $0xf8] sm:$0xff]  }
   0xf   :  { %1566 = vmatpush3.bf16.msra.mxu0 %v1658_v3  ;;  %1650 = vmatpush3.bf16.msra.mxu1 %v1658_v3 }
  0x10   :  { %1567 = vmatprep.subr.bf16.mxu0 %v1659_v5  ;;  %1643 = vmatprep.subr.bf16.mxu1 %v1659_v5 }
  0x13   :  { %1568 = vmatpush3.bf16.msra.mxu0 %v1659_v5  ;;  %1651 = vmatpush3.bf16.msra.mxu1 %v1659_v5 }
  0x14   :  { %1569 = vmatprep.subr.bf16.mxu0 %v1660_v6  ;;  %1644 = vmatprep.subr.bf16.mxu1 %v1660_v6 }
  0x17   :  { %1570 = vmatpush3.bf16.msra.mxu0 %v1660_v6  ;;  %1652 = vmatpush3.bf16.msra.mxu1 %v1660_v6 }
  0x18   :  { %1571 = vmatprep.subr.bf16.mxu0 %v1661_v7  ;;  %1645 = vmatprep.subr.bf16.mxu1 %v1661_v7 }
  0x1b   :  { %1572 = vmatpush3.bf16.msra.mxu0 %v1661_v7  ;;  %1653 = vmatpush3.bf16.msra.mxu1 %v1661_v7 }
  0x1c   :  { %1573 = vmatprep.subr.bf16.mxu0 %v1662_v8  ;;  %1646 = vmatprep.subr.bf16.mxu1 %v1662_v8 }
  0x1f   :  { %1574 = vmatpush3.bf16.msra.mxu0 %v1662_v8  ;;  %1654 = vmatpush3.bf16.msra.mxu1 %v1662_v8 }
  0x22   :  { %1576 = vmatmul.mubr.bf16.vlgmr.msra.gmra.mrb[0].mxu0 %v1664_v10  ;;  %1608 = vmatmul.mubr.bf16.vlgmr.msra.gmra.mrb[0].mxu1 %v1680_v12 }
  0x23   :  { %1579 = vmatprep.mubr.bf16.mxu0 %v1665_v11  ;;  %1611 = vmatprep.mubr.bf16.mxu1 %v1681_v13 }
  0x2a   :  { %1580 = vmatmul.mubr.bf16.gmra.mrb[4].mxu0 %v1666_v14  ;;  %1612 = vmatmul.mubr.bf16.gmra.mrb[4].mxu1 %v1682_v16 }
  0x2b   :  { %1583 = vmatprep.mubr.bf16.mxu0 %v1667_v15  ;;  %1615 = vmatprep.mubr.bf16.mxu1 %v1683_v17 }
  0x32   :  { %1584 = vmatmul.mubr.bf16.gmra.mrb[8].mxu0 %v1668_v18  ;;  %1616 = vmatmul.mubr.bf16.gmra.mrb[8].mxu1 %v1684_v19 }
  0x33   :  { %1587 = vmatprep.mubr.bf16.mxu0 %v1669_v20  ;;  %1619 = vmatprep.mubr.bf16.mxu1 %v1685_v21 }
  0x3a   :  { %1588 = vmatmul.mubr.bf16.gmra.mrb[12].mxu0 %v1670_v22  ;;  %1620 = vmatmul.mubr.bf16.gmra.mrb[12].mxu1 %v1686_v23 }
  0x3b   :  { %1591 = vmatprep.mubr.bf16.mxu0 %v1671_v24  ;;  %1623 = vmatprep.mubr.bf16.mxu1 %v1687_v25 }
  0x42   :  { %1592 = vmatmul.mubr.bf16.gmra.mrb[16].mxu0 %v1672_v26  ;;  %1624 = vmatmul.mubr.bf16.gmra.mrb[16].mxu1 %v1688_v27 }
  0x43   :  { %1595 = vmatprep.mubr.bf16.mxu0 %v1673_v28  ;;  %1627 = vmatprep.mubr.bf16.mxu1 %v1689_v29 }
  0x4a   :  { %1596 = vmatmul.mubr.bf16.gmra.mrb[20].mxu0 %v1674_v30  ;;  %1628 = vmatmul.mubr.bf16.gmra.mrb[20].mxu1 %v1690_v31 }
  0x4b   :  { %1599 = vmatprep.mubr.bf16.mxu0 %v1675_v32  ;;  %1631 = vmatprep.mubr.bf16.mxu1 %v1691_v33 }
  0x52   :  { %1600 = vmatmul.mubr.bf16.gmra.mrb[24].mxu0 %v1676_v34  ;;  %1632 = vmatmul.mubr.bf16.gmra.mrb[24].mxu1 %v1692_v35 }
  0x53   :  { %1603 = vmatprep.mubr.bf16.mxu0 %v1677_v36  ;;  %1635 = vmatprep.mubr.bf16.mxu1 %v1693_v37 }
  0x5a   :  { %1604 = vmatmul.mubr.bf16.gmra.mrb[28].mxu0 %v1678_v38  ;;  %1636 = vmatmul.mubr.bf16.gmra.mrb[28].mxu1 %v1694_v39 }
  0xf5   :  { %v1577_v40 = vpop.f32.mrb[0].mxu0  ;;  %v1840_v41 = vpop.f32.mrb[0].mxu1 }
  0xf6   :  { %v369_v42 = vpop.f32.mrb[1].mxu0  ;;  %v1842_v43 = vpop.f32.mrb[1].mxu1  ;;  %v1016_v55 = vmul.f32 %v1577_v40, %v1577_v40 }
  0xf7   :  { %v1578_v44 = vpop.f32.mrb[2].mxu0  ;;  %v1844_v45 = vpop.f32.mrb[2].mxu1  ;;  %v1014_v46 = vmul.f32 %v369_v42, %v369_v42 }
  0xf8   :  { %v1336_v47 = vpack.c.bf16 %v1578_v44, %v1577_v40  ;;  %v372_v48 = vpop.f32.mrb[3].mxu0  ;;  %v1416_v49 = vpack.c.bf16 %v1844_v45, %v1840_v41  ;;  %v1848_v50 = vpop.f32.mrb[3].mxu1  ;;  %v1017_v58 = vmul.f32 %v1578_v44, %v1578_v44 }
  0xf9   :  { %v1331_v51 = vpack.c.bf16 %v372_v48, %v369_v42  ;;  %v944_v52 = vadd.f32 %v372_v48, %v369_v42  ;;  %v1015_v53 = vmul.f32 %v372_v48, %v372_v48  ;;  %v1411_v54 = vpack.c.bf16 %v1848_v50, %v1842_v43 }
  0xfa   :  { %1488 = vst [vmem:[%s2136_s2 + $0x8] sm:$0xff] %v1336_v47   ;;  %1504 = vst [vmem:[%s2136_s2 + $0x88] sm:$0xff] %v1416_v49  }
  0xfb   :  { %1332 = vst [vmem:[%s2136_s2] sm:$0xff] %v1331_v51   ;;  %v945_v56 = vadd.f32 %v1577_v40, %v944_v52  ;;  %v1078_v57 = vadd.f32 %v1015_v53, %v1014_v46  ;;  %1503 = vst [vmem:[%s2136_s2 + $0x80] sm:$0xff] %v1411_v54  }
  0xfd   :  { %v1079_v59 = vadd.f32 %v1078_v57, %v1016_v55  ;;  %v1581_v60 = vpop.f32.mrb[4].mxu0  ;;  %v946_v61 = vadd.f32 %v1578_v44, %v945_v56  ;;  %v1864_v62 = vpop.f32.mrb[4].mxu1 }
  0xfe   :  { %v385_v63 = vpop.f32.mrb[5].mxu0  ;;  %v1866_v0 = vpop.f32.mrb[5].mxu1  ;;  %v1020_v15 = vmul.f32 %v1581_v60, %v1581_v60 }
  0xff   :  { %v947_v1 = vadd.f32 %v946_v61, %v385_v63  ;;  %v1018_v2 = vmul.f32 %v385_v63, %v385_v63  ;;  %v1080_v3 = vadd.f32 %v1079_v59, %v1017_v58  ;;  %v1582_v4 = vpop.f32.mrb[6].mxu0  ;;  %v1868_v5 = vpop.f32.mrb[6].mxu1 }
 0x100   :  { %v1346_v6 = vpack.c.bf16 %v1582_v4, %v1581_v60  ;;  %v388_v7 = vpop.f32.mrb[7].mxu0  ;;  %v1426_v8 = vpack.c.bf16 %v1868_v5, %v1864_v62  ;;  %v1872_v9 = vpop.f32.mrb[7].mxu1  ;;  %v1021_v18 = vmul.f32 %v1582_v4, %v1582_v4 }
 0x101   :  { %v1081_v10 = vadd.f32 %v1080_v3, %v1018_v2  ;;  %v1341_v11 = vpack.c.bf16 %v388_v7, %v385_v63  ;;  %v948_v12 = vadd.f32 %v947_v1, %v388_v7  ;;  %v1019_v13 = vmul.f32 %v388_v7, %v388_v7 }
 0x102   :  { %1490 = vst [vmem:[%s2136_s2 + $0x18] sm:$0xff] %v1346_v6   ;;  %1506 = vst [vmem:[%s2136_s2 + $0x98] sm:$0xff] %v1426_v8   ;;  %v1421_v14 = vpack.c.bf16 %v1872_v9, %v1866_v0 }
 0x103   :  { %1489 = vst [vmem:[%s2136_s2 + $0x10] sm:$0xff] %v1341_v11   ;;  %v949_v16 = vadd.f32 %v1581_v60, %v948_v12  ;;  %v1082_v17 = vadd.f32 %v1081_v10, %v1019_v13 }
 0x104   :  { %1505 = vst [vmem:[%s2136_s2 + $0x90] sm:$0xff] %v1421_v14  }
 0x105   :  { %v1083_v19 = vadd.f32 %v1082_v17, %v1020_v15  ;;  %v1585_v20 = vpop.f32.mrb[8].mxu0  ;;  %v950_v21 = vadd.f32 %v1582_v4, %v949_v16  ;;  %v1888_v22 = vpop.f32.mrb[8].mxu1 }
 0x106   :  { %v401_v23 = vpop.f32.mrb[9].mxu0  ;;  %v1890_v24 = vpop.f32.mrb[9].mxu1  ;;  %v1024_v39 = vmul.f32 %v1585_v20, %v1585_v20 }
 0x107   :  { %v951_v25 = vadd.f32 %v950_v21, %v401_v23  ;;  %v1022_v26 = vmul.f32 %v401_v23, %v401_v23  ;;  %v1084_v27 = vadd.f32 %v1083_v19, %v1021_v18  ;;  %v1586_v28 = vpop.f32.mrb[10].mxu0  ;;  %v1892_v29 = vpop.f32.mrb[10].mxu1 }
 0x108   :  { %v1356_v30 = vpack.c.bf16 %v1586_v28, %v1585_v20  ;;  %v404_v31 = vpop.f32.mrb[11].mxu0  ;;  %v1436_v32 = vpack.c.bf16 %v1892_v29, %v1888_v22  ;;  %v1896_v33 = vpop.f32.mrb[11].mxu1  ;;  %v1025_v44 = vmul.f32 %v1586_v28, %v1586_v28 }
 0x109   :  { %v1085_v34 = vadd.f32 %v1084_v27, %v1022_v26  ;;  %v1351_v35 = vpack.c.bf16 %v404_v31, %v401_v23  ;;  %v952_v36 = vadd.f32 %v951_v25, %v404_v31  ;;  %v1023_v37 = vmul.f32 %v404_v31, %v404_v31 }
 0x10a   :  { %1492 = vst [vmem:[%s2136_s2 + $0x28] sm:$0xff] %v1356_v30   ;;  %1508 = vst [vmem:[%s2136_s2 + $0xa8] sm:$0xff] %v1436_v32   ;;  %v1431_v38 = vpack.c.bf16 %v1896_v33, %v1890_v24 }
 0x10b   :  { %1491 = vst [vmem:[%s2136_s2 + $0x20] sm:$0xff] %v1351_v35   ;;  %v953_v40 = vadd.f32 %v1585_v20, %v952_v36  ;;  %v1086_v42 = vadd.f32 %v1085_v34, %v1023_v37 }
 0x10c   :  { %1507 = vst [vmem:[%s2136_s2 + $0xa0] sm:$0xff] %v1431_v38  }
 0x10d   :  { %v1087_v46 = vadd.f32 %v1086_v42, %v1024_v39  ;;  %v1589_v47 = vpop.f32.mrb[12].mxu0  ;;  %v954_v48 = vadd.f32 %v1586_v28, %v953_v40  ;;  %v1912_v49 = vpop.f32.mrb[12].mxu1 }
 0x10e   :  { %v417_v51 = vpop.f32.mrb[13].mxu0  ;;  %v1914_v52 = vpop.f32.mrb[13].mxu1  ;;  %v1028_v6 = vmul.f32 %v1589_v47, %v1589_v47 }
 0x10f   :  { %v955_v53 = vadd.f32 %v954_v48, %v417_v51  ;;  %v1026_v54 = vmul.f32 %v417_v51, %v417_v51  ;;  %v1088_v55 = vadd.f32 %v1087_v46, %v1025_v44  ;;  %v1590_v56 = vpop.f32.mrb[14].mxu0  ;;  %v1916_v57 = vpop.f32.mrb[14].mxu1 }
 0x110   :  { %v1366_v58 = vpack.c.bf16 %v1590_v56, %v1589_v47  ;;  %v420_v59 = vpop.f32.mrb[15].mxu0  ;;  %v1446_v60 = vpack.c.bf16 %v1916_v57, %v1912_v49  ;;  %v1920_v61 = vpop.f32.mrb[15].mxu1  ;;  %v1029_v10 = vmul.f32 %v1590_v56, %v1590_v56 }
 0x111   :  { %v1089_v63 = vadd.f32 %v1088_v55, %v1026_v54  ;;  %v1361_v1 = vpack.c.bf16 %v420_v59, %v417_v51  ;;  %v956_v2 = vadd.f32 %v955_v53, %v420_v59  ;;  %v1027_v3 = vmul.f32 %v420_v59, %v420_v59 }
 0x112   :  { %1494 = vst [vmem:[%s2136_s2 + $0x38] sm:$0xff] %v1366_v58   ;;  %1510 = vst [vmem:[%s2136_s2 + $0xb8] sm:$0xff] %v1446_v60   ;;  %v1441_v4 = vpack.c.bf16 %v1920_v61, %v1914_v52 }
 0x113   :  { %1493 = vst [vmem:[%s2136_s2 + $0x30] sm:$0xff] %v1361_v1   ;;  %v957_v7 = vadd.f32 %v1589_v47, %v956_v2  ;;  %v1090_v8 = vadd.f32 %v1089_v63, %v1027_v3 }
 0x114   :  { %1509 = vst [vmem:[%s2136_s2 + $0xb0] sm:$0xff] %v1441_v4  }
 0x115   :  { %v1091_v11 = vadd.f32 %v1090_v8, %v1028_v6  ;;  %v1593_v12 = vpop.f32.mrb[16].mxu0  ;;  %v958_v13 = vadd.f32 %v1590_v56, %v957_v7  ;;  %v1936_v14 = vpop.f32.mrb[16].mxu1 }
 0x116   :  { %v433_v15 = vpop.f32.mrb[17].mxu0  ;;  %v1938_v16 = vpop.f32.mrb[17].mxu1  ;;  %v1032_v35 = vmul.f32 %v1593_v12, %v1593_v12 }
 0x117   :  { %v959_v17 = vadd.f32 %v958_v13, %v433_v15  ;;  %v1030_v18 = vmul.f32 %v433_v15, %v433_v15  ;;  %v1092_v19 = vadd.f32 %v1091_v11, %v1029_v10  ;;  %v1594_v20 = vpop.f32.mrb[18].mxu0  ;;  %v1940_v21 = vpop.f32.mrb[18].mxu1 }
 0x118   :  { %v1376_v23 = vpack.c.bf16 %v1594_v20, %v1593_v12  ;;  %v436_v25 = vpop.f32.mrb[19].mxu0  ;;  %v1456_v26 = vpack.c.bf16 %v1940_v21, %v1936_v14  ;;  %v1944_v27 = vpop.f32.mrb[19].mxu1  ;;  %v1033_v38 = vmul.f32 %v1594_v20, %v1594_v20 }
 0x119   :  { %v1093_v28 = vadd.f32 %v1092_v19, %v1030_v18  ;;  %v1371_v30 = vpack.c.bf16 %v436_v25, %v433_v15  ;;  %v960_v31 = vadd.f32 %v959_v17, %v436_v25  ;;  %v1031_v32 = vmul.f32 %v436_v25, %v436_v25 }
 0x11a   :  { %1496 = vst [vmem:[%s2136_s2 + $0x48] sm:$0xff] %v1376_v23   ;;  %1512 = vst [vmem:[%s2136_s2 + $0xc8] sm:$0xff] %v1456_v26   ;;  %v1451_v34 = vpack.c.bf16 %v1944_v27, %v1938_v16 }
 0x11b   :  { %1495 = vst [vmem:[%s2136_s2 + $0x40] sm:$0xff] %v1371_v30   ;;  %v961_v36 = vadd.f32 %v1593_v12, %v960_v31  ;;  %v1094_v37 = vadd.f32 %v1093_v28, %v1031_v32 }
 0x11c   :  { %1511 = vst [vmem:[%s2136_s2 + $0xc0] sm:$0xff] %v1451_v34  }
 0x11d   :  { %v1095_v39 = vadd.f32 %v1094_v37, %v1032_v35  ;;  %v1597_v40 = vpop.f32.mrb[20].mxu0  ;;  %v962_v42 = vadd.f32 %v1594_v20, %v961_v36  ;;  %v1960_v44 = vpop.f32.mrb[20].mxu1 }
 0x11e   :  { %v449_v46 = vpop.f32.mrb[21].mxu0  ;;  %v1962_v47 = vpop.f32.mrb[21].mxu1  ;;  %v1036_v6 = vmul.f32 %v1597_v40, %v1597_v40 }
 0x11f   :  { %v963_v48 = vadd.f32 %v962_v42, %v449_v46  ;;  %v1034_v51 = vmul.f32 %v449_v46, %v449_v46  ;;  %v1096_v53 = vadd.f32 %v1095_v39, %v1033_v38  ;;  %v1598_v54 = vpop.f32.mrb[22].mxu0  ;;  %v1964_v55 = vpop.f32.mrb[22].mxu1 }
 0x120   :  { %v1386_v56 = vpack.c.bf16 %v1598_v54, %v1597_v40  ;;  %v452_v58 = vpop.f32.mrb[23].mxu0  ;;  %v1466_v59 = vpack.c.bf16 %v1964_v55, %v1960_v44  ;;  %v1968_v60 = vpop.f32.mrb[23].mxu1  ;;  %v1037_v10 = vmul.f32 %v1598_v54, %v1598_v54 }
 0x121   :  { %v1097_v63 = vadd.f32 %v1096_v53, %v1034_v51  ;;  %v1381_v1 = vpack.c.bf16 %v452_v58, %v449_v46  ;;  %v964_v2 = vadd.f32 %v963_v48, %v452_v58  ;;  %v1035_v3 = vmul.f32 %v452_v58, %v452_v58 }
 0x122   :  { %1498 = vst [vmem:[%s2136_s2 + $0x58] sm:$0xff] %v1386_v56   ;;  %1514 = vst [vmem:[%s2136_s2 + $0xd8] sm:$0xff] %v1466_v59   ;;  %v1461_v4 = vpack.c.bf16 %v1968_v60, %v1962_v47 }
 0x123   :  { %1497 = vst [vmem:[%s2136_s2 + $0x50] sm:$0xff] %v1381_v1   ;;  %v965_v7 = vadd.f32 %v1597_v40, %v964_v2  ;;  %v1098_v8 = vadd.f32 %v1097_v63, %v1035_v3 }
 0x124   :  { %1513 = vst [vmem:[%s2136_s2 + $0xd0] sm:$0xff] %v1461_v4  }
 0x125   :  { %v1099_v11 = vadd.f32 %v1098_v8, %v1036_v6  ;;  %v1601_v12 = vpop.f32.mrb[24].mxu0  ;;  %v966_v13 = vadd.f32 %v1598_v54, %v965_v7  ;;  %v1984_v15 = vpop.f32.mrb[24].mxu1 }
 0x126   :  { %v465_v17 = vpop.f32.mrb[25].mxu0  ;;  %v1986_v18 = vpop.f32.mrb[25].mxu1  ;;  %v1040_v39 = vmul.f32 %v1601_v12, %v1601_v12 }
 0x127   :  { %v967_v19 = vadd.f32 %v966_v13, %v465_v17  ;;  %v1038_v20 = vmul.f32 %v465_v17, %v465_v17  ;;  %v1100_v23 = vadd.f32 %v1099_v11, %v1037_v10  ;;  %v1602_v25 = vpop.f32.mrb[26].mxu0  ;;  %v1988_v26 = vpop.f32.mrb[26].mxu1 }
 0x128   :  { %v1396_v28 = vpack.c.bf16 %v1602_v25, %v1601_v12  ;;  %v468_v30 = vpop.f32.mrb[27].mxu0  ;;  %v1476_v31 = vpack.c.bf16 %v1988_v26, %v1984_v15  ;;  %v1992_v32 = vpop.f32.mrb[27].mxu1  ;;  %v1041_v46 = vmul.f32 %v1602_v25, %v1602_v25 }
 0x129   :  { %v1101_v34 = vadd.f32 %v1100_v23, %v1038_v20  ;;  %v1391_v35 = vpack.c.bf16 %v468_v30, %v465_v17  ;;  %v968_v36 = vadd.f32 %v967_v19, %v468_v30  ;;  %v1039_v37 = vmul.f32 %v468_v30, %v468_v30 }
 0x12a   :  { %1500 = vst [vmem:[%s2136_s2 + $0x68] sm:$0xff] %v1396_v28   ;;  %1516 = vst [vmem:[%s2136_s2 + $0xe8] sm:$0xff] %v1476_v31   ;;  %v1471_v38 = vpack.c.bf16 %v1992_v32, %v1986_v18  ;;  %v1046_v31 = vmul.f32 %v1842_v43, %v1842_v43 }
 0x12b   :  { %1499 = vst [vmem:[%s2136_s2 + $0x60] sm:$0xff] %v1391_v35   ;;  %v969_v40 = vadd.f32 %v1601_v12, %v968_v36  ;;  %v1102_v42 = vadd.f32 %v1101_v34, %v1039_v37 }
 0x12c   :  { %1515 = vst [vmem:[%s2136_s2 + $0xe0] sm:$0xff] %v1471_v38   ;;  %v1047_v38 = vmul.f32 %v1848_v50, %v1848_v50 }
 0x12d   :  { %v1103_v48 = vadd.f32 %v1102_v42, %v1040_v39  ;;  %v1605_v51 = vpop.f32.mrb[28].mxu0  ;;  %v970_v53 = vadd.f32 %v1602_v25, %v969_v40  ;;  %v2008_v54 = vpop.f32.mrb[28].mxu1  ;;  %v1048_v39 = vmul.f32 %v1840_v41, %v1840_v41 }
 0x12e   :  { %v481_v56 = vpop.f32.mrb[29].mxu0  ;;  %v2010_v58 = vpop.f32.mrb[29].mxu1  ;;  %v1044_v19 = vmul.f32 %v1605_v51, %v1605_v51 }
 0x12f   :  { %v971_v59 = vadd.f32 %v970_v53, %v481_v56  ;;  %v1042_v63 = vmul.f32 %v481_v56, %v481_v56  ;;  %v1104_v1 = vadd.f32 %v1103_v48, %v1041_v46  ;;  %v1606_v2 = vpop.f32.mrb[30].mxu0  ;;  %v2012_v3 = vpop.f32.mrb[30].mxu1  ;;  %v1049_v46 = vmul.f32 %v1844_v45, %v1844_v45 }
 0x130   :  { %v1406_v4 = vpack.c.bf16 %v1606_v2, %v1605_v51  ;;  %v484_v6 = vpop.f32.mrb[31].mxu0  ;;  %v1486_v7 = vpack.c.bf16 %v2012_v3, %v2008_v54  ;;  %v2016_v8 = vpop.f32.mrb[31].mxu1  ;;  %v1045_v25 = vmul.f32 %v1606_v2, %v1606_v2 }
 0x131   :  { %v1105_v10 = vadd.f32 %v1104_v1, %v1042_v63  ;;  %v1401_v11 = vpack.c.bf16 %v484_v6, %v481_v56  ;;  %v972_v12 = vadd.f32 %v971_v59, %v484_v6  ;;  %v1043_v13 = vmul.f32 %v484_v6, %v484_v6 }
 0x132   :  { %1502 = vst [vmem:[%s2136_s2 + $0x78] sm:$0xff] %v1406_v4   ;;  %1518 = vst [vmem:[%s2136_s2 + $0xf8] sm:$0xff] %v1486_v7   ;;  %v1481_v17 = vpack.c.bf16 %v2016_v8, %v2010_v58  ;;  %v1051_v63 = vmul.f32 %v1872_v9, %v1872_v9 }
 0x133   :  { %1501 = vst [vmem:[%s2136_s2 + $0x70] sm:$0xff] %v1401_v11   ;;  %v973_v20 = vadd.f32 %v1605_v51, %v972_v12  ;;  %v1106_v23 = vadd.f32 %v1105_v10, %v1043_v13  ;;  %v1055_v12 = vmul.f32 %v1896_v33, %v1896_v33 }
 0x134   :  { %1517 = vst [vmem:[%s2136_s2 + $0xf0] sm:$0xff] %v1481_v17  }
 0x135   :  { %v1107_v28 = vadd.f32 %v1106_v23, %v1044_v19  ;;  %v974_v30 = vadd.f32 %v1606_v2, %v973_v20 }
 0x137   :  { %v975_v34 = vadd.f32 %v974_v30, %v1842_v43  ;;  %v1108_v35 = vadd.f32 %v1107_v28, %v1045_v25  ;;  %v1050_v43 = vmul.f32 %v1866_v0, %v1866_v0  ;;  %v1059_v30 = vmul.f32 %v1920_v61, %v1920_v61 }
 0x139   :  { %v1109_v36 = vadd.f32 %v1108_v35, %v1046_v31  ;;  %v976_v37 = vadd.f32 %v975_v34, %v1848_v50 }
 0x13b   :  { %v977_v40 = vadd.f32 %v1840_v41, %v976_v37  ;;  %v1110_v42 = vadd.f32 %v1109_v36, %v1047_v38  ;;  %v1052_v41 = vmul.f32 %v1864_v62, %v1864_v62 }
 0x13d   :  { %v1111_v48 = vadd.f32 %v1110_v42, %v1048_v39  ;;  %v978_v51 = vadd.f32 %v1844_v45, %v977_v40  ;;  %v1053_v45 = vmul.f32 %v1868_v5, %v1868_v5  ;;  %v1063_v40 = vmul.f32 %v1944_v27, %v1944_v27 }
 0x13f   :  { %v979_v53 = vadd.f32 %v978_v51, %v1866_v0  ;;  %v1112_v56 = vadd.f32 %v1111_v48, %v1049_v46  ;;  %v1054_v0 = vmul.f32 %v1890_v24, %v1890_v24 }
 0x141   :  { %v1113_v59 = vadd.f32 %v1112_v56, %v1050_v43  ;;  %v980_v50 = vadd.f32 %v979_v53, %v1872_v9 }
 0x143   :  { %v981_v1 = vadd.f32 %v1864_v62, %v980_v50  ;;  %v1114_v2 = vadd.f32 %v1113_v59, %v1051_v63  ;;  %v1056_v62 = vmul.f32 %v1888_v22, %v1888_v22  ;;  %v1067_v59 = vmul.f32 %v1968_v60, %v1968_v60 }
 0x145   :  { %v1115_v4 = vadd.f32 %v1114_v2, %v1052_v41  ;;  %v982_v6 = vadd.f32 %v1868_v5, %v981_v1  ;;  %v1057_v5 = vmul.f32 %v1892_v29, %v1892_v29 }
 0x147   :  { %v983_v7 = vadd.f32 %v982_v6, %v1890_v24  ;;  %v1116_v10 = vadd.f32 %v1115_v4, %v1053_v45  ;;  %v1058_v24 = vmul.f32 %v1914_v52, %v1914_v52  ;;  %v1071_v6 = vmul.f32 %v1992_v32, %v1992_v32 }
 0x149   :  { %v1117_v11 = vadd.f32 %v1116_v10, %v1054_v0  ;;  %v984_v9 = vadd.f32 %v983_v7, %v1896_v33 }
 0x14b   :  { %v985_v13 = vadd.f32 %v1888_v22, %v984_v9  ;;  %v1118_v17 = vadd.f32 %v1117_v11, %v1055_v12  ;;  %v1060_v22 = vmul.f32 %v1912_v49, %v1912_v49 }
 0x14d   :  { %v1119_v19 = vadd.f32 %v1118_v17, %v1056_v62  ;;  %v986_v20 = vadd.f32 %v1892_v29, %v985_v13  ;;  %v1061_v29 = vmul.f32 %v1916_v57, %v1916_v57  ;;  %v1075_v13 = vmul.f32 %v2016_v8, %v2016_v8 }
 0x14f   :  { %v987_v23 = vadd.f32 %v986_v20, %v1914_v52  ;;  %v1120_v25 = vadd.f32 %v1119_v19, %v1057_v5  ;;  %v1062_v52 = vmul.f32 %v1938_v16, %v1938_v16 }
 0x151   :  { %v1121_v28 = vadd.f32 %v1120_v25, %v1058_v24  ;;  %v988_v33 = vadd.f32 %v987_v23, %v1920_v61 }
 0x153   :  { %v989_v31 = vadd.f32 %v1912_v49, %v988_v33  ;;  %v1122_v34 = vadd.f32 %v1121_v28, %v1059_v30  ;;  %v1064_v49 = vmul.f32 %v1936_v14, %v1936_v14 }
 0x155   :  { %v1123_v35 = vadd.f32 %v1122_v34, %v1060_v22  ;;  %v990_v36 = vadd.f32 %v1916_v57, %v989_v31  ;;  %v1065_v57 = vmul.f32 %v1940_v21, %v1940_v21 }
 0x157   :  { %v991_v37 = vadd.f32 %v990_v36, %v1938_v16  ;;  %v1124_v38 = vadd.f32 %v1123_v35, %v1061_v29  ;;  %v1066_v16 = vmul.f32 %v1962_v47, %v1962_v47 }
 0x159   :  { %v1125_v39 = vadd.f32 %v1124_v38, %v1062_v52  ;;  %v992_v61 = vadd.f32 %v991_v37, %v1944_v27 }
 0x15b   :  { %v993_v42 = vadd.f32 %v1936_v14, %v992_v61  ;;  %v1126_v46 = vadd.f32 %v1125_v39, %v1063_v40  ;;  %v1068_v14 = vmul.f32 %v1960_v44, %v1960_v44 }
 0x15d   :  { %v1127_v48 = vadd.f32 %v1126_v46, %v1064_v49  ;;  %v994_v51 = vadd.f32 %v1940_v21, %v993_v42  ;;  %v1069_v21 = vmul.f32 %v1964_v55, %v1964_v55 }
 0x15f   :  { %v995_v43 = vadd.f32 %v994_v51, %v1962_v47  ;;  %v1128_v53 = vadd.f32 %v1127_v48, %v1065_v57  ;;  %v1070_v47 = vmul.f32 %v1986_v18, %v1986_v18 }
 0x161   :  { %v1129_v56 = vadd.f32 %v1128_v53, %v1066_v16  ;;  %v996_v27 = vadd.f32 %v995_v43, %v1968_v60 }
 0x163   :  { %v997_v50 = vadd.f32 %v1960_v44, %v996_v27  ;;  %v1130_v63 = vadd.f32 %v1129_v56, %v1067_v59  ;;  %v1072_v44 = vmul.f32 %v1984_v15, %v1984_v15 }
 0x165   :  { %v1131_v41 = vadd.f32 %v1130_v63, %v1068_v14  ;;  %v998_v1 = vadd.f32 %v1964_v55, %v997_v50  ;;  %v1073_v55 = vmul.f32 %v1988_v26, %v1988_v26 }
 0x167   :  { %v999_v2 = vadd.f32 %v998_v1, %v1986_v18  ;;  %v1132_v45 = vadd.f32 %v1131_v41, %v1069_v21  ;;  %v1074_v18 = vmul.f32 %v2010_v58, %v2010_v58 }
 0x169   :  { %v1133_v4 = vadd.f32 %v1132_v45, %v1070_v47  ;;  %v1000_v60 = vadd.f32 %v999_v2, %v1992_v32 }
 0x16b   :  { %v1001_v0 = vadd.f32 %v1984_v15, %v1000_v60  ;;  %v1134_v7 = vadd.f32 %v1133_v4, %v1071_v6  ;;  %v1076_v15 = vmul.f32 %v2008_v54, %v2008_v54 }
 0x16d   :  { %v1135_v10 = vadd.f32 %v1134_v7, %v1072_v44  ;;  %v1002_v11 = vadd.f32 %v1988_v26, %v1001_v0  ;;  %v1077_v26 = vmul.f32 %v2012_v3, %v2012_v3 }
 0x16f   :  { %v1003_v9 = vadd.f32 %v1002_v11, %v2010_v58  ;;  %v1136_v12 = vadd.f32 %v1135_v10, %v1073_v55 }
 0x171   :  { %v1137_v62 = vadd.f32 %v1136_v12, %v1074_v18  ;;  %v1004_v32 = vadd.f32 %v1003_v9, %v2016_v8 }
 0x173   :  { %v1005_v17 = vadd.f32 %v2008_v54, %v1004_v32  ;;  %v1138_v5 = vadd.f32 %v1137_v62, %v1075_v13 }
 0x175   :  { %v1006_v19 = vadd.f32 %v2012_v3, %v1005_v17  ;;  %v1139_v20 = vadd.f32 %v1138_v5, %v1076_v15 }
 0x177   :  { %v1007_v58 = vrot.slane %v1006_v19, 4  ;;  %v1140_v24 = vadd.f32 %v1139_v20, %v1077_v26 }
 0x179   :  { %v1008_v23 = vadd.f32 %v1007_v58, %v1006_v19  ;;  %v1141_v25 = vrot.slane %v1140_v24, 4 }
 0x17b   :  { %v1009_v28 = vrot.slane %v1008_v23, 2  ;;  %v1142_v33 = vadd.f32 %v1141_v25, %v1140_v24 }
 0x17d   :  { %v1010_v30 = vadd.f32 %v1009_v28, %v1008_v23  ;;  %v1143_v8 = vrot.slane %v1142_v33, 2 }
 0x17f   :  { %v1011_v22 = vrot.slane %v1010_v30, 1  ;;  %v1144_v31 = vadd.f32 %v1143_v8, %v1142_v33 }
 0x181   :  { %v1012_v34 = vadd.f32 %v1011_v22, %v1010_v30  ;;  %v1145_v29 = vrot.slane %v1144_v31, 1 }
 0x183   :  { %1013 = vst [vmem:[%s2137_s3] sm:$0x1] %v1012_v34  ;;  %v1146_v54 = vadd.f32 %v1145_v29, %v1144_v31 }
 0x185   :  { %1147 = vst [vmem:[%s2138_s4] sm:$0x1] %v1146_v54 }

// kernel: discriminator_forward.12
= control target key start
LH: loop header
LB: loop body
LE: loop exit
PB: predicated region body
PF: predicated region fallthrough
CT: control target
= control target key end

     0   :  { %v67_v8 = vlaneseq  ;;  %s496_s1 = inlined_call_operand.vmem [shape: f32[1,128], index: 1, kind: input, shape index: {}]   ;;  %s497_s2 = inlined_call_operand.vmem [shape: f32[1,128], index: 2, kind: input, shape index: {}]   ;;  %s498_s0 = inlined_call_operand.vmem [shape: bf16[128,128], index: 0, kind: input, shape index: {}]   ;;  %s499_s3 = inlined_call_operand.vmem [shape: f32[1,128], index: 3, kind: input, shape index: {}]   ;;  %s500_s4 = inlined_call_operand.vmem [shape: f32[1,128], index: 4, kind: input, shape index: {}]   ;;  %s501_s5 = inlined_call_operand.vmem [shape: bf16[128,128], index: 5, kind: output, shape index: {}]  }
   0x1   :  { %v20_v0 = vld [vmem:[%s496_s1] sm:$0x1]  ;;  %v346_v11 = vld [vmem:[%s498_s0 + $0x8] sm:$0xff]   ;;  %v347_v13 = vld [vmem:[%s498_s0 + $0x10] sm:$0xff]  }
   0x2   :  { %v22_v1 = vld [vmem:[%s497_s2] sm:$0x1]  ;;  %v21_v2 = vmul.f32 0.0078125, %v20_v0  ;;  %v68_v9 = vshrl.u32 %v67_v8, 7  ;;  %v348_v15 = vld [vmem:[%s498_s0 + $0x18] sm:$0xff]   ;;  %v280_v20 = vunpack.c.l.bf16 %v346_v11  ;;  %v350_v21 = vld [vmem:[%s498_s0 + $0x28] sm:$0xff]   ;;  %v281_v23 = vunpack.c.h.bf16 %v346_v11 }
   0x3   :  { %v23_v3 = vmul.f32 0.0078125, %v22_v1  ;;  %v275_v10 = vld [vmem:[%s498_s0] sm:$0xff]   ;;  %v284_v24 = vunpack.c.l.bf16 %v347_v13  ;;  %v285_v25 = vunpack.c.h.bf16 %v347_v13  ;;  %v351_v26 = vld [vmem:[%s498_s0 + $0x30] sm:$0xff]   ;;  %v425_v27 = vld [vmem:[%s498_s0 + $0x38] sm:$0xff]   ;;  %v288_v29 = vunpack.c.l.bf16 %v348_v15 }
   0x4   :  { %v24_v4 = vmul.f32 %v21_v2, %v21_v2  ;;  %v29_v12 = vld [vmem:[%s499_s3] sm:$0x1]  ;;  %v69_v14 = vsub.s32 0, %v68_v9  ;;  %v276_v18 = vunpack.c.l.bf16 %v275_v10  ;;  %v277_v19 = vunpack.c.h.bf16 %v275_v10 }
   0x5   :  { %v349_v16 = vld [vmem:[%s498_s0 + $0x20] sm:$0xff]   ;;  %v289_v30 = vunpack.c.h.bf16 %v348_v15  ;;  %v296_v35 = vunpack.c.l.bf16 %v350_v21  ;;  %v297_v36 = vunpack.c.h.bf16 %v350_v21  ;;  %v300_v37 = vunpack.c.l.bf16 %v351_v26 }
   0x6   :  { %v25_v5 = vsub.f32 %v23_v3, %v24_v4  ;;  %v31_v28 = vld [vmem:[%s500_s4] sm:$0x1]  ;;  %v292_v31 = vunpack.c.l.bf16 %v349_v16  ;;  %v293_v32 = vunpack.c.h.bf16 %v349_v16  ;;  %v301_v38 = vunpack.c.h.bf16 %v351_v26 }
   0x7   :  { %v304_v39 = vunpack.c.l.bf16 %v425_v27  ;;  %v305_v40 = vunpack.c.h.bf16 %v425_v27 }
   0x8   :  { %v26_v6 = vmax.f32 %v25_v5, 0.0 }
   0xa   :  { %v27_v7 = vadd.f32 1e-05, %v26_v6 }
   0xc   :  { %360 = vrsqrt.f32 %v27_v7 }
  0x16   :  { %v361_v17 = vpop.eup %360 }
  0x17   :  { %v30_v22 = vmul.f32 %v361_v17, %v29_v12 }
  0x19   :  { %v32_v33 = vmul.f32 %v30_v22, %v21_v2  ;;  %v430_v34 = vrot.slane %v30_v22, %v69_v14 }
  0x1b   :  { %v33_v41 = vsub.f32 %v31_v28, %v32_v33  ;;  %v72_v42 = vmul.f32 %v276_v18, %v430_v34  ;;  %v73_v43 = vmul.f32 %v277_v19, %v430_v34  ;;  %v74_v44 = vmul.f32 %v280_v20, %v430_v34 }
  0x1c   :  { %v75_v45 = vmul.f32 %v281_v23, %v430_v34  ;;  %v76_v46 = vmul.f32 %v284_v24, %v430_v34  ;;  %v77_v47 = vmul.f32 %v285_v25, %v430_v34  ;;  %v78_v48 = vmul.f32 %v288_v29, %v430_v34 }
  0x1d   :  { %v441_v49 = vrot.slane %v33_v41, %v69_v14  ;;  %v79_v50 = vmul.f32 %v289_v30, %v430_v34  ;;  %v80_v51 = vmul.f32 %v292_v31, %v430_v34  ;;  %v81_v52 = vmul.f32 %v293_v32, %v430_v34 }
  0x1e   :  { %v82_v53 = vmul.f32 %v296_v35, %v430_v34  ;;  %v83_v54 = vmul.f32 %v297_v36, %v430_v34  ;;  %v84_v55 = vmul.f32 %v300_v37, %v430_v34  ;;  %v85_v56 = vmul.f32 %v301_v38, %v430_v34 }
  0x1f   :  { %v94_v57 = vadd.f32 %v441_v49, %v72_v42  ;;  %v95_v58 = vadd.f32 %v441_v49, %v73_v43  ;;  %v96_v59 = vadd.f32 %v441_v49, %v74_v44  ;;  %v97_v60 = vadd.f32 %v441_v49, %v75_v45 }
  0x20   :  { %v98_v61 = vadd.f32 %v441_v49, %v76_v46  ;;  %v99_v62 = vadd.f32 %v441_v49, %v77_v47  ;;  %v100_v63 = vadd.f32 %v441_v49, %v78_v48  ;;  %v101_v0 = vadd.f32 %v441_v49, %v79_v50 }
  0x21   :  { %vm110_vm0 = vcmp.ge.f32.partialorder %v94_v57, 0.0  ;;  %vm111_vm1 = vcmp.ge.f32.partialorder %v95_v58, 0.0  ;;  %v126_v1 = vmul.f32 0.2, %v94_v57  ;;  %v127_v2 = vmul.f32 0.2, %v95_v58 }
  0x22   :  { %vm112_vm2 = vcmp.ge.f32.partialorder %v96_v59, 0.0  ;;  %vm113_vm3 = vcmp.ge.f32.partialorder %v97_v60, 0.0  ;;  %v128_v3 = vmul.f32 0.2, %v96_v59  ;;  %v129_v4 = vmul.f32 0.2, %v97_v60 }
  0x23   :  { %v142_v5 = vsel %vm110_vm0, %v94_v57, %v126_v1  ;;  %v143_v6 = vsel %vm111_vm1, %v95_v58, %v127_v2  ;;  %vm114_vm4 = vcmp.ge.f32.partialorder %v98_v61, 0.0  ;;  %vm115_vm5 = vcmp.ge.f32.partialorder %v99_v62, 0.0 }
  0x24   :  { %v309_v7 = vpack.c.bf16 %v143_v6, %v142_v5  ;;  %v144_v8 = vsel %vm112_vm2, %v96_v59, %v128_v3  ;;  %v145_v9 = vsel %vm113_vm3, %v97_v60, %v129_v4  ;;  %v130_v10 = vmul.f32 0.2, %v98_v61 }
  0x25   :  { %v314_v11 = vpack.c.bf16 %v145_v9, %v144_v8  ;;  %v131_v12 = vmul.f32 0.2, %v99_v62  ;;  %vm116_vm6 = vcmp.ge.f32.partialorder %v100_v63, 0.0  ;;  %vm117_vm7 = vcmp.ge.f32.partialorder %v101_v0, 0.0 }
  0x26   :  { %310 = vst [vmem:[%s501_s5] sm:$0xff] %v309_v7   ;;  %v146_v13 = vsel %vm114_vm4, %v98_v61, %v130_v10  ;;  %v132_v14 = vmul.f32 0.2, %v100_v63  ;;  %v133_v15 = vmul.f32 0.2, %v101_v0  ;;  %v102_v16 = vadd.f32 %v441_v49, %v80_v51 }
  0x27   :  { %353 = vst [vmem:[%s501_s5 + $0x8] sm:$0xff] %v314_v11   ;;  %v147_v17 = vsel %vm115_vm5, %v99_v62, %v131_v12  ;;  %v103_v18 = vadd.f32 %v441_v49, %v81_v52  ;;  %v104_v19 = vadd.f32 %v441_v49, %v82_v53  ;;  %v105_v20 = vadd.f32 %v441_v49, %v83_v54 }
  0x28   :  { %v319_v21 = vpack.c.bf16 %v147_v17, %v146_v13  ;;  %v148_v22 = vsel %vm116_vm6, %v100_v63, %v132_v14  ;;  %v149_v23 = vsel %vm117_vm7, %v101_v0, %v133_v15  ;;  %vm118_vm8 = vcmp.ge.f32.partialorder %v102_v16, 0.0 }
  0x29   :  { %v324_v24 = vpack.c.bf16 %v149_v23, %v148_v22  ;;  %vm119_vm9 = vcmp.ge.f32.partialorder %v103_v18, 0.0  ;;  %v134_v25 = vmul.f32 0.2, %v102_v16  ;;  %v135_v26 = vmul.f32 0.2, %v103_v18 }
  0x2a   :  { %354 = vst [vmem:[%s501_s5 + $0x10] sm:$0xff] %v319_v21   ;;  %vm120_vm10 = vcmp.ge.f32.partialorder %v104_v19, 0.0  ;;  %vm121_vm11 = vcmp.ge.f32.partialorder %v105_v20, 0.0  ;;  %v136_v28 = vmul.f32 0.2, %v104_v19  ;;  %v106_v32 = vadd.f32 %v441_v49, %v84_v55 }
  0x2b   :  { %v137_v29 = vmul.f32 0.2, %v105_v20  ;;  %355 = vst [vmem:[%s501_s5 + $0x18] sm:$0xff] %v324_v24   ;;  %v150_v30 = vsel %vm118_vm8, %v102_v16, %v134_v25  ;;  %v151_v31 = vsel %vm119_vm9, %v103_v18, %v135_v26  ;;  %v107_v33 = vadd.f32 %v441_v49, %v85_v56 }
  0x2c   :  { %v329_v35 = vpack.c.bf16 %v151_v31, %v150_v30  ;;  %v152_v36 = vsel %vm120_vm10, %v104_v19, %v136_v28  ;;  %v86_v38 = vmul.f32 %v304_v39, %v430_v34  ;;  %vm122_vm12 = vcmp.ge.f32.partialorder %v106_v32, 0.0 }
  0x2d   :  { %v153_v37 = vsel %vm121_vm11, %v105_v20, %v137_v29  ;;  %vm123_vm13 = vcmp.ge.f32.partialorder %v107_v33, 0.0  ;;  %v138_v42 = vmul.f32 0.2, %v106_v32  ;;  %v139_v43 = vmul.f32 0.2, %v107_v33 }
  0x2e   :  { %v334_v41 = vpack.c.bf16 %v153_v37, %v152_v36  ;;  %356 = vst [vmem:[%s501_s5 + $0x20] sm:$0xff] %v329_v35   ;;  %v87_v44 = vmul.f32 %v305_v40, %v430_v34  ;;  %v108_v45 = vadd.f32 %v441_v49, %v86_v38 }
  0x2f   :  { %v154_v39 = vsel %vm122_vm12, %v106_v32, %v138_v42  ;;  %v155_v46 = vsel %vm123_vm13, %v107_v33, %v139_v43 }
  0x30   :  { %357 = vst [vmem:[%s501_s5 + $0x28] sm:$0xff] %v334_v41   ;;  %v109_v47 = vadd.f32 %v441_v49, %v87_v44  ;;  %vm124_vm14 = vcmp.ge.f32.partialorder %v108_v45, 0.0  ;;  %v140_v48 = vmul.f32 0.2, %v108_v45  ;;  %v339_v50 = vpack.c.bf16 %v155_v46, %v154_v39 }
  0x32   :  { %vm125_vm15 = vcmp.ge.f32.partialorder %v109_v47, 0.0  ;;  %v141_v51 = vmul.f32 0.2, %v109_v47  ;;  %v156_v52 = vsel %vm124_vm14, %v108_v45, %v140_v48  ;;  %358 = vst [vmem:[%s501_s5 + $0x30] sm:$0xff] %v339_v50  }
  0x34   :  { %v157_v27 = vsel %vm125_vm15, %v109_v47, %v141_v51 }
  0x35   :  { %v344_v34 = vpack.c.bf16 %v157_v27, %v156_v52 }
  0x37   :  { %359 = vst [vmem:[%s501_s5 + $0x38] sm:$0xff] %v344_v34  }

// kernel: discriminator_forward.11
= control target key start
LH: loop header
LB: loop body
LE: loop exit
PB: predicated region body
PF: predicated region fallthrough
CT: control target
= control target key end

     0   :  { %s888_s1 = inlined_call_operand.vmem [shape: bf16[256,128], index: 1, kind: input, shape index: {}]   ;;  %s889_s0 = inlined_call_operand.vmem [shape: bf16[128,256], index: 0, kind: input, shape index: {}]   ;;  %s890_s2 = inlined_call_operand.vmem [shape: bf16[128,128], index: 2, kind: output, shape index: {0}]   ;;  %s891_s3 = inlined_call_operand.vmem [shape: f32[1,1,128], index: 3, kind: output, shape index: {1}]   ;;  %s892_s4 = inlined_call_operand.vmem [shape: f32[1,1,128], index: 4, kind: output, shape index: {2}]  }
   0x1   :  { %v679_v0 = vld [vmem:[%s888_s1 + $0x40] sm:$0xff]   ;;  %v681_v2 = vld [vmem:[%s888_s1 + $0x48] sm:$0xff]   ;;  %v683_v4 = vld [vmem:[%s888_s1 + $0x50] sm:$0xff]  }
   0x2   :  { %v680_v1 = vld [vmem:[%s888_s1] sm:$0xff]   ;;  %599 = vmatprep.subr.bf16.mxu0 %v679_v0  ;;  %663 = vmatprep.subr.bf16.mxu1 %v679_v0  ;;  %v682_v3 = vld [vmem:[%s888_s1 + $0x8] sm:$0xff]   ;;  %v684_v5 = vld [vmem:[%s888_s1 + $0x10] sm:$0xff]  }
   0x3   :  { %600 = vmatpush3.bf16.msra.mxu0 %v680_v1  ;;  %671 = vmatpush3.bf16.msra.mxu1 %v680_v1  ;;  %v685_v6 = vld [vmem:[%s888_s1 + $0x58] sm:$0xff]   ;;  %v687_v8 = vld [vmem:[%s888_s1 + $0x60] sm:$0xff]   ;;  %v689_v10 = vld [vmem:[%s888_s1 + $0x68] sm:$0xff]  }
   0x4   :  { %601 = vmatprep.subr.bf16.mxu0 %v681_v2  ;;  %664 = vmatprep.subr.bf16.mxu1 %v681_v2  ;;  %v686_v7 = vld [vmem:[%s888_s1 + $0x18] sm:$0xff]   ;;  %v688_v9 = vld [vmem:[%s888_s1 + $0x20] sm:$0xff]   ;;  %v690_v12 = vld [vmem:[%s888_s1 + $0x28] sm:$0xff]  }
   0x5   :  { %v697_v11 = vld [vmem:[%s889_s0 + $0x4] ss:$8 sps:$4 sm:$0xff]   ;;  %v691_v14 = vld [vmem:[%s888_s1 + $0x70] sm:$0xff]   ;;  %v693_v16 = vld [vmem:[%s888_s1 + $0x78] sm:$0xff]  }
   0x6   :  { %v703_v13 = vld [vmem:[%s889_s0 + $0x44] ss:$8 sps:$4 sm:$0xff]   ;;  %271 = vmatprep.mubr.bf16.mxu0 %v697_v11  ;;  %v692_v15 = vld [vmem:[%s888_s1 + $0x30] sm:$0xff]   ;;  %v694_v17 = vld [vmem:[%s888_s1 + $0x38] sm:$0xff]  }
   0x7   :  { %602 = vmatpush3.bf16.msra.mxu0 %v682_v3  ;;  %672 = vmatpush3.bf16.msra.mxu1 %v682_v3  ;;  %v695_v18 = vld [vmem:[%s889_s0] ss:$8 sps:$4 sm:$0xff]   ;;  %v698_v20 = vld [vmem:[%s889_s0 + $0x14] ss:$8 sps:$4 sm:$0xff]   ;;  %v700_v22 = vld [vmem:[%s889_s0 + $0x10] ss:$8 sps:$4 sm:$0xff]  }
   0x8   :  { %603 = vmatprep.subr.bf16.mxu0 %v683_v4  ;;  %665 = vmatprep.subr.bf16.mxu1 %v683_v4  ;;  %v701_v19 = vld [vmem:[%s889_s0 + $0x40] ss:$8 sps:$4 sm:$0xff]   ;;  %v707_v21 = vld [vmem:[%s889_s0 + $0x54] ss:$8 sps:$4 sm:$0xff]   ;;  %v709_v23 = vld [vmem:[%s889_s0 + $0x50] ss:$8 sps:$4 sm:$0xff]  }
   0x9   :  { %303 = vmatprep.mubr.bf16.mxu1 %v703_v13  ;;  %v704_v24 = vld [vmem:[%s889_s0 + $0x24] ss:$8 sps:$4 sm:$0xff]   ;;  %v706_v26 = vld [vmem:[%s889_s0 + $0x20] ss:$8 sps:$4 sm:$0xff]   ;;  %v710_v28 = vld [vmem:[%s889_s0 + $0x34] ss:$8 sps:$4 sm:$0xff]  }
   0xa   :  { %v713_v25 = vld [vmem:[%s889_s0 + $0x64] ss:$8 sps:$4 sm:$0xff]   ;;  %v715_v27 = vld [vmem:[%s889_s0 + $0x60] ss:$8 sps:$4 sm:$0xff]   ;;  %v716_v29 = vld [vmem:[%s889_s0 + $0x74] ss:$8 sps:$4 sm:$0xff]  }
   0xb   :  { %604 = vmatpush3.bf16.msra.mxu0 %v684_v5  ;;  %673 = vmatpush3.bf16.msra.mxu1 %v684_v5  ;;  %v712_v30 = vld [vmem:[%s889_s0 + $0x30] ss:$8 sps:$4 sm:$0xff]  }
   0xc   :  { %605 = vmatprep.subr.bf16.mxu0 %v685_v6  ;;  %666 = vmatprep.subr.bf16.mxu1 %v685_v6  ;;  %v718_v31 = vld [vmem:[%s889_s0 + $0x70] ss:$8 sps:$4 sm:$0xff]  }
   0xf   :  { %606 = vmatpush3.bf16.msra.mxu0 %v686_v7  ;;  %674 = vmatpush3.bf16.msra.mxu1 %v686_v7 }
  0x10   :  { %607 = vmatprep.subr.bf16.mxu0 %v687_v8  ;;  %667 = vmatprep.subr.bf16.mxu1 %v687_v8 }
  0x13   :  { %608 = vmatpush3.bf16.msra.mxu0 %v688_v9  ;;  %675 = vmatpush3.bf16.msra.mxu1 %v688_v9 }
  0x14   :  { %609 = vmatprep.subr.bf16.mxu0 %v689_v10  ;;  %668 = vmatprep.subr.bf16.mxu1 %v689_v10 }
  0x17   :  { %610 = vmatpush3.bf16.msra.mxu0 %v690_v12  ;;  %676 = vmatpush3.bf16.msra.mxu1 %v690_v12 }
  0x18   :  { %611 = vmatprep.subr.bf16.mxu0 %v691_v14  ;;  %669 = vmatprep.subr.bf16.mxu1 %v691_v14 }
  0x1b   :  { %612 = vmatpush3.bf16.msra.mxu0 %v692_v15  ;;  %677 = vmatpush3.bf16.msra.mxu1 %v692_v15 }
  0x1c   :  { %613 = vmatprep.subr.bf16.mxu0 %v693_v16  ;;  %670 = vmatprep.subr.bf16.mxu1 %v693_v16 }
  0x1f   :  { %614 = vmatpush3.bf16.msra.mxu0 %v694_v17  ;;  %678 = vmatpush3.bf16.msra.mxu1 %v694_v17 }
  0x22   :  { %272 = vmatmul.mubr.bf16.vlgmr.msra.gmra.mrb[0].mxu0 %v695_v18  ;;  %304 = vmatmul.mubr.bf16.vlgmr.msra.gmra.mrb[0].mxu1 %v701_v19 }
  0x23   :  { %279 = vmatprep.mubr.bf16.mxu0 %v698_v20  ;;  %311 = vmatprep.mubr.bf16.mxu1 %v707_v21 }
  0x2a   :  { %280 = vmatmul.mubr.bf16.gmra.mrb[4].mxu0 %v700_v22  ;;  %312 = vmatmul.mubr.bf16.gmra.mrb[4].mxu1 %v709_v23 }
  0x2b   :  { %287 = vmatprep.mubr.bf16.mxu0 %v704_v24  ;;  %319 = vmatprep.mubr.bf16.mxu1 %v713_v25 }
  0x32   :  { %288 = vmatmul.mubr.bf16.gmra.mrb[8].mxu0 %v706_v26  ;;  %320 = vmatmul.mubr.bf16.gmra.mrb[8].mxu1 %v715_v27 }
  0x33   :  { %295 = vmatprep.mubr.bf16.mxu0 %v710_v28  ;;  %327 = vmatprep.mubr.bf16.mxu1 %v716_v29 }
  0x3a   :  { %296 = vmatmul.mubr.bf16.gmra.mrb[12].mxu0 %v712_v30  ;;  %328 = vmatmul.mubr.bf16.gmra.mrb[12].mxu1 %v718_v31 }
  0xf5   :  { %v615_v32 = vpop.f32.mrb[0].mxu0  ;;  %v639_v33 = vpop.f32.mrb[0].mxu1 }
  0xf6   :  { %v616_v34 = vpop.f32.mrb[1].mxu0  ;;  %v640_v35 = vpop.f32.mrb[1].mxu1 }
  0xf7   :  { %v617_v36 = vadd.f32 %v616_v34, %v615_v32  ;;  %v618_v37 = vpop.f32.mrb[2].mxu0  ;;  %v840_v38 = vadd.f32 %v640_v35, %v639_v33  ;;  %v642_v39 = vpop.f32.mrb[2].mxu1 }
  0xf8   :  { %v619_v40 = vpop.f32.mrb[3].mxu0  ;;  %v643_v41 = vpop.f32.mrb[3].mxu1 }
  0xf9   :  { %v620_v42 = vadd.f32 %v619_v40, %v618_v37  ;;  %v842_v43 = vadd.f32 %v643_v41, %v642_v39  ;;  %v438_v44 = vmul.f32 %v617_v36, %v617_v36 }
  0xfb   :  { %v555_v45 = vpack.c.bf16 %v620_v42, %v617_v36  ;;  %v416_v46 = vadd.f32 %v620_v42, %v617_v36  ;;  %v439_v47 = vmul.f32 %v620_v42, %v620_v42  ;;  %v575_v48 = vpack.c.bf16 %v842_v43, %v840_v38 }
  0xfd   :  { %556 = vst [vmem:[%s890_s2] sm:$0xff] %v555_v45   ;;  %v454_v49 = vadd.f32 %v439_v47, %v438_v44  ;;  %v621_v50 = vpop.f32.mrb[4].mxu0  ;;  %595 = vst [vmem:[%s890_s2 + $0x20] sm:$0xff] %v575_v48   ;;  %v645_v51 = vpop.f32.mrb[4].mxu1  ;;  %v446_v47 = vmul.f32 %v840_v38, %v840_v38 }
  0xfe   :  { %v622_v52 = vpop.f32.mrb[5].mxu0  ;;  %v646_v53 = vpop.f32.mrb[5].mxu1 }
  0xff   :  { %v623_v54 = vadd.f32 %v622_v52, %v621_v50  ;;  %v624_v55 = vpop.f32.mrb[6].mxu0  ;;  %v852_v56 = vadd.f32 %v646_v53, %v645_v51  ;;  %v648_v57 = vpop.f32.mrb[6].mxu1  ;;  %v447_v50 = vmul.f32 %v842_v43, %v842_v43 }
 0x100   :  { %v625_v58 = vpop.f32.mrb[7].mxu0  ;;  %v649_v59 = vpop.f32.mrb[7].mxu1 }
 0x101   :  { %v417_v60 = vadd.f32 %v623_v54, %v416_v46  ;;  %v440_v61 = vmul.f32 %v623_v54, %v623_v54  ;;  %v626_v62 = vadd.f32 %v625_v58, %v624_v55  ;;  %v650_v63 = vadd.f32 %v649_v59, %v648_v57 }
 0x102   :  { %v448_v53 = vmul.f32 %v852_v56, %v852_v56 }
 0x103   :  { %v455_v0 = vadd.f32 %v454_v49, %v440_v61  ;;  %v560_v1 = vpack.c.bf16 %v626_v62, %v623_v54  ;;  %v418_v2 = vadd.f32 %v626_v62, %v417_v60  ;;  %v441_v3 = vmul.f32 %v626_v62, %v626_v62 }
 0x104   :  { %v580_v4 = vpack.c.bf16 %v650_v63, %v852_v56  ;;  %v449_v57 = vmul.f32 %v650_v63, %v650_v63 }
 0x105   :  { %592 = vst [vmem:[%s890_s2 + $0x8] sm:$0xff] %v560_v1   ;;  %v456_v5 = vadd.f32 %v455_v0, %v441_v3  ;;  %v627_v6 = vpop.f32.mrb[8].mxu0  ;;  %v651_v7 = vpop.f32.mrb[8].mxu1 }
 0x106   :  { %v628_v8 = vpop.f32.mrb[9].mxu0  ;;  %596 = vst [vmem:[%s890_s2 + $0x28] sm:$0xff] %v580_v4   ;;  %v652_v9 = vpop.f32.mrb[9].mxu1 }
 0x107   :  { %v629_v10 = vadd.f32 %v628_v8, %v627_v6  ;;  %v630_v11 = vpop.f32.mrb[10].mxu0  ;;  %v653_v12 = vadd.f32 %v652_v9, %v651_v7  ;;  %v654_v13 = vpop.f32.mrb[10].mxu1 }
 0x108   :  { %v631_v14 = vpop.f32.mrb[11].mxu0  ;;  %v655_v15 = vpop.f32.mrb[11].mxu1 }
 0x109   :  { %v419_v16 = vadd.f32 %v629_v10, %v418_v2  ;;  %v442_v17 = vmul.f32 %v629_v10, %v629_v10  ;;  %v632_v18 = vadd.f32 %v631_v14, %v630_v11  ;;  %v656_v19 = vadd.f32 %v655_v15, %v654_v13 }
 0x10a   :  { %v450_v60 = vmul.f32 %v653_v12, %v653_v12 }
 0x10b   :  { %v457_v20 = vadd.f32 %v456_v5, %v442_v17  ;;  %v565_v21 = vpack.c.bf16 %v632_v18, %v629_v10  ;;  %v420_v22 = vadd.f32 %v632_v18, %v419_v16  ;;  %v443_v23 = vmul.f32 %v632_v18, %v632_v18 }
 0x10c   :  { %v585_v24 = vpack.c.bf16 %v656_v19, %v653_v12  ;;  %v451_v1 = vmul.f32 %v656_v19, %v656_v19 }
 0x10d   :  { %593 = vst [vmem:[%s890_s2 + $0x10] sm:$0xff] %v565_v21   ;;  %v458_v25 = vadd.f32 %v457_v20, %v443_v23  ;;  %v633_v26 = vpop.f32.mrb[12].mxu0  ;;  %v657_v27 = vpop.f32.mrb[12].mxu1 }
 0x10e   :  { %v634_v28 = vpop.f32.mrb[13].mxu0  ;;  %597 = vst [vmem:[%s890_s2 + $0x30] sm:$0xff] %v585_v24   ;;  %v658_v29 = vpop.f32.mrb[13].mxu1 }
 0x10f   :  { %v635_v30 = vadd.f32 %v634_v28, %v633_v26  ;;  %v636_v31 = vpop.f32.mrb[14].mxu0  ;;  %v659_v32 = vadd.f32 %v658_v29, %v657_v27  ;;  %v660_v33 = vpop.f32.mrb[14].mxu1 }
 0x110   :  { %v637_v34 = vpop.f32.mrb[15].mxu0  ;;  %v661_v35 = vpop.f32.mrb[15].mxu1 }
 0x111   :  { %v421_v36 = vadd.f32 %v635_v30, %v420_v22  ;;  %v444_v37 = vmul.f32 %v635_v30, %v635_v30  ;;  %v638_v39 = vadd.f32 %v637_v34, %v636_v31  ;;  %v662_v40 = vadd.f32 %v661_v35, %v660_v33 }
 0x112   :  { %v452_v2 = vmul.f32 %v659_v32, %v659_v32 }
 0x113   :  { %v459_v41 = vadd.f32 %v458_v25, %v444_v37  ;;  %v570_v42 = vpack.c.bf16 %v638_v39, %v635_v30  ;;  %v422_v44 = vadd.f32 %v638_v39, %v421_v36  ;;  %v445_v45 = vmul.f32 %v638_v39, %v638_v39 }
 0x114   :  { %v590_v46 = vpack.c.bf16 %v662_v40, %v659_v32  ;;  %v453_v6 = vmul.f32 %v662_v40, %v662_v40 }
 0x115   :  { %594 = vst [vmem:[%s890_s2 + $0x18] sm:$0xff] %v570_v42   ;;  %v423_v48 = vadd.f32 %v840_v38, %v422_v44  ;;  %v460_v49 = vadd.f32 %v459_v41, %v445_v45 }
 0x116   :  { %598 = vst [vmem:[%s890_s2 + $0x38] sm:$0xff] %v590_v46  }
 0x117   :  { %v424_v51 = vadd.f32 %v842_v43, %v423_v48  ;;  %v461_v52 = vadd.f32 %v460_v49, %v446_v47 }
 0x119   :  { %v462_v54 = vadd.f32 %v461_v52, %v447_v50  ;;  %v425_v55 = vadd.f32 %v852_v56, %v424_v51 }
 0x11b   :  { %v426_v58 = vadd.f32 %v650_v63, %v425_v55  ;;  %v463_v38 = vadd.f32 %v462_v54, %v448_v53 }
 0x11d   :  { %v427_v59 = vadd.f32 %v653_v12, %v426_v58  ;;  %v464_v61 = vadd.f32 %v463_v38, %v449_v57 }
 0x11f   :  { %v465_v62 = vadd.f32 %v464_v61, %v450_v60  ;;  %v428_v0 = vadd.f32 %v656_v19, %v427_v59 }
 0x121   :  { %v466_v3 = vadd.f32 %v465_v62, %v451_v1  ;;  %v429_v4 = vadd.f32 %v659_v32, %v428_v0 }
 0x123   :  { %v467_v43 = vadd.f32 %v466_v3, %v452_v2  ;;  %v430_v5 = vadd.f32 %v662_v40, %v429_v4 }
 0x125   :  { %v431_v7 = vrot.slane %v430_v5, 4  ;;  %v468_v8 = vadd.f32 %v467_v43, %v453_v6 }
 0x127   :  { %v432_v9 = vadd.f32 %v431_v7, %v430_v5  ;;  %v469_v10 = vrot.slane %v468_v8, 4 }
 0x129   :  { %v433_v56 = vrot.slane %v432_v9, 2  ;;  %v470_v11 = vadd.f32 %v469_v10, %v468_v8 }
 0x12b   :  { %v434_v63 = vadd.f32 %v433_v56, %v432_v9  ;;  %v471_v13 = vrot.slane %v470_v11, 2 }
 0x12d   :  { %v435_v14 = vrot.slane %v434_v63, 1  ;;  %v472_v12 = vadd.f32 %v471_v13, %v470_v11 }
 0x12f   :  { %v436_v15 = vadd.f32 %v435_v14, %v434_v63  ;;  %v473_v16 = vrot.slane %v472_v12, 1 }
 0x131   :  { %437 = vst [vmem:[%s891_s3] sm:$0x1] %v436_v15  ;;  %v474_v17 = vadd.f32 %v473_v16, %v472_v12 }
 0x133   :  { %475 = vst [vmem:[%s892_s4] sm:$0x1] %v474_v17 }

// kernel: discriminator_forward.14
= control target key start
LH: loop header
LB: loop body
LE: loop exit
PB: predicated region body
PF: predicated region fallthrough
CT: control target
= control target key end

     0   :  { %v43_v8 = vlaneseq  ;;  %s182_s1 = inlined_call_operand.vmem [shape: f32[1,128], index: 1, kind: input, shape index: {}]   ;;  %s183_s2 = inlined_call_operand.vmem [shape: f32[1,128], index: 2, kind: input, shape index: {}]   ;;  %s184_s0 = inlined_call_operand.vmem [shape: bf16[32,128], index: 0, kind: input, shape index: {}]   ;;  %s185_s3 = inlined_call_operand.vmem [shape: f32[1,128], index: 3, kind: input, shape index: {}]   ;;  %s186_s4 = inlined_call_operand.vmem [shape: f32[1,128], index: 4, kind: input, shape index: {}]   ;;  %s187_s5 = inlined_call_operand.vmem [shape: bf16[32,128], index: 5, kind: output, shape index: {}]  }
   0x1   :  { %v20_v0 = vld [vmem:[%s182_s1] sm:$0x1]  ;;  %v124_v12 = vld [vmem:[%s184_s0 + $0x8] sm:$0xff]  }
   0x2   :  { %v22_v1 = vld [vmem:[%s183_s2] sm:$0x1]  ;;  %v21_v2 = vmul.f32 0.03125, %v20_v0  ;;  %v44_v9 = vshrl.u32 %v43_v8, 7  ;;  %v112_v18 = vunpack.c.l.bf16 %v124_v12  ;;  %v113_v20 = vunpack.c.h.bf16 %v124_v12 }
   0x3   :  { %v23_v3 = vmul.f32 0.03125, %v22_v1  ;;  %v29_v10 = vld [vmem:[%s185_s3] sm:$0x1] }
   0x4   :  { %v24_v4 = vmul.f32 %v21_v2, %v21_v2  ;;  %v107_v11 = vld [vmem:[%s184_s0] sm:$0xff]   ;;  %v45_v13 = vsub.s32 0, %v44_v9 }
   0x5   :  { %v108_v16 = vunpack.c.l.bf16 %v107_v11  ;;  %v109_v17 = vunpack.c.h.bf16 %v107_v11  ;;  %v31_v19 = vld [vmem:[%s186_s4] sm:$0x1] }
   0x6   :  { %v25_v5 = vsub.f32 %v23_v3, %v24_v4 }
   0x8   :  { %v26_v6 = vmax.f32 %v25_v5, 0.0 }
   0xa   :  { %v27_v7 = vadd.f32 1e-05, %v26_v6 }
   0xc   :  { %126 = vrsqrt.f32 %v27_v7 }
  0x16   :  { %v127_v14 = vpop.eup %126 }
  0x17   :  { %v30_v15 = vmul.f32 %v127_v14, %v29_v10 }
  0x19   :  { %v32_v21 = vmul.f32 %v30_v15, %v21_v2  ;;  %v46_v22 = vrot.slane %v30_v15, %v45_v13 }
  0x1b   :  { %v33_v23 = vsub.f32 %v31_v19, %v32_v21  ;;  %v48_v24 = vmul.f32 %v108_v16, %v46_v22  ;;  %v49_v25 = vmul.f32 %v109_v17, %v46_v22  ;;  %v50_v26 = vmul.f32 %v112_v18, %v46_v22 }
  0x1c   :  { %v51_v27 = vmul.f32 %v113_v20, %v46_v22 }
  0x1d   :  { %v56_v28 = vrot.slane %v33_v23, %v45_v13 }
  0x1f   :  { %v58_v29 = vadd.f32 %v56_v28, %v48_v24  ;;  %v59_v30 = vadd.f32 %v56_v28, %v49_v25  ;;  %v60_v31 = vadd.f32 %v56_v28, %v50_v26  ;;  %v61_v32 = vadd.f32 %v56_v28, %v51_v27 }
  0x21   :  { %vm62_vm0 = vcmp.ge.f32.partialorder %v58_v29, 0.0  ;;  %vm63_vm1 = vcmp.ge.f32.partialorder %v59_v30, 0.0  ;;  %v66_v33 = vmul.f32 0.2, %v58_v29  ;;  %v67_v34 = vmul.f32 0.2, %v59_v30 }
  0x22   :  { %vm64_vm2 = vcmp.ge.f32.partialorder %v60_v31, 0.0  ;;  %vm65_vm3 = vcmp.ge.f32.partialorder %v61_v32, 0.0  ;;  %v68_v35 = vmul.f32 0.2, %v60_v31  ;;  %v69_v36 = vmul.f32 0.2, %v61_v32 }
  0x23   :  { %v70_v37 = vsel %vm62_vm0, %v58_v29, %v66_v33  ;;  %v71_v38 = vsel %vm63_vm1, %v59_v30, %v67_v34 }
  0x24   :  { %v117_v39 = vpack.c.bf16 %v71_v38, %v70_v37  ;;  %v72_v40 = vsel %vm64_vm2, %v60_v31, %v68_v35  ;;  %v73_v41 = vsel %vm65_vm3, %v61_v32, %v69_v36 }
  0x25   :  { %v122_v42 = vpack.c.bf16 %v73_v41, %v72_v40 }
  0x26   :  { %118 = vst [vmem:[%s187_s5] sm:$0xff] %v117_v39  }
  0x27   :  { %125 = vst [vmem:[%s187_s5 + $0x8] sm:$0xff] %v122_v42  }

// kernel: discriminator_forward.13
= control target key start
LH: loop header
LB: loop body
LE: loop exit
PB: predicated region body
PF: predicated region fallthrough
CT: control target
= control target key end

     0   :  { %s789_s1 = inlined_call_operand.vmem [shape: bf16[512,128], index: 1, kind: input, shape index: {}]   ;;  %s790_s0 = inlined_call_operand.vmem [shape: bf16[32,512], index: 0, kind: input, shape index: {}]   ;;  %s791_s2 = inlined_call_operand.vmem [shape: bf16[32,128], index: 2, kind: output, shape index: {0}]   ;;  %s792_s3 = inlined_call_operand.vmem [shape: f32[1,1,128], index: 3, kind: output, shape index: {1}]   ;;  %s793_s4 = inlined_call_operand.vmem [shape: f32[1,1,128], index: 4, kind: output, shape index: {2}]  }
   0x1   :  { %v588_v0 = vld [vmem:[%s789_s1 + $0x40] sm:$0xff]   ;;  %v592_v4 = vld [vmem:[%s789_s1 + $0x48] sm:$0xff]   ;;  %v596_v8 = vld [vmem:[%s789_s1 + $0x50] sm:$0xff]  }
   0x2   :  { %v589_v1 = vld [vmem:[%s789_s1 + $0xc0] sm:$0xff]   ;;  %532 = vmatprep.subr.bf16.mxu0 %v588_v0  ;;  %v593_v5 = vld [vmem:[%s789_s1 + $0xc8] sm:$0xff]   ;;  %v597_v9 = vld [vmem:[%s789_s1 + $0xd0] sm:$0xff]  }
   0x3   :  { %v590_v2 = vld [vmem:[%s789_s1] sm:$0xff]   ;;  %560 = vmatprep.subr.bf16.mxu1 %v589_v1  ;;  %v594_v6 = vld [vmem:[%s789_s1 + $0x8] sm:$0xff]   ;;  %v598_v10 = vld [vmem:[%s789_s1 + $0x10] sm:$0xff]  }
   0x4   :  { %v591_v3 = vld [vmem:[%s789_s1 + $0x80] sm:$0xff]   ;;  %533 = vmatpush3.bf16.msra.mxu0 %v590_v2  ;;  %v595_v7 = vld [vmem:[%s789_s1 + $0x88] sm:$0xff]   ;;  %v599_v11 = vld [vmem:[%s789_s1 + $0x90] sm:$0xff]  }
   0x5   :  { %561 = vmatpush3.bf16.msra.mxu1 %v591_v3  ;;  %534 = vmatprep.subr.bf16.mxu0 %v592_v4  ;;  %v600_v12 = vld [vmem:[%s789_s1 + $0x58] sm:$0xff]   ;;  %v604_v16 = vld [vmem:[%s789_s1 + $0x60] sm:$0xff]   ;;  %v608_v20 = vld [vmem:[%s789_s1 + $0x68] sm:$0xff]  }
   0x6   :  { %562 = vmatprep.subr.bf16.mxu1 %v593_v5  ;;  %v601_v13 = vld [vmem:[%s789_s1 + $0xd8] sm:$0xff]   ;;  %v605_v17 = vld [vmem:[%s789_s1 + $0xe0] sm:$0xff]   ;;  %v609_v21 = vld [vmem:[%s789_s1 + $0xe8] sm:$0xff]  }
   0x7   :  { %v602_v14 = vld [vmem:[%s789_s1 + $0x18] sm:$0xff]   ;;  %v606_v18 = vld [vmem:[%s789_s1 + $0x20] sm:$0xff]   ;;  %v610_v22 = vld [vmem:[%s789_s1 + $0x28] sm:$0xff]  }
   0x8   :  { %535 = vmatpush3.bf16.msra.mxu0 %v594_v6  ;;  %v603_v15 = vld [vmem:[%s789_s1 + $0x98] sm:$0xff]   ;;  %v607_v19 = vld [vmem:[%s789_s1 + $0xa0] sm:$0xff]   ;;  %v611_v23 = vld [vmem:[%s789_s1 + $0xa8] sm:$0xff]  }
   0x9   :  { %563 = vmatpush3.bf16.msra.mxu1 %v595_v7  ;;  %536 = vmatprep.subr.bf16.mxu0 %v596_v8  ;;  %v612_v24 = vld [vmem:[%s789_s1 + $0x70] sm:$0xff]   ;;  %v616_v28 = vld [vmem:[%s789_s1 + $0x78] sm:$0xff]  }
   0xa   :  { %564 = vmatprep.subr.bf16.mxu1 %v597_v9  ;;  %v613_v25 = vld [vmem:[%s789_s1 + $0xf0] sm:$0xff]   ;;  %v617_v29 = vld [vmem:[%s789_s1 + $0xf8] sm:$0xff]  }
   0xb   :  { %v614_v26 = vld [vmem:[%s789_s1 + $0x30] sm:$0xff]   ;;  %v618_v30 = vld [vmem:[%s789_s1 + $0x38] sm:$0xff]  }
   0xc   :  { %537 = vmatpush3.bf16.msra.mxu0 %v598_v10  ;;  %v615_v27 = vld [vmem:[%s789_s1 + $0xb0] sm:$0xff]   ;;  %v619_v31 = vld [vmem:[%s789_s1 + $0xb8] sm:$0xff]  }
   0xd   :  { %565 = vmatpush3.bf16.msra.mxu1 %v599_v11  ;;  %538 = vmatprep.subr.bf16.mxu0 %v600_v12  ;;  %v620_v32 = vld [vmem:[%s790_s0] ss:$16 sps:$4 sm:$0xff]   ;;  %v622_v33 = vld [vmem:[%s790_s0 + $0x4] ss:$16 sps:$4 sm:$0xff]   ;;  %v623_v34 = vld [vmem:[%s790_s0 + $0x8] ss:$16 sps:$4 sm:$0xff]  }
   0xe   :  { %566 = vmatprep.subr.bf16.mxu1 %v601_v13  ;;  %v625_v35 = vld [vmem:[%s790_s0 + $0xc] ss:$16 sps:$4 sm:$0xff]   ;;  %351 = vmatprep.mubr.bf16.mxu0 %v622_v33  ;;  %v626_v36 = vld [vmem:[%s790_s0 + $0x24] ss:$16 sps:$4 sm:$0xff]   ;;  %v630_v38 = vld [vmem:[%s790_s0 + $0x20] ss:$16 sps:$4 sm:$0xff]  }
   0xf   :  { %400 = vmatprep.mubr.bf16.mxu1 %v625_v35  ;;  %v628_v37 = vld [vmem:[%s790_s0 + $0x2c] ss:$16 sps:$4 sm:$0xff]   ;;  %v631_v39 = vld [vmem:[%s790_s0 + $0x28] ss:$16 sps:$4 sm:$0xff]  }
  0x10   :  { %539 = vmatpush3.bf16.msra.mxu0 %v602_v14 }
  0x11   :  { %567 = vmatpush3.bf16.msra.mxu1 %v603_v15  ;;  %540 = vmatprep.subr.bf16.mxu0 %v604_v16 }
  0x12   :  { %568 = vmatprep.subr.bf16.mxu1 %v605_v17 }
  0x14   :  { %541 = vmatpush3.bf16.msra.mxu0 %v606_v18 }
  0x15   :  { %569 = vmatpush3.bf16.msra.mxu1 %v607_v19  ;;  %542 = vmatprep.subr.bf16.mxu0 %v608_v20 }
  0x16   :  { %570 = vmatprep.subr.bf16.mxu1 %v609_v21 }
  0x18   :  { %543 = vmatpush3.bf16.msra.mxu0 %v610_v22 }
  0x19   :  { %571 = vmatpush3.bf16.msra.mxu1 %v611_v23  ;;  %544 = vmatprep.subr.bf16.mxu0 %v612_v24 }
  0x1a   :  { %572 = vmatprep.subr.bf16.mxu1 %v613_v25 }
  0x1c   :  { %545 = vmatpush3.bf16.msra.mxu0 %v614_v26 }
  0x1d   :  { %573 = vmatpush3.bf16.msra.mxu1 %v615_v27  ;;  %546 = vmatprep.subr.bf16.mxu0 %v616_v28 }
  0x1e   :  { %574 = vmatprep.subr.bf16.mxu1 %v617_v29 }
  0x20   :  { %547 = vmatpush3.bf16.msra.mxu0 %v618_v30 }
  0x21   :  { %575 = vmatpush3.bf16.msra.mxu1 %v619_v31 }
  0x23   :  { %352 = vmatmul.mubr.bf16.vlgmr.msra.gmra.mrb[0].mxu0 %v620_v32 }
  0x24   :  { %401 = vmatmul.mubr.bf16.vlgmr.msra.gmra.mrb[0].mxu1 %v623_v34  ;;  %359 = vmatprep.mubr.bf16.mxu0 %v626_v36 }
  0x25   :  { %408 = vmatprep.mubr.bf16.mxu1 %v628_v37 }
  0x2b   :  { %360 = vmatmul.mubr.bf16.gmra.mrb[4].mxu0 %v630_v38 }
  0x2c   :  { %409 = vmatmul.mubr.bf16.gmra.mrb[4].mxu1 %v631_v39 }
  0xf6   :  { %v548_v40 = vpop.f32.mrb[0].mxu0 }
  0xf7   :  { %v576_v41 = vpop.f32.mrb[0].mxu1  ;;  %v549_v42 = vpop.f32.mrb[1].mxu0 }
  0xf8   :  { %v550_v43 = vadd.f32 %v549_v42, %v548_v40  ;;  %v577_v44 = vpop.f32.mrb[1].mxu1  ;;  %v551_v45 = vpop.f32.mrb[2].mxu0 }
  0xf9   :  { %v578_v46 = vadd.f32 %v577_v44, %v576_v41  ;;  %v579_v47 = vpop.f32.mrb[2].mxu1  ;;  %v552_v48 = vpop.f32.mrb[3].mxu0 }
  0xfa   :  { %v553_v49 = vadd.f32 %v552_v48, %v551_v45  ;;  %v580_v50 = vpop.f32.mrb[3].mxu1 }
  0xfb   :  { %v403_v51 = vadd.f32 %v578_v46, %v550_v43  ;;  %v581_v52 = vadd.f32 %v580_v50, %v579_v47 }
  0xfd   :  { %v406_v53 = vadd.f32 %v581_v52, %v553_v49  ;;  %v447_v55 = vmul.f32 %v403_v51, %v403_v51 }
  0xfe   :  { %v554_v54 = vpop.f32.mrb[4].mxu0 }
  0xff   :  { %v524_v56 = vpack.c.bf16 %v406_v53, %v403_v51  ;;  %v437_v57 = vadd.f32 %v406_v53, %v403_v51  ;;  %v448_v58 = vmul.f32 %v406_v53, %v406_v53  ;;  %v582_v59 = vpop.f32.mrb[4].mxu1  ;;  %v555_v60 = vpop.f32.mrb[5].mxu0 }
 0x100   :  { %v556_v61 = vadd.f32 %v555_v60, %v554_v54  ;;  %v583_v62 = vpop.f32.mrb[5].mxu1  ;;  %v557_v63 = vpop.f32.mrb[6].mxu0 }
 0x101   :  { %525 = vst [vmem:[%s791_s2] sm:$0xff] %v524_v56   ;;  %v451_v0 = vadd.f32 %v448_v58, %v447_v55  ;;  %v584_v1 = vadd.f32 %v583_v62, %v582_v59  ;;  %v585_v2 = vpop.f32.mrb[6].mxu1  ;;  %v558_v3 = vpop.f32.mrb[7].mxu0 }
 0x102   :  { %v559_v4 = vadd.f32 %v558_v3, %v557_v63  ;;  %v586_v5 = vpop.f32.mrb[7].mxu1 }
 0x103   :  { %v411_v6 = vadd.f32 %v584_v1, %v556_v61  ;;  %v587_v7 = vadd.f32 %v586_v5, %v585_v2 }
 0x105   :  { %v438_v8 = vadd.f32 %v437_v57, %v411_v6  ;;  %v449_v9 = vmul.f32 %v411_v6, %v411_v6  ;;  %v414_v10 = vadd.f32 %v587_v7, %v559_v4 }
 0x107   :  { %v452_v11 = vadd.f32 %v451_v0, %v449_v9  ;;  %v529_v12 = vpack.c.bf16 %v414_v10, %v411_v6  ;;  %v439_v13 = vadd.f32 %v438_v8, %v414_v10  ;;  %v450_v14 = vmul.f32 %v414_v10, %v414_v10 }
 0x109   :  { %531 = vst [vmem:[%s791_s2 + $0x8] sm:$0xff] %v529_v12   ;;  %v440_v15 = vrot.slane %v439_v13, 4  ;;  %v453_v16 = vadd.f32 %v452_v11, %v450_v14 }
 0x10b   :  { %v441_v17 = vadd.f32 %v440_v15, %v439_v13  ;;  %v454_v18 = vrot.slane %v453_v16, 4 }
 0x10d   :  { %v442_v19 = vrot.slane %v441_v17, 2  ;;  %v455_v20 = vadd.f32 %v454_v18, %v453_v16 }
 0x10f   :  { %v443_v21 = vadd.f32 %v442_v19, %v441_v17  ;;  %v456_v22 = vrot.slane %v455_v20, 2 }
 0x111   :  { %v444_v23 = vrot.slane %v443_v21, 1  ;;  %v457_v24 = vadd.f32 %v456_v22, %v455_v20 }
 0x113   :  { %v445_v25 = vadd.f32 %v444_v23, %v443_v21  ;;  %v458_v26 = vrot.slane %v457_v24, 1 }
 0x115   :  { %446 = vst [vmem:[%s792_s3] sm:$0x1] %v445_v25  ;;  %v459_v27 = vadd.f32 %v458_v26, %v457_v24 }
 0x117   :  { %460 = vst [vmem:[%s793_s4] sm:$0x1] %v459_v27 }

// kernel: discriminator_forward.15
= control target key start
LH: loop header
LB: loop body
LE: loop exit
PB: predicated region body
PF: predicated region fallthrough
CT: control target
= control target key end

     0   :  { %s1186_s1 = inlined_call_operand.vmem [shape: bf16[1024,128], index: 1, kind: input, shape index: {}]   ;;  %s1187_s0 = inlined_call_operand.vmem [shape: bf16[8,1024], index: 0, kind: input, shape index: {}]   ;;  %s1188_s2 = inlined_call_operand.vmem [shape: f32[8,128], index: 2, kind: output, shape index: {}]  }
   0x1   :  { %v888_v0 = vld [vmem:[%s1186_s1 + $0x40] sm:$0xff]   ;;  %v892_v4 = vld [vmem:[%s1186_s1 + $0x48] sm:$0xff]   ;;  %v896_v8 = vld [vmem:[%s1186_s1 + $0x50] sm:$0xff]  }
   0x2   :  { %v889_v1 = vld [vmem:[%s1186_s1 + $0xc0] sm:$0xff]   ;;  %800 = vmatprep.subr.bf16.mxu0 %v888_v0  ;;  %v893_v5 = vld [vmem:[%s1186_s1 + $0xc8] sm:$0xff]   ;;  %v897_v9 = vld [vmem:[%s1186_s1 + $0xd0] sm:$0xff]  }
   0x3   :  { %v890_v2 = vld [vmem:[%s1186_s1] sm:$0xff]   ;;  %822 = vmatprep.subr.bf16.mxu1 %v889_v1  ;;  %v894_v6 = vld [vmem:[%s1186_s1 + $0x8] sm:$0xff]   ;;  %v898_v10 = vld [vmem:[%s1186_s1 + $0x10] sm:$0xff]  }
   0x4   :  { %v891_v3 = vld [vmem:[%s1186_s1 + $0x80] sm:$0xff]   ;;  %801 = vmatpush3.bf16.msra.mxu0 %v890_v2  ;;  %v895_v7 = vld [vmem:[%s1186_s1 + $0x88] sm:$0xff]   ;;  %v899_v11 = vld [vmem:[%s1186_s1 + $0x90] sm:$0xff]  }
   0x5   :  { %823 = vmatpush3.bf16.msra.mxu1 %v891_v3  ;;  %802 = vmatprep.subr.bf16.mxu0 %v892_v4  ;;  %v900_v12 = vld [vmem:[%s1186_s1 + $0x58] sm:$0xff]   ;;  %v904_v16 = vld [vmem:[%s1186_s1 + $0x60] sm:$0xff]   ;;  %v908_v20 = vld [vmem:[%s1186_s1 + $0x68] sm:$0xff]  }
   0x6   :  { %824 = vmatprep.subr.bf16.mxu1 %v893_v5  ;;  %v901_v13 = vld [vmem:[%s1186_s1 + $0xd8] sm:$0xff]   ;;  %v905_v17 = vld [vmem:[%s1186_s1 + $0xe0] sm:$0xff]   ;;  %v909_v21 = vld [vmem:[%s1186_s1 + $0xe8] sm:$0xff]  }
   0x7   :  { %v902_v14 = vld [vmem:[%s1186_s1 + $0x18] sm:$0xff]   ;;  %v906_v18 = vld [vmem:[%s1186_s1 + $0x20] sm:$0xff]   ;;  %v910_v22 = vld [vmem:[%s1186_s1 + $0x28] sm:$0xff]  }
   0x8   :  { %803 = vmatpush3.bf16.msra.mxu0 %v894_v6  ;;  %v903_v15 = vld [vmem:[%s1186_s1 + $0x98] sm:$0xff]   ;;  %v907_v19 = vld [vmem:[%s1186_s1 + $0xa0] sm:$0xff]   ;;  %v911_v23 = vld [vmem:[%s1186_s1 + $0xa8] sm:$0xff]  }
   0x9   :  { %825 = vmatpush3.bf16.msra.mxu1 %v895_v7  ;;  %804 = vmatprep.subr.bf16.mxu0 %v896_v8  ;;  %v912_v24 = vld [vmem:[%s1186_s1 + $0x70] sm:$0xff]   ;;  %v916_v28 = vld [vmem:[%s1186_s1 + $0x78] sm:$0xff]   ;;  %v12_v32 = vld [vmem:[%s1187_s0] sm:$0xff] }
   0xa   :  { %826 = vmatprep.subr.bf16.mxu1 %v897_v9  ;;  %v913_v25 = vld [vmem:[%s1186_s1 + $0xf0] sm:$0xff]   ;;  %v917_v29 = vld [vmem:[%s1186_s1 + $0xf8] sm:$0xff]   ;;  %v13_v33 = vld [vmem:[%s1187_s0 + $0x8] sm:$0xff]  ;;  %v728_v34 = vcombine.low %v12_v32, %v12_v32  ;;  %v729_v35 = vcombine.high %v12_v32, %v12_v32 }
   0xb   :  { %v914_v26 = vld [vmem:[%s1186_s1 + $0x30] sm:$0xff]   ;;  %v918_v30 = vld [vmem:[%s1186_s1 + $0x38] sm:$0xff]   ;;  %v730_v36 = vcombine.low %v13_v33, %v13_v33  ;;  %v731_v37 = vcombine.high %v13_v33, %v13_v33  ;;  %v924_v38 = vld [vmem:[%s1186_s1 + $0x140] sm:$0xff]  }
   0xc   :  { %805 = vmatpush3.bf16.msra.mxu0 %v898_v10  ;;  %v915_v27 = vld [vmem:[%s1186_s1 + $0xb0] sm:$0xff]   ;;  %v919_v31 = vld [vmem:[%s1186_s1 + $0xb8] sm:$0xff]   ;;  %v925_v39 = vld [vmem:[%s1186_s1 + $0x1c0] sm:$0xff]   ;;  %588 = vmatprep.mubr.bf16.mxu0 %v729_v35 }
   0xd   :  { %827 = vmatpush3.bf16.msra.mxu1 %v899_v11  ;;  %806 = vmatprep.subr.bf16.mxu0 %v900_v12  ;;  %v926_v40 = vld [vmem:[%s1186_s1 + $0x100] sm:$0xff]   ;;  %v928_v42 = vld [vmem:[%s1186_s1 + $0x148] sm:$0xff]   ;;  %v932_v46 = vld [vmem:[%s1186_s1 + $0x150] sm:$0xff]  }
   0xe   :  { %828 = vmatprep.subr.bf16.mxu1 %v901_v13  ;;  %628 = vmatprep.mubr.bf16.mxu1 %v731_v37  ;;  %v927_v41 = vld [vmem:[%s1186_s1 + $0x180] sm:$0xff]   ;;  %v929_v43 = vld [vmem:[%s1186_s1 + $0x1c8] sm:$0xff]   ;;  %v933_v47 = vld [vmem:[%s1186_s1 + $0x1d0] sm:$0xff]  }
   0xf   :  { %v930_v44 = vld [vmem:[%s1186_s1 + $0x108] sm:$0xff]   ;;  %v934_v48 = vld [vmem:[%s1186_s1 + $0x110] sm:$0xff]   ;;  %v936_v50 = vld [vmem:[%s1186_s1 + $0x158] sm:$0xff]  }
  0x10   :  { %807 = vmatpush3.bf16.msra.mxu0 %v902_v14  ;;  %v931_v45 = vld [vmem:[%s1186_s1 + $0x188] sm:$0xff]   ;;  %v935_v49 = vld [vmem:[%s1186_s1 + $0x190] sm:$0xff]   ;;  %v937_v51 = vld [vmem:[%s1186_s1 + $0x1d8] sm:$0xff]  }
  0x11   :  { %829 = vmatpush3.bf16.msra.mxu1 %v903_v15  ;;  %808 = vmatprep.subr.bf16.mxu0 %v904_v16  ;;  %v938_v52 = vld [vmem:[%s1186_s1 + $0x118] sm:$0xff]   ;;  %v940_v54 = vld [vmem:[%s1186_s1 + $0x160] sm:$0xff]   ;;  %v944_v58 = vld [vmem:[%s1186_s1 + $0x168] sm:$0xff]  }
  0x12   :  { %830 = vmatprep.subr.bf16.mxu1 %v905_v17  ;;  %v939_v53 = vld [vmem:[%s1186_s1 + $0x198] sm:$0xff]   ;;  %v941_v55 = vld [vmem:[%s1186_s1 + $0x1e0] sm:$0xff]   ;;  %v945_v59 = vld [vmem:[%s1186_s1 + $0x1e8] sm:$0xff]  }
  0x13   :  { %v942_v56 = vld [vmem:[%s1186_s1 + $0x120] sm:$0xff]   ;;  %v946_v60 = vld [vmem:[%s1186_s1 + $0x128] sm:$0xff]   ;;  %v948_v62 = vld [vmem:[%s1186_s1 + $0x170] sm:$0xff]  }
  0x14   :  { %809 = vmatpush3.bf16.msra.mxu0 %v906_v18  ;;  %v943_v57 = vld [vmem:[%s1186_s1 + $0x1a0] sm:$0xff]   ;;  %v947_v61 = vld [vmem:[%s1186_s1 + $0x1a8] sm:$0xff]   ;;  %v949_v63 = vld [vmem:[%s1186_s1 + $0x1f0] sm:$0xff]  }
  0x15   :  { %831 = vmatpush3.bf16.msra.mxu1 %v907_v19  ;;  %810 = vmatprep.subr.bf16.mxu0 %v908_v20  ;;  %v950_v0 = vld [vmem:[%s1186_s1 + $0x130] sm:$0xff]   ;;  %v952_v2 = vld [vmem:[%s1186_s1 + $0x178] sm:$0xff]  }
  0x16   :  { %832 = vmatprep.subr.bf16.mxu1 %v909_v21  ;;  %v951_v1 = vld [vmem:[%s1186_s1 + $0x1b0] sm:$0xff]   ;;  %v953_v3 = vld [vmem:[%s1186_s1 + $0x1f8] sm:$0xff]  }
  0x17   :  { %v954_v4 = vld [vmem:[%s1186_s1 + $0x138] sm:$0xff]   ;;  %v14_v6 = vld [vmem:[%s1187_s0 + $0x10] sm:$0xff] }
  0x18   :  { %811 = vmatpush3.bf16.msra.mxu0 %v910_v22  ;;  %v955_v5 = vld [vmem:[%s1186_s1 + $0x1b8] sm:$0xff]   ;;  %v732_v7 = vcombine.low %v14_v6, %v14_v6  ;;  %v733_v8 = vcombine.high %v14_v6, %v14_v6 }
  0x19   :  { %833 = vmatpush3.bf16.msra.mxu1 %v911_v23  ;;  %812 = vmatprep.subr.bf16.mxu0 %v912_v24  ;;  %v15_v9 = vld [vmem:[%s1187_s0 + $0x18] sm:$0xff] }
  0x1a   :  { %834 = vmatprep.subr.bf16.mxu1 %v913_v25  ;;  %v734_v10 = vcombine.low %v15_v9, %v15_v9  ;;  %v735_v11 = vcombine.high %v15_v9, %v15_v9 }
  0x1c   :  { %813 = vmatpush3.bf16.msra.mxu0 %v914_v26 }
  0x1d   :  { %835 = vmatpush3.bf16.msra.mxu1 %v915_v27  ;;  %814 = vmatprep.subr.bf16.mxu0 %v916_v28 }
  0x1e   :  { %836 = vmatprep.subr.bf16.mxu1 %v917_v29 }
  0x20   :  { %815 = vmatpush3.bf16.msra.mxu0 %v918_v30 }
  0x21   :  { %837 = vmatpush3.bf16.msra.mxu1 %v919_v31  ;;  %844 = vmatprep.subr.bf16.mxu0 %v924_v38 }
  0x22   :  { %866 = vmatprep.subr.bf16.mxu1 %v925_v39 }
  0x23   :  { %589 = vmatmul.mubr.bf16.vlgmr.msra.gmra.mrb[0].mxu0 %v728_v34 }
  0x24   :  { %629 = vmatmul.mubr.bf16.vlgmr.msra.gmra.mrb[0].mxu1 %v730_v36  ;;  %845 = vmatpush3.bf16.msra.mxu0 %v926_v40 }
  0x25   :  { %867 = vmatpush3.bf16.msra.mxu1 %v927_v41  ;;  %846 = vmatprep.subr.bf16.mxu0 %v928_v42 }
  0x26   :  { %868 = vmatprep.subr.bf16.mxu1 %v929_v43  ;;  %668 = vmatprep.mubr.bf16.mxu0 %v733_v8 }
  0x27   :  { %708 = vmatprep.mubr.bf16.mxu1 %v735_v11 }
  0x28   :  { %847 = vmatpush3.bf16.msra.mxu0 %v930_v44 }
  0x29   :  { %869 = vmatpush3.bf16.msra.mxu1 %v931_v45  ;;  %848 = vmatprep.subr.bf16.mxu0 %v932_v46 }
  0x2a   :  { %870 = vmatprep.subr.bf16.mxu1 %v933_v47 }
  0x2c   :  { %849 = vmatpush3.bf16.msra.mxu0 %v934_v48 }
  0x2d   :  { %871 = vmatpush3.bf16.msra.mxu1 %v935_v49  ;;  %850 = vmatprep.subr.bf16.mxu0 %v936_v50 }
  0x2e   :  { %872 = vmatprep.subr.bf16.mxu1 %v937_v51 }
  0x30   :  { %851 = vmatpush3.bf16.msra.mxu0 %v938_v52 }
  0x31   :  { %873 = vmatpush3.bf16.msra.mxu1 %v939_v53  ;;  %852 = vmatprep.subr.bf16.mxu0 %v940_v54 }
  0x32   :  { %874 = vmatprep.subr.bf16.mxu1 %v941_v55 }
  0x34   :  { %853 = vmatpush3.bf16.msra.mxu0 %v942_v56 }
  0x35   :  { %875 = vmatpush3.bf16.msra.mxu1 %v943_v57  ;;  %854 = vmatprep.subr.bf16.mxu0 %v944_v58 }
  0x36   :  { %876 = vmatprep.subr.bf16.mxu1 %v945_v59 }
  0x38   :  { %855 = vmatpush3.bf16.msra.mxu0 %v946_v60 }
  0x39   :  { %877 = vmatpush3.bf16.msra.mxu1 %v947_v61  ;;  %856 = vmatprep.subr.bf16.mxu0 %v948_v62 }
  0x3a   :  { %878 = vmatprep.subr.bf16.mxu1 %v949_v63 }
  0x3c   :  { %857 = vmatpush3.bf16.msra.mxu0 %v950_v0 }
  0x3d   :  { %879 = vmatpush3.bf16.msra.mxu1 %v951_v1  ;;  %858 = vmatprep.subr.bf16.mxu0 %v952_v2 }
  0x3e   :  { %880 = vmatprep.subr.bf16.mxu1 %v953_v3 }
  0x40   :  { %859 = vmatpush3.bf16.msra.mxu0 %v954_v4 }
  0x41   :  { %881 = vmatpush3.bf16.msra.mxu1 %v955_v5 }
  0x43   :  { %669 = vmatmul.mubr.bf16.vlgmr.msra.gmra.mrb[4].mxu0 %v732_v7 }
  0x44   :  { %709 = vmatmul.mubr.bf16.vlgmr.msra.gmra.mrb[4].mxu1 %v734_v10 }
  0xf6   :  { %v816_v12 = vpop.f32.mrb[0].mxu0 }
  0xf7   :  { %v838_v13 = vpop.f32.mrb[0].mxu1  ;;  %v817_v14 = vpop.f32.mrb[1].mxu0 }
  0xf8   :  { %v839_v15 = vpop.f32.mrb[1].mxu1  ;;  %v818_v16 = vadd.f32 %v817_v14, %v816_v12  ;;  %v819_v18 = vpop.f32.mrb[2].mxu0 }
  0xf9   :  { %v840_v17 = vadd.f32 %v839_v15, %v838_v13  ;;  %v841_v19 = vpop.f32.mrb[2].mxu1  ;;  %v820_v20 = vpop.f32.mrb[3].mxu0 }
  0xfa   :  { %v842_v21 = vpop.f32.mrb[3].mxu1 }
  0xfb   :  { %v631_v22 = vadd.f32 %v840_v17, %v818_v16 }
 0x116   :  { %v860_v23 = vpop.f32.mrb[4].mxu0 }
 0x117   :  { %v882_v24 = vpop.f32.mrb[4].mxu1  ;;  %v861_v25 = vpop.f32.mrb[5].mxu0 }
 0x118   :  { %v883_v26 = vpop.f32.mrb[5].mxu1  ;;  %v862_v27 = vadd.f32 %v861_v25, %v860_v23  ;;  %v863_v29 = vpop.f32.mrb[6].mxu0 }
 0x119   :  { %v884_v28 = vadd.f32 %v883_v26, %v882_v24  ;;  %v885_v30 = vpop.f32.mrb[6].mxu1  ;;  %v864_v31 = vpop.f32.mrb[7].mxu0 }
 0x11a   :  { %v886_v32 = vpop.f32.mrb[7].mxu1  ;;  %v671_v33 = vadd.f32 %v862_v27, %v631_v22 }
 0x11c   :  { %v711_v34 = vadd.f32 %v884_v28, %v671_v33 }
 0x11e   :  { %v716_v35 = vsub.f32 0.0, %v711_v34 }
 0x120   :  { %v717_v36 = vmul.f32 1.442695, %v716_v35 }
 0x122   :  { %960 = vpow2.f32 %v717_v36 }
 0x12c   :  { %v961_v37 = vpop.eup %960 }
 0x12d   :  { %v719_v38 = vadd.f32 1.0, %v961_v37 }
 0x12f   :  { %962 = vrcp.f32 %v719_v38 }
 0x139   :  { %v963_v39 = vpop.eup %962 }
 0x13a   :  { %v721_v40 = vmax.f32 %v963_v39, 0.0 }
 0x13c   :  { %v722_v41 = vmin.f32 %v721_v40, 1.0 }
 0x13e   :  { %723 = vst [vmem:[%s1188_s2] sm:$0xff] %v722_v41 }

</bundles_post_ra>
